<compile_context>
chip_gen: v7x
topology: tpu7x:2x2x1
jax: 0.10.0
libtpu: 0.0.40
codegen_flags: <defaults>
</compile_context>

<pallas_src>
import jax
import jax.numpy as jnp
from jax import lax
from jax.experimental import pallas as pl
from jax.experimental.pallas import tpu as pltpu


def _classifier_kernel(emb_ref, tags_ref, mask_ref,
                       bio_g_ref, wx_ref, wh_ref,
                       wa_ref, ba_ref, va_ref, wl_ref, bl_ref,
                       out_ref,
                       gx_ref, hall_ref, p_ref):
    N, Bp, H = emb_ref.shape            # seq len, padded batch rows, input hidden
    tm = tags_ref.shape[1]              # class-major (class, batch) rows per block
    tc = tm // Bp                       # classes handled by this block
    G4 = wh_ref.shape[1]                # 4 * Hp (gate-aligned)
    Hp = G4 // 4

    f32 = jnp.float32
    bf16 = jnp.bfloat16

    # ------------------------------------------------------------------
    # Phase 1: whole-sequence input projection (two large MXU matmuls).
    #   e_g[t, b] = emb[t, b] @ Wx                     (shared by every class)
    #   og [t, m] = onehot(tag[t, m]) @ (bio@Wx + b)   (bias folded for free)
    # gx is filled by `tc` large, sublane-aligned stores (class-major rows).
    # ------------------------------------------------------------------
    e_g3 = jnp.dot(emb_ref[...].reshape(N * Bp, H), wx_ref[...],
                   preferred_element_type=f32).reshape(N, Bp, G4)

    tg = tags_ref[...].reshape(N * tm, 1)
    onehot = (lax.broadcasted_iota(jnp.int32, (N * tm, 10), 1) == tg).astype(bf16)
    og3 = jnp.dot(onehot, bio_g_ref[...],
                  preferred_element_type=f32).reshape(N, tm, G4)

    for c in range(tc):                 # static python loop, tc is small
        lo = c * Bp
        gx_ref[:, lo:lo + Bp, :] = (og3[:, lo:lo + Bp, :] + e_g3).astype(gx_ref.dtype)

    # ------------------------------------------------------------------
    # Phase 2: serial LSTM recurrence.  Per step: one bf16 gx load, one
    # (tm,Hp)x(Hp,G4) MXU matmul, ONE tanh over the gate-aligned slab
    # (sigmoid(x) = 0.5*tanh(x/2)+0.5, the 0.5 pre-scale of i/f/o is folded
    # into the weights in the wrapper), VPU gate math, one full-width hall
    # store.  h/c ride in the fori_loop carry (vregs, not VMEM).
    # Gate slices are 128-lane aligned; padded lanes stay exactly zero.
    # ------------------------------------------------------------------
    unroll = True if N <= 32 else 8

    def step(t, carry):
        h, c = carry
        gates = gx_ref[t].astype(f32) + jnp.dot(h.astype(bf16), wh_ref[...],
                                                preferred_element_type=f32)
        t_all = jnp.tanh(gates)                       # single EUP pass over 4 gates
        i_g = 0.5 * t_all[:, 0 * Hp:1 * Hp] + 0.5
        f_g = 0.5 * t_all[:, 1 * Hp:2 * Hp] + 0.5
        g_g = t_all[:, 2 * Hp:3 * Hp]
        o_g = 0.5 * t_all[:, 3 * Hp:4 * Hp] + 0.5
        c = f_g * c + i_g * g_g
        h = o_g * jnp.tanh(c)
        hall_ref[t] = h
        return (h, c)

    zeros = jnp.zeros((tm, Hp), f32)
    lax.fori_loop(0, N, step, (zeros, zeros), unroll=unroll)

    # ------------------------------------------------------------------
    # Phase 3: masked additive-attention pooling.  Two large MXU matmuls over
    # all N*tm hidden states, one vectorized masked softmax (max/exp/sum over
    # time are plain reductions, no serial mask/max pass), and a single VPU
    # pass over time slabs for the weighted pooling.
    # ------------------------------------------------------------------
    hall = hall_ref[...].reshape(N * tm, Hp)
    u = jnp.tanh(jnp.dot(hall.astype(bf16), wa_ref[...],
                         preferred_element_type=f32) + ba_ref[...])
    s = jnp.dot(u.astype(bf16), va_ref[...],
                preferred_element_type=f32).reshape(N, tm, 1)
    s = jnp.where(mask_ref[...] > 0.0, s, -1e30)
    s_max = jnp.max(s, axis=0)                         # (tm, 1)
    p = jnp.exp(s - s_max)                             # (N, tm, 1)
    denom = jnp.sum(p, axis=0)                         # (tm, 1)
    p_ref[...] = p

    def pool(t, acc):
        return acc + p_ref[t] * hall_ref[t]

    acc = lax.fori_loop(0, N, pool, jnp.zeros((tm, Hp), f32), unroll=unroll)
    pooled = acc * pl.reciprocal(denom, approx=True)

    # Lane-dense logits store (classes padded to a multiple of 128 in wrapper).
    out_ref[...] = jnp.dot(pooled.astype(bf16), wl_ref[...],
                           preferred_element_type=f32) + bl_ref[...]


def _round_up(x, m):
    return (x + m - 1) // m * m


def _pick_tc(C, Bp, N, Hp, budget_bytes, max_tm=512):
    """Largest divisor of C whose per-block scratch fits the VMEM budget."""
    G4 = 4 * Hp

    def scratch_bytes(tc):
        tm = tc * Bp
        return N * tm * (G4 * 2 + Hp * 4 + 4)   # gx bf16 + hall f32 + probs f32

    best = 1
    for tc in range(1, C + 1):
        if C % tc:
            continue
        if tc * Bp <= max_tm and scratch_bytes(tc) <= budget_bytes:
            best = tc
    return best


def classifier_forward(embeddings, masks, tags, params, one_entity_n_tags=2,
                       matmul_dtype=jnp.bfloat16):
    """Pure-JAX glue around the fused Pallas kernel (mode='sup')."""
    B, N, H = embeddings.shape
    C = params['wl'].shape[1]
    Hp = _round_up(H, 128)
    G4 = 4 * Hp
    CPAD = _round_up(C, 128)
    Bp = _round_up(B, 8)                 # sublane-aligned batch rows
    Mp = C * Bp

    # --- pad batch, build per-class BIO tags (matches the PyTorch index math) ---
    tags_p = jnp.zeros((Bp, N), jnp.int32).at[:B].set(tags.astype(jnp.int32))
    masks_p = jnp.zeros((Bp, N), jnp.float32).at[:B].set(masks.astype(jnp.float32))
    emb_p = jnp.zeros((Bp, N, H), jnp.float32).at[:B].set(embeddings)

    new_tags = jnp.broadcast_to(tags_p[:, None, :], (Bp, C, N))
    m = (jnp.arange(C, dtype=jnp.int32) * one_entity_n_tags)[None, :, None]
    m_i = (m >= new_tags) | (new_tags > m + 2)
    new_tags = jnp.where(m_i, 0, new_tags - m).astype(jnp.int32)       # (Bp, C, N)

    # --- class-major, sequence-major streams (row m = class*Bp + batch) ---
    emb_t = jnp.transpose(emb_p, (1, 0, 2)).astype(matmul_dtype)        # (N, Bp, H)
    tags_t = jnp.transpose(new_tags, (2, 1, 0)).reshape(N, Mp, 1)       # (N, Mp, 1)
    mask_t = jnp.broadcast_to(jnp.transpose(masks_p)[:, None, :],
                              (N, C, Bp)).reshape(N, Mp, 1)             # (N, Mp, 1)

    # --- gate-aligned, half-scaled LSTM weights (one-tanh sigmoid trick) ---
    gate_scale = (0.5, 0.5, 1.0, 0.5)    # i, f, g, o

    def gate_pad(w, rows_pad):
        rows = w.shape[0]
        out = jnp.zeros((rows_pad, G4), jnp.float32)
        for k in range(4):
            out = out.at[:rows, k * Hp:k * Hp + H].set(
                w[:, k * H:(k + 1) * H] * gate_scale[k])
        return out

    wx_p = gate_pad(params['wx'], H)                                    # (H,  G4)
    wh_p = gate_pad(params['wh'], Hp)                                   # (Hp, G4)
    b_p = gate_pad(params['b_lstm'], 1)                                 # (1,  G4)
    bio_g = params['bio'] @ wx_p + b_p                                  # (10, G4)

    wa_p = jnp.zeros((Hp, Hp), jnp.float32).at[:H, :H].set(params['wa'])
    ba_p = jnp.zeros((1, Hp), jnp.float32).at[:, :H].set(params['ba'])
    va_p = jnp.zeros((Hp, 1), jnp.float32).at[:H, :].set(params['va'])
    wl_p = jnp.zeros((Hp, CPAD), jnp.float32).at[:H, :C].set(params['wl'])
    bl_p = jnp.zeros((1, CPAD), jnp.float32).at[:, :C].set(params['bl'])

    bio_g = bio_g.astype(matmul_dtype)
    wx_p = wx_p.astype(matmul_dtype)
    wh_p = wh_p.astype(matmul_dtype)
    wa_p = wa_p.astype(matmul_dtype)
    va_p = va_p.astype(matmul_dtype)
    wl_p = wl_p.astype(matmul_dtype)

    # --- tiling: grid over the class axis, tm = tc * Bp rows per block ---
    try:
        vmem_cap = int(pltpu.get_tpu_info().vmem_capacity_bytes)
    except Exception:
        vmem_cap = 64 << 20
    vmem_limit = max(32 << 20, min(96 << 20, vmem_cap - (16 << 20)))
    tc = _pick_tc(C, Bp, N, Hp, budget_bytes=vmem_limit // 2)
    tm = tc * Bp
    grid = (C // tc,)

    def _full(a):
        nd = a.ndim
        return pl.BlockSpec(tuple(a.shape), lambda i, _nd=nd: (0,) * _nd)

    out = pl.pallas_call(
        _classifier_kernel,
        out_shape=jax.ShapeDtypeStruct((Mp, CPAD), jnp.float32),
        grid=grid,
        in_specs=[
            pl.BlockSpec((N, Bp, H), lambda i: (0, 0, 0)),   # embeddings (shared, un-replicated)
            pl.BlockSpec((N, tm, 1), lambda i: (0, i, 0)),   # per-class BIO tags
            pl.BlockSpec((N, tm, 1), lambda i: (0, i, 0)),   # validity mask
            _full(bio_g), _full(wx_p), _full(wh_p),
            _full(wa_p), _full(ba_p), _full(va_p), _full(wl_p), _full(bl_p),
        ],
        out_specs=pl.BlockSpec((tm, CPAD), lambda i: (i, 0)),
        scratch_shapes=[
            pltpu.VMEM((N, tm, G4), jnp.bfloat16),   # gx: input-side gate pre-activations
            pltpu.VMEM((N, tm, Hp), jnp.float32),    # hall: all hidden states of this block
            pltpu.VMEM((N, tm, 1), jnp.float32),     # softmax probabilities
        ],
        compiler_params=pltpu.CompilerParams(
            dimension_semantics=("parallel",),
            vmem_limit_bytes=vmem_limit,
        ),
    )(emb_t, tags_t, mask_t, bio_g, wx_p, wh_p, wa_p, ba_p, va_p, wl_p, bl_p)

    # (Mp, CPAD) class-major -> (B, C, C)
    return jnp.transpose(out.reshape(C, Bp, CPAD)[:, :B, :C], (1, 0, 2))


def _reference_forward(embeddings, masks, tags, params, one_entity_n_tags=2):
    """Pure-JAX (f32) reference of the same synthetic architecture."""
    B, N, H = embeddings.shape
    C = params['wl'].shape[1]
    M = B * C

    new_tags = jnp.broadcast_to(tags[:, None, :], (B, C, N))
    m = (jnp.arange(C, dtype=tags.dtype) * one_entity_n_tags)[None, :, None]
    m_i = (m >= new_tags) | (new_tags > m + 2)
    new_tags = jnp.where(m_i, 0, new_tags - m).astype(jnp.int32)

    phrase = params['bio'][new_tags]                                   # (B, C, N, H)
    x = (embeddings[:, None, :, :] + phrase).reshape(M, N, H)
    mask = jnp.broadcast_to(masks[:, None, :], (B, C, N)).reshape(M, N)

    def step(carry, x_t):
        h, c = carry
        g = x_t @ params['wx'] + h @ params['wh'] + params['b_lstm']
        i = jax.nn.sigmoid(g[:, 0 * H:1 * H])
        f = jax.nn.sigmoid(g[:, 1 * H:2 * H])
        gg = jnp.tanh(g[:, 2 * H:3 * H])
        o = jax.nn.sigmoid(g[:, 3 * H:4 * H])
        c = f * c + i * gg
        h = o * jnp.tanh(c)
        return (h, c), h

    init = (jnp.zeros((M, H), jnp.float32), jnp.zeros((M, H), jnp.float32))
    _, hs = lax.scan(step, init, jnp.transpose(x, (1, 0, 2)))
    hs = jnp.transpose(hs, (1, 0, 2))                                  # (M, N, H)

    u = jnp.tanh(hs @ params['wa'] + params['ba'])
    s = (u @ params['va'])[..., 0]                                     # (M, N)
    s = jnp.where(mask > 0.0, s, -1e30)
    alpha = jax.nn.softmax(s, axis=-1)
    pooled = jnp.einsum('mn,mnh->mh', alpha, hs)
    logits = pooled @ params['wl'] + params['bl']
    return logits.reshape(B, C, C)


def init_params(key, H, C):
    ks = jax.random.split(key, 6)
    s = 0.1
    return dict(
        bio=jax.random.normal(ks[0], (10, H), jnp.float32) * s,        # nn.Embedding(10, H)
        wx=jax.random.normal(ks[1], (H, 4 * H), jnp.float32) * s,      # LSTM input weights
        wh=jax.random.normal(ks[2], (H, 4 * H), jnp.float32) * s,      # LSTM recurrent weights
        b_lstm=jnp.zeros((1, 4 * H), jnp.float32),
        wa=jax.random.normal(ks[3], (H, H), jnp.float32) * s,          # attention projection
        ba=jnp.zeros((1, H), jnp.float32),
        va=jax.random.normal(ks[4], (H, 1), jnp.float32) * s,          # attention score vector
        wl=jax.random.normal(ks[5], (H, C), jnp.float32) * s,          # logits_layer Linear(H, C)
        bl=jnp.zeros((1, C), jnp.float32),
    )


if __name__ == "__main__":
    B, N, H = 2, 8, 32                 # batch, seq, hidden_dim
    one_entity_n_tags = 2
    C = 4                              # number of entity classes
    T = one_entity_n_tags * C + 1      # tag_vocab_size = 9, (T-1)//2 = C

    key = jax.random.PRNGKey(0)
    k_emb, k_tag, k_par = jax.random.split(key, 3)

    embeddings = jax.random.normal(k_emb, (B, N, H), jnp.float32)
    # valid-length masks: sequence 0 has 8 tokens, sequence 1 has 6.
    lengths = jnp.array([[N], [N - 2]], dtype=jnp.int32)
    masks = (jnp.arange(N)[None, :] < lengths).astype(jnp.float32)     # (B, N)
    tags = jax.random.randint(k_tag, (B, N), 0, T).astype(jnp.int32)
    tags = tags * masks.astype(jnp.int32)                              # pad positions -> O tag

    params = init_params(k_par, H, C)

    logits = classifier_forward(embeddings, masks, tags, params,
                                one_entity_n_tags=one_entity_n_tags)
    jax.block_until_ready(logits)
    assert logits.shape == (B, C, C)

    ref = _reference_forward(embeddings, masks, tags, params,
                             one_entity_n_tags=one_entity_n_tags)
    err = float(jnp.max(jnp.abs(logits - ref)))
    assert err < 1e-1, f"kernel/reference mismatch: max abs err {err}"
    print("KERNEL_OK")
</pallas_src>

<mosaic_0001>
module attributes {stable_mosaic.version = 11 : i64} {
  func.func @_classifier_kernel(%arg0: i32, %arg1: memref<8x8x32xbf16, #tpu.memory_space<vmem>>, %arg2: memref<8x32x1xi32, #tpu.memory_space<vmem>>, %arg3: memref<8x32x1xf32, #tpu.memory_space<vmem>>, %arg4: memref<10x512xbf16, #tpu.memory_space<vmem>>, %arg5: memref<32x512xbf16, #tpu.memory_space<vmem>>, %arg6: memref<128x512xbf16, #tpu.memory_space<vmem>>, %arg7: memref<128x128xbf16, #tpu.memory_space<vmem>>, %arg8: memref<1x128xf32, #tpu.memory_space<vmem>>, %arg9: memref<128x1xbf16, #tpu.memory_space<vmem>>, %arg10: memref<128x128xbf16, #tpu.memory_space<vmem>>, %arg11: memref<1x128xf32, #tpu.memory_space<vmem>>, %arg12: memref<32x128xf32, #tpu.memory_space<vmem>>, %arg13: memref<8x32x512xbf16, #tpu.memory_space<vmem>>, %arg14: memref<8x32x128xf32, #tpu.memory_space<vmem>>, %arg15: memref<8x32x1xf32, #tpu.memory_space<vmem>>) attributes {dimension_semantics = [#tpu.dimension_semantics<parallel>], iteration_bounds = array<i64: 1>, scalar_prefetch = 0 : i64, scratch_operands = 3 : i64, tpu.core_type = #tpu.core_type<tc>, window_params = [{pipeline_mode = #tpu.pipeline_mode<synchronous>, transform_indices = @transform_0, window_bounds = array<i64: 8, 8, 32>}, {transform_indices = @transform_1, window_bounds = array<i64: 8, 32, 1>}, {transform_indices = @transform_2, window_bounds = array<i64: 8, 32, 1>}, {pipeline_mode = #tpu.pipeline_mode<synchronous>, transform_indices = @transform_3, window_bounds = array<i64: 10, 512>}, {pipeline_mode = #tpu.pipeline_mode<synchronous>, transform_indices = @transform_4, window_bounds = array<i64: 32, 512>}, {pipeline_mode = #tpu.pipeline_mode<synchronous>, transform_indices = @transform_5, window_bounds = array<i64: 128, 512>}, {pipeline_mode = #tpu.pipeline_mode<synchronous>, transform_indices = @transform_6, window_bounds = array<i64: 128, 128>}, {pipeline_mode = #tpu.pipeline_mode<synchronous>, transform_indices = @transform_7, window_bounds = array<i64: 1, 128>}, {pipeline_mode = #tpu.pipeline_mode<synchronous>, transform_indices = @transform_8, window_bounds = array<i64: 128, 1>}, {pipeline_mode = #tpu.pipeline_mode<synchronous>, transform_indices = @transform_9, window_bounds = array<i64: 128, 128>}, {pipeline_mode = #tpu.pipeline_mode<synchronous>, transform_indices = @transform_10, window_bounds = array<i64: 1, 128>}, {transform_indices = @transform_11, window_bounds = array<i64: 32, 128>}]} {
    %c0 = arith.constant 0 : index
    %c0_0 = arith.constant 0 : index
    %c0_1 = arith.constant 0 : index
    %0 = vector.load %arg1[%c0, %c0_0, %c0_1] : memref<8x8x32xbf16, #tpu.memory_space<vmem>>, vector<8x8x32xbf16>
    %1 = vector.shape_cast %0 : vector<8x8x32xbf16> to vector<64x32xbf16>
    %c0_2 = arith.constant 0 : index
    %c0_3 = arith.constant 0 : index
    %2 = vector.load %arg5[%c0_2, %c0_3] : memref<32x512xbf16, #tpu.memory_space<vmem>>, vector<32x512xbf16>
    %cst = arith.constant dense<0.000000e+00> : vector<64x512xf32>
    %3 = tpu.matmul %1, %2, %cst {dimension_numbers = #tpu.dot_dimension_numbers<[1], [0], [0], [1], [0, 0, 1, 1], [], []>} : vector<64x32xbf16>, vector<32x512xbf16>, vector<64x512xf32> -> vector<64x512xf32>
    %4 = vector.shape_cast %3 : vector<64x512xf32> to vector<8x8x512xf32>
    %c0_4 = arith.constant 0 : index
    %c0_5 = arith.constant 0 : index
    %c0_6 = arith.constant 0 : index
    %5 = vector.load %arg2[%c0_4, %c0_5, %c0_6] : memref<8x32x1xi32, #tpu.memory_space<vmem>>, vector<8x32x1xi32>
    %6 = vector.shape_cast %5 : vector<8x32x1xi32> to vector<256x1xi32>
    %7 = tpu.iota {dimensions = array<i32: 1>} : vector<256x10xi32>
    %8 = vector.broadcast %6 : vector<256x1xi32> to vector<256x10xi32>
    %9 = arith.cmpi eq, %7, %8 : vector<256x10xi32>
    %10 = arith.extui %9 : vector<256x10xi1> to vector<256x10xi32>
    %11 = arith.sitofp %10 : vector<256x10xi32> to vector<256x10xf32>
    %12 = arith.truncf %11 : vector<256x10xf32> to vector<256x10xbf16>
    %c0_7 = arith.constant 0 : index
    %c0_8 = arith.constant 0 : index
    %13 = vector.load %arg4[%c0_7, %c0_8] : memref<10x512xbf16, #tpu.memory_space<vmem>>, vector<10x512xbf16>
    %cst_9 = arith.constant dense<0.000000e+00> : vector<256x512xf32>
    %14 = tpu.matmul %12, %13, %cst_9 {dimension_numbers = #tpu.dot_dimension_numbers<[1], [0], [0], [1], [0, 0, 1, 1], [], []>} : vector<256x10xbf16>, vector<10x512xbf16>, vector<256x512xf32> -> vector<256x512xf32>
    %15 = vector.shape_cast %14 : vector<256x512xf32> to vector<8x32x512xf32>
    %16 = vector.extract_strided_slice %15 {offsets = [0, 0, 0], sizes = [8, 8, 512], strides = [1, 1, 1]} : vector<8x32x512xf32> to vector<8x8x512xf32>
    %17 = arith.addf %16, %4 : vector<8x8x512xf32>
    %18 = arith.truncf %17 : vector<8x8x512xf32> to vector<8x8x512xbf16>
    %c0_10 = arith.constant 0 : index
    %c0_11 = arith.constant 0 : index
    %c0_12 = arith.constant 0 : index
    %19 = vector.load %arg13[%c0_10, %c0_11, %c0_12] : memref<8x32x512xbf16, #tpu.memory_space<vmem>>, vector<8x8x512xbf16>
    tpu.vector_store %arg13[%c0_10, %c0_11, %c0_12], %18 {strides = array<i32>} : memref<8x32x512xbf16, #tpu.memory_space<vmem>>, vector<8x8x512xbf16>,
    %20 = vector.extract_strided_slice %15 {offsets = [0, 8, 0], sizes = [8, 8, 512], strides = [1, 1, 1]} : vector<8x32x512xf32> to vector<8x8x512xf32>
    %21 = arith.addf %20, %4 : vector<8x8x512xf32>
    %22 = arith.truncf %21 : vector<8x8x512xf32> to vector<8x8x512xbf16>
    %c0_13 = arith.constant 0 : index
    %c8 = arith.constant 8 : index
    %c0_14 = arith.constant 0 : index
    %23 = vector.load %arg13[%c0_13, %c8, %c0_14] : memref<8x32x512xbf16, #tpu.memory_space<vmem>>, vector<8x8x512xbf16>
    tpu.vector_store %arg13[%c0_13, %c8, %c0_14], %22 {strides = array<i32>} : memref<8x32x512xbf16, #tpu.memory_space<vmem>>, vector<8x8x512xbf16>,
    %24 = vector.extract_strided_slice %15 {offsets = [0, 16, 0], sizes = [8, 8, 512], strides = [1, 1, 1]} : vector<8x32x512xf32> to vector<8x8x512xf32>
    %25 = arith.addf %24, %4 : vector<8x8x512xf32>
    %26 = arith.truncf %25 : vector<8x8x512xf32> to vector<8x8x512xbf16>
    %c0_15 = arith.constant 0 : index
    %c16 = arith.constant 16 : index
    %c0_16 = arith.constant 0 : index
    %27 = vector.load %arg13[%c0_15, %c16, %c0_16] : memref<8x32x512xbf16, #tpu.memory_space<vmem>>, vector<8x8x512xbf16>
    tpu.vector_store %arg13[%c0_15, %c16, %c0_16], %26 {strides = array<i32>} : memref<8x32x512xbf16, #tpu.memory_space<vmem>>, vector<8x8x512xbf16>,
    %28 = vector.extract_strided_slice %15 {offsets = [0, 24, 0], sizes = [8, 8, 512], strides = [1, 1, 1]} : vector<8x32x512xf32> to vector<8x8x512xf32>
    %29 = arith.addf %28, %4 : vector<8x8x512xf32>
    %30 = arith.truncf %29 : vector<8x8x512xf32> to vector<8x8x512xbf16>
    %c0_17 = arith.constant 0 : index
    %c24 = arith.constant 24 : index
    %c0_18 = arith.constant 0 : index
    %31 = vector.load %arg13[%c0_17, %c24, %c0_18] : memref<8x32x512xbf16, #tpu.memory_space<vmem>>, vector<8x8x512xbf16>
    tpu.vector_store %arg13[%c0_17, %c24, %c0_18], %30 {strides = array<i32>} : memref<8x32x512xbf16, #tpu.memory_space<vmem>>, vector<8x8x512xbf16>,
    %cst_19 = arith.constant 0.000000e+00 : f32
    %32 = vector.broadcast %cst_19 : f32 to vector<32x128xf32>
    %c0_i32 = arith.constant 0 : i32
    %33 = arith.index_cast %c0_i32 : i32 to index
    %c0_20 = arith.constant 0 : index
    %c0_21 = arith.constant 0 : index
    %34 = vector.load %arg13[%33, %c0_20, %c0_21] : memref<8x32x512xbf16, #tpu.memory_space<vmem>>, vector<1x32x512xbf16>
    %35 = vector.shape_cast %34 : vector<1x32x512xbf16> to vector<32x512xbf16>
    %36 = arith.extf %35 : vector<32x512xbf16> to vector<32x512xf32>
    %37 = arith.truncf %32 : vector<32x128xf32> to vector<32x128xbf16>
    %c0_22 = arith.constant 0 : index
    %c0_23 = arith.constant 0 : index
    %38 = vector.load %arg6[%c0_22, %c0_23] : memref<128x512xbf16, #tpu.memory_space<vmem>>, vector<128x512xbf16>
    %cst_24 = arith.constant dense<0.000000e+00> : vector<32x512xf32>
    %39 = tpu.matmul %37, %38, %cst_24 {dimension_numbers = #tpu.dot_dimension_numbers<[1], [0], [0], [1], [0, 0, 1, 1], [], []>} : vector<32x128xbf16>, vector<128x512xbf16>, vector<32x512xf32> -> vector<32x512xf32>
    %40 = arith.addf %36, %39 : vector<32x512xf32>
    %41 = math.tanh %40 : vector<32x512xf32>
    %42 = vector.extract_strided_slice %41 {offsets = [0, 0], sizes = [32, 128], strides = [1, 1]} : vector<32x512xf32> to vector<32x128xf32>
    %cst_25 = arith.constant 5.000000e-01 : f32
    %43 = vector.broadcast %cst_25 : f32 to vector<32x128xf32>
    %44 = arith.mulf %43, %42 : vector<32x128xf32>
    %cst_26 = arith.constant 5.000000e-01 : f32
    %45 = vector.broadcast %cst_26 : f32 to vector<32x128xf32>
    %46 = arith.addf %44, %45 : vector<32x128xf32>
    %47 = vector.extract_strided_slice %41 {offsets = [0, 128], sizes = [32, 128], strides = [1, 1]} : vector<32x512xf32> to vector<32x128xf32>
    %cst_27 = arith.constant 5.000000e-01 : f32
    %48 = vector.broadcast %cst_27 : f32 to vector<32x128xf32>
    %49 = arith.mulf %48, %47 : vector<32x128xf32>
    %cst_28 = arith.constant 5.000000e-01 : f32
    %50 = vector.broadcast %cst_28 : f32 to vector<32x128xf32>
    %51 = arith.addf %49, %50 : vector<32x128xf32>
    %52 = vector.extract_strided_slice %41 {offsets = [0, 256], sizes = [32, 128], strides = [1, 1]} : vector<32x512xf32> to vector<32x128xf32>
    %53 = vector.extract_strided_slice %41 {offsets = [0, 384], sizes = [32, 128], strides = [1, 1]} : vector<32x512xf32> to vector<32x128xf32>
    %cst_29 = arith.constant 5.000000e-01 : f32
    %54 = vector.broadcast %cst_29 : f32 to vector<32x128xf32>
    %55 = arith.mulf %54, %53 : vector<32x128xf32>
    %cst_30 = arith.constant 5.000000e-01 : f32
    %56 = vector.broadcast %cst_30 : f32 to vector<32x128xf32>
    %57 = arith.addf %55, %56 : vector<32x128xf32>
    %58 = arith.mulf %51, %32 : vector<32x128xf32>
    %59 = arith.mulf %46, %52 : vector<32x128xf32>
    %60 = arith.addf %58, %59 : vector<32x128xf32>
    %61 = math.tanh %60 : vector<32x128xf32>
    %62 = arith.mulf %57, %61 : vector<32x128xf32>
    %63 = arith.index_cast %c0_i32 : i32 to index
    %c0_31 = arith.constant 0 : index
    %c0_32 = arith.constant 0 : index
    %64 = vector.load %arg14[%63, %c0_31, %c0_32] : memref<8x32x128xf32, #tpu.memory_space<vmem>>, vector<1x32x128xf32>
    %65 = vector.shape_cast %64 : vector<1x32x128xf32> to vector<32x128xf32>
    %66 = vector.shape_cast %62 : vector<32x128xf32> to vector<1x32x128xf32>
    tpu.vector_store %arg14[%63, %c0_31, %c0_32], %66 {strides = array<i32>} : memref<8x32x128xf32, #tpu.memory_space<vmem>>, vector<1x32x128xf32>,
    %c1_i32 = arith.constant 1 : i32
    %67 = arith.index_cast %c1_i32 : i32 to index
    %c0_33 = arith.constant 0 : index
    %c0_34 = arith.constant 0 : index
    %68 = vector.load %arg13[%67, %c0_33, %c0_34] : memref<8x32x512xbf16, #tpu.memory_space<vmem>>, vector<1x32x512xbf16>
    %69 = vector.shape_cast %68 : vector<1x32x512xbf16> to vector<32x512xbf16>
    %70 = arith.extf %69 : vector<32x512xbf16> to vector<32x512xf32>
    %71 = arith.truncf %62 : vector<32x128xf32> to vector<32x128xbf16>
    %c0_35 = arith.constant 0 : index
    %c0_36 = arith.constant 0 : index
    %72 = vector.load %arg6[%c0_35, %c0_36] : memref<128x512xbf16, #tpu.memory_space<vmem>>, vector<128x512xbf16>
    %cst_37 = arith.constant dense<0.000000e+00> : vector<32x512xf32>
    %73 = tpu.matmul %71, %72, %cst_37 {dimension_numbers = #tpu.dot_dimension_numbers<[1], [0], [0], [1], [0, 0, 1, 1], [], []>} : vector<32x128xbf16>, vector<128x512xbf16>, vector<32x512xf32> -> vector<32x512xf32>
    %74 = arith.addf %70, %73 : vector<32x512xf32>
    %75 = math.tanh %74 : vector<32x512xf32>
    %76 = vector.extract_strided_slice %75 {offsets = [0, 0], sizes = [32, 128], strides = [1, 1]} : vector<32x512xf32> to vector<32x128xf32>
    %cst_38 = arith.constant 5.000000e-01 : f32
    %77 = vector.broadcast %cst_38 : f32 to vector<32x128xf32>
    %78 = arith.mulf %77, %76 : vector<32x128xf32>
    %cst_39 = arith.constant 5.000000e-01 : f32
    %79 = vector.broadcast %cst_39 : f32 to vector<32x128xf32>
    %80 = arith.addf %78, %79 : vector<32x128xf32>
    %81 = vector.extract_strided_slice %75 {offsets = [0, 128], sizes = [32, 128], strides = [1, 1]} : vector<32x512xf32> to vector<32x128xf32>
    %cst_40 = arith.constant 5.000000e-01 : f32
    %82 = vector.broadcast %cst_40 : f32 to vector<32x128xf32>
    %83 = arith.mulf %82, %81 : vector<32x128xf32>
    %cst_41 = arith.constant 5.000000e-01 : f32
    %84 = vector.broadcast %cst_41 : f32 to vector<32x128xf32>
    %85 = arith.addf %83, %84 : vector<32x128xf32>
    %86 = vector.extract_strided_slice %75 {offsets = [0, 256], sizes = [32, 128], strides = [1, 1]} : vector<32x512xf32> to vector<32x128xf32>
    %87 = vector.extract_strided_slice %75 {offsets = [0, 384], sizes = [32, 128], strides = [1, 1]} : vector<32x512xf32> to vector<32x128xf32>
    %cst_42 = arith.constant 5.000000e-01 : f32
    %88 = vector.broadcast %cst_42 : f32 to vector<32x128xf32>
    %89 = arith.mulf %88, %87 : vector<32x128xf32>
    %cst_43 = arith.constant 5.000000e-01 : f32
    %90 = vector.broadcast %cst_43 : f32 to vector<32x128xf32>
    %91 = arith.addf %89, %90 : vector<32x128xf32>
    %92 = arith.mulf %85, %60 : vector<32x128xf32>
    %93 = arith.mulf %80, %86 : vector<32x128xf32>
    %94 = arith.addf %92, %93 : vector<32x128xf32>
    %95 = math.tanh %94 : vector<32x128xf32>
    %96 = arith.mulf %91, %95 : vector<32x128xf32>
    %97 = arith.index_cast %c1_i32 : i32 to index
    %c0_44 = arith.constant 0 : index
    %c0_45 = arith.constant 0 : index
    %98 = vector.load %arg14[%97, %c0_44, %c0_45] : memref<8x32x128xf32, #tpu.memory_space<vmem>>, vector<1x32x128xf32>
    %99 = vector.shape_cast %98 : vector<1x32x128xf32> to vector<32x128xf32>
    %100 = vector.shape_cast %96 : vector<32x128xf32> to vector<1x32x128xf32>
    tpu.vector_store %arg14[%97, %c0_44, %c0_45], %100 {strides = array<i32>} : memref<8x32x128xf32, #tpu.memory_space<vmem>>, vector<1x32x128xf32>,
    %c2_i32 = arith.constant 2 : i32
    %101 = arith.index_cast %c2_i32 : i32 to index
    %c0_46 = arith.constant 0 : index
    %c0_47 = arith.constant 0 : index
    %102 = vector.load %arg13[%101, %c0_46, %c0_47] : memref<8x32x512xbf16, #tpu.memory_space<vmem>>, vector<1x32x512xbf16>
    %103 = vector.shape_cast %102 : vector<1x32x512xbf16> to vector<32x512xbf16>
    %104 = arith.extf %103 : vector<32x512xbf16> to vector<32x512xf32>
    %105 = arith.truncf %96 : vector<32x128xf32> to vector<32x128xbf16>
    %c0_48 = arith.constant 0 : index
    %c0_49 = arith.constant 0 : index
    %106 = vector.load %arg6[%c0_48, %c0_49] : memref<128x512xbf16, #tpu.memory_space<vmem>>, vector<128x512xbf16>
    %cst_50 = arith.constant dense<0.000000e+00> : vector<32x512xf32>
    %107 = tpu.matmul %105, %106, %cst_50 {dimension_numbers = #tpu.dot_dimension_numbers<[1], [0], [0], [1], [0, 0, 1, 1], [], []>} : vector<32x128xbf16>, vector<128x512xbf16>, vector<32x512xf32> -> vector<32x512xf32>
    %108 = arith.addf %104, %107 : vector<32x512xf32>
    %109 = math.tanh %108 : vector<32x512xf32>
    %110 = vector.extract_strided_slice %109 {offsets = [0, 0], sizes = [32, 128], strides = [1, 1]} : vector<32x512xf32> to vector<32x128xf32>
    %cst_51 = arith.constant 5.000000e-01 : f32
    %111 = vector.broadcast %cst_51 : f32 to vector<32x128xf32>
    %112 = arith.mulf %111, %110 : vector<32x128xf32>
    %cst_52 = arith.constant 5.000000e-01 : f32
    %113 = vector.broadcast %cst_52 : f32 to vector<32x128xf32>
    %114 = arith.addf %112, %113 : vector<32x128xf32>
    %115 = vector.extract_strided_slice %109 {offsets = [0, 128], sizes = [32, 128], strides = [1, 1]} : vector<32x512xf32> to vector<32x128xf32>
    %cst_53 = arith.constant 5.000000e-01 : f32
    %116 = vector.broadcast %cst_53 : f32 to vector<32x128xf32>
    %117 = arith.mulf %116, %115 : vector<32x128xf32>
    %cst_54 = arith.constant 5.000000e-01 : f32
    %118 = vector.broadcast %cst_54 : f32 to vector<32x128xf32>
    %119 = arith.addf %117, %118 : vector<32x128xf32>
    %120 = vector.extract_strided_slice %109 {offsets = [0, 256], sizes = [32, 128], strides = [1, 1]} : vector<32x512xf32> to vector<32x128xf32>
    %121 = vector.extract_strided_slice %109 {offsets = [0, 384], sizes = [32, 128], strides = [1, 1]} : vector<32x512xf32> to vector<32x128xf32>
    %cst_55 = arith.constant 5.000000e-01 : f32
    %122 = vector.broadcast %cst_55 : f32 to vector<32x128xf32>
    %123 = arith.mulf %122, %121 : vector<32x128xf32>
    %cst_56 = arith.constant 5.000000e-01 : f32
    %124 = vector.broadcast %cst_56 : f32 to vector<32x128xf32>
    %125 = arith.addf %123, %124 : vector<32x128xf32>
    %126 = arith.mulf %119, %94 : vector<32x128xf32>
    %127 = arith.mulf %114, %120 : vector<32x128xf32>
    %128 = arith.addf %126, %127 : vector<32x128xf32>
    %129 = math.tanh %128 : vector<32x128xf32>
    %130 = arith.mulf %125, %129 : vector<32x128xf32>
    %131 = arith.index_cast %c2_i32 : i32 to index
    %c0_57 = arith.constant 0 : index
    %c0_58 = arith.constant 0 : index
    %132 = vector.load %arg14[%131, %c0_57, %c0_58] : memref<8x32x128xf32, #tpu.memory_space<vmem>>, vector<1x32x128xf32>
    %133 = vector.shape_cast %132 : vector<1x32x128xf32> to vector<32x128xf32>
    %134 = vector.shape_cast %130 : vector<32x128xf32> to vector<1x32x128xf32>
    tpu.vector_store %arg14[%131, %c0_57, %c0_58], %134 {strides = array<i32>} : memref<8x32x128xf32, #tpu.memory_space<vmem>>, vector<1x32x128xf32>,
    %c3_i32 = arith.constant 3 : i32
    %135 = arith.index_cast %c3_i32 : i32 to index
    %c0_59 = arith.constant 0 : index
    %c0_60 = arith.constant 0 : index
    %136 = vector.load %arg13[%135, %c0_59, %c0_60] : memref<8x32x512xbf16, #tpu.memory_space<vmem>>, vector<1x32x512xbf16>
    %137 = vector.shape_cast %136 : vector<1x32x512xbf16> to vector<32x512xbf16>
    %138 = arith.extf %137 : vector<32x512xbf16> to vector<32x512xf32>
    %139 = arith.truncf %130 : vector<32x128xf32> to vector<32x128xbf16>
    %c0_61 = arith.constant 0 : index
    %c0_62 = arith.constant 0 : index
    %140 = vector.load %arg6[%c0_61, %c0_62] : memref<128x512xbf16, #tpu.memory_space<vmem>>, vector<128x512xbf16>
    %cst_63 = arith.constant dense<0.000000e+00> : vector<32x512xf32>
    %141 = tpu.matmul %139, %140, %cst_63 {dimension_numbers = #tpu.dot_dimension_numbers<[1], [0], [0], [1], [0, 0, 1, 1], [], []>} : vector<32x128xbf16>, vector<128x512xbf16>, vector<32x512xf32> -> vector<32x512xf32>
    %142 = arith.addf %138, %141 : vector<32x512xf32>
    %143 = math.tanh %142 : vector<32x512xf32>
    %144 = vector.extract_strided_slice %143 {offsets = [0, 0], sizes = [32, 128], strides = [1, 1]} : vector<32x512xf32> to vector<32x128xf32>
    %cst_64 = arith.constant 5.000000e-01 : f32
    %145 = vector.broadcast %cst_64 : f32 to vector<32x128xf32>
    %146 = arith.mulf %145, %144 : vector<32x128xf32>
    %cst_65 = arith.constant 5.000000e-01 : f32
    %147 = vector.broadcast %cst_65 : f32 to vector<32x128xf32>
    %148 = arith.addf %146, %147 : vector<32x128xf32>
    %149 = vector.extract_strided_slice %143 {offsets = [0, 128], sizes = [32, 128], strides = [1, 1]} : vector<32x512xf32> to vector<32x128xf32>
    %cst_66 = arith.constant 5.000000e-01 : f32
    %150 = vector.broadcast %cst_66 : f32 to vector<32x128xf32>
    %151 = arith.mulf %150, %149 : vector<32x128xf32>
    %cst_67 = arith.constant 5.000000e-01 : f32
    %152 = vector.broadcast %cst_67 : f32 to vector<32x128xf32>
    %153 = arith.addf %151, %152 : vector<32x128xf32>
    %154 = vector.extract_strided_slice %143 {offsets = [0, 256], sizes = [32, 128], strides = [1, 1]} : vector<32x512xf32> to vector<32x128xf32>
    %155 = vector.extract_strided_slice %143 {offsets = [0, 384], sizes = [32, 128], strides = [1, 1]} : vector<32x512xf32> to vector<32x128xf32>
    %cst_68 = arith.constant 5.000000e-01 : f32
    %156 = vector.broadcast %cst_68 : f32 to vector<32x128xf32>
    %157 = arith.mulf %156, %155 : vector<32x128xf32>
    %cst_69 = arith.constant 5.000000e-01 : f32
    %158 = vector.broadcast %cst_69 : f32 to vector<32x128xf32>
    %159 = arith.addf %157, %158 : vector<32x128xf32>
    %160 = arith.mulf %153, %128 : vector<32x128xf32>
    %161 = arith.mulf %148, %154 : vector<32x128xf32>
    %162 = arith.addf %160, %161 : vector<32x128xf32>
    %163 = math.tanh %162 : vector<32x128xf32>
    %164 = arith.mulf %159, %163 : vector<32x128xf32>
    %165 = arith.index_cast %c3_i32 : i32 to index
    %c0_70 = arith.constant 0 : index
    %c0_71 = arith.constant 0 : index
    %166 = vector.load %arg14[%165, %c0_70, %c0_71] : memref<8x32x128xf32, #tpu.memory_space<vmem>>, vector<1x32x128xf32>
    %167 = vector.shape_cast %166 : vector<1x32x128xf32> to vector<32x128xf32>
    %168 = vector.shape_cast %164 : vector<32x128xf32> to vector<1x32x128xf32>
    tpu.vector_store %arg14[%165, %c0_70, %c0_71], %168 {strides = array<i32>} : memref<8x32x128xf32, #tpu.memory_space<vmem>>, vector<1x32x128xf32>,
    %c4_i32 = arith.constant 4 : i32
    %169 = arith.index_cast %c4_i32 : i32 to index
    %c0_72 = arith.constant 0 : index
    %c0_73 = arith.constant 0 : index
    %170 = vector.load %arg13[%169, %c0_72, %c0_73] : memref<8x32x512xbf16, #tpu.memory_space<vmem>>, vector<1x32x512xbf16>
    %171 = vector.shape_cast %170 : vector<1x32x512xbf16> to vector<32x512xbf16>
    %172 = arith.extf %171 : vector<32x512xbf16> to vector<32x512xf32>
    %173 = arith.truncf %164 : vector<32x128xf32> to vector<32x128xbf16>
    %c0_74 = arith.constant 0 : index
    %c0_75 = arith.constant 0 : index
    %174 = vector.load %arg6[%c0_74, %c0_75] : memref<128x512xbf16, #tpu.memory_space<vmem>>, vector<128x512xbf16>
    %cst_76 = arith.constant dense<0.000000e+00> : vector<32x512xf32>
    %175 = tpu.matmul %173, %174, %cst_76 {dimension_numbers = #tpu.dot_dimension_numbers<[1], [0], [0], [1], [0, 0, 1, 1], [], []>} : vector<32x128xbf16>, vector<128x512xbf16>, vector<32x512xf32> -> vector<32x512xf32>
    %176 = arith.addf %172, %175 : vector<32x512xf32>
    %177 = math.tanh %176 : vector<32x512xf32>
    %178 = vector.extract_strided_slice %177 {offsets = [0, 0], sizes = [32, 128], strides = [1, 1]} : vector<32x512xf32> to vector<32x128xf32>
    %cst_77 = arith.constant 5.000000e-01 : f32
    %179 = vector.broadcast %cst_77 : f32 to vector<32x128xf32>
    %180 = arith.mulf %179, %178 : vector<32x128xf32>
    %cst_78 = arith.constant 5.000000e-01 : f32
    %181 = vector.broadcast %cst_78 : f32 to vector<32x128xf32>
    %182 = arith.addf %180, %181 : vector<32x128xf32>
    %183 = vector.extract_strided_slice %177 {offsets = [0, 128], sizes = [32, 128], strides = [1, 1]} : vector<32x512xf32> to vector<32x128xf32>
    %cst_79 = arith.constant 5.000000e-01 : f32
    %184 = vector.broadcast %cst_79 : f32 to vector<32x128xf32>
    %185 = arith.mulf %184, %183 : vector<32x128xf32>
    %cst_80 = arith.constant 5.000000e-01 : f32
    %186 = vector.broadcast %cst_80 : f32 to vector<32x128xf32>
    %187 = arith.addf %185, %186 : vector<32x128xf32>
    %188 = vector.extract_strided_slice %177 {offsets = [0, 256], sizes = [32, 128], strides = [1, 1]} : vector<32x512xf32> to vector<32x128xf32>
    %189 = vector.extract_strided_slice %177 {offsets = [0, 384], sizes = [32, 128], strides = [1, 1]} : vector<32x512xf32> to vector<32x128xf32>
    %cst_81 = arith.constant 5.000000e-01 : f32
    %190 = vector.broadcast %cst_81 : f32 to vector<32x128xf32>
    %191 = arith.mulf %190, %189 : vector<32x128xf32>
    %cst_82 = arith.constant 5.000000e-01 : f32
    %192 = vector.broadcast %cst_82 : f32 to vector<32x128xf32>
    %193 = arith.addf %191, %192 : vector<32x128xf32>
    %194 = arith.mulf %187, %162 : vector<32x128xf32>
    %195 = arith.mulf %182, %188 : vector<32x128xf32>
    %196 = arith.addf %194, %195 : vector<32x128xf32>
    %197 = math.tanh %196 : vector<32x128xf32>
    %198 = arith.mulf %193, %197 : vector<32x128xf32>
    %199 = arith.index_cast %c4_i32 : i32 to index
    %c0_83 = arith.constant 0 : index
    %c0_84 = arith.constant 0 : index
    %200 = vector.load %arg14[%199, %c0_83, %c0_84] : memref<8x32x128xf32, #tpu.memory_space<vmem>>, vector<1x32x128xf32>
    %201 = vector.shape_cast %200 : vector<1x32x128xf32> to vector<32x128xf32>
    %202 = vector.shape_cast %198 : vector<32x128xf32> to vector<1x32x128xf32>
    tpu.vector_store %arg14[%199, %c0_83, %c0_84], %202 {strides = array<i32>} : memref<8x32x128xf32, #tpu.memory_space<vmem>>, vector<1x32x128xf32>,
    %c5_i32 = arith.constant 5 : i32
    %203 = arith.index_cast %c5_i32 : i32 to index
    %c0_85 = arith.constant 0 : index
    %c0_86 = arith.constant 0 : index
    %204 = vector.load %arg13[%203, %c0_85, %c0_86] : memref<8x32x512xbf16, #tpu.memory_space<vmem>>, vector<1x32x512xbf16>
    %205 = vector.shape_cast %204 : vector<1x32x512xbf16> to vector<32x512xbf16>
    %206 = arith.extf %205 : vector<32x512xbf16> to vector<32x512xf32>
    %207 = arith.truncf %198 : vector<32x128xf32> to vector<32x128xbf16>
    %c0_87 = arith.constant 0 : index
    %c0_88 = arith.constant 0 : index
    %208 = vector.load %arg6[%c0_87, %c0_88] : memref<128x512xbf16, #tpu.memory_space<vmem>>, vector<128x512xbf16>
    %cst_89 = arith.constant dense<0.000000e+00> : vector<32x512xf32>
    %209 = tpu.matmul %207, %208, %cst_89 {dimension_numbers = #tpu.dot_dimension_numbers<[1], [0], [0], [1], [0, 0, 1, 1], [], []>} : vector<32x128xbf16>, vector<128x512xbf16>, vector<32x512xf32> -> vector<32x512xf32>
    %210 = arith.addf %206, %209 : vector<32x512xf32>
    %211 = math.tanh %210 : vector<32x512xf32>
    %212 = vector.extract_strided_slice %211 {offsets = [0, 0], sizes = [32, 128], strides = [1, 1]} : vector<32x512xf32> to vector<32x128xf32>
    %cst_90 = arith.constant 5.000000e-01 : f32
    %213 = vector.broadcast %cst_90 : f32 to vector<32x128xf32>
    %214 = arith.mulf %213, %212 : vector<32x128xf32>
    %cst_91 = arith.constant 5.000000e-01 : f32
    %215 = vector.broadcast %cst_91 : f32 to vector<32x128xf32>
    %216 = arith.addf %214, %215 : vector<32x128xf32>
    %217 = vector.extract_strided_slice %211 {offsets = [0, 128], sizes = [32, 128], strides = [1, 1]} : vector<32x512xf32> to vector<32x128xf32>
    %cst_92 = arith.constant 5.000000e-01 : f32
    %218 = vector.broadcast %cst_92 : f32 to vector<32x128xf32>
    %219 = arith.mulf %218, %217 : vector<32x128xf32>
    %cst_93 = arith.constant 5.000000e-01 : f32
    %220 = vector.broadcast %cst_93 : f32 to vector<32x128xf32>
    %221 = arith.addf %219, %220 : vector<32x128xf32>
    %222 = vector.extract_strided_slice %211 {offsets = [0, 256], sizes = [32, 128], strides = [1, 1]} : vector<32x512xf32> to vector<32x128xf32>
    %223 = vector.extract_strided_slice %211 {offsets = [0, 384], sizes = [32, 128], strides = [1, 1]} : vector<32x512xf32> to vector<32x128xf32>
    %cst_94 = arith.constant 5.000000e-01 : f32
    %224 = vector.broadcast %cst_94 : f32 to vector<32x128xf32>
    %225 = arith.mulf %224, %223 : vector<32x128xf32>
    %cst_95 = arith.constant 5.000000e-01 : f32
    %226 = vector.broadcast %cst_95 : f32 to vector<32x128xf32>
    %227 = arith.addf %225, %226 : vector<32x128xf32>
    %228 = arith.mulf %221, %196 : vector<32x128xf32>
    %229 = arith.mulf %216, %222 : vector<32x128xf32>
    %230 = arith.addf %228, %229 : vector<32x128xf32>
    %231 = math.tanh %230 : vector<32x128xf32>
    %232 = arith.mulf %227, %231 : vector<32x128xf32>
    %233 = arith.index_cast %c5_i32 : i32 to index
    %c0_96 = arith.constant 0 : index
    %c0_97 = arith.constant 0 : index
    %234 = vector.load %arg14[%233, %c0_96, %c0_97] : memref<8x32x128xf32, #tpu.memory_space<vmem>>, vector<1x32x128xf32>
    %235 = vector.shape_cast %234 : vector<1x32x128xf32> to vector<32x128xf32>
    %236 = vector.shape_cast %232 : vector<32x128xf32> to vector<1x32x128xf32>
    tpu.vector_store %arg14[%233, %c0_96, %c0_97], %236 {strides = array<i32>} : memref<8x32x128xf32, #tpu.memory_space<vmem>>, vector<1x32x128xf32>,
    %c6_i32 = arith.constant 6 : i32
    %237 = arith.index_cast %c6_i32 : i32 to index
    %c0_98 = arith.constant 0 : index
    %c0_99 = arith.constant 0 : index
    %238 = vector.load %arg13[%237, %c0_98, %c0_99] : memref<8x32x512xbf16, #tpu.memory_space<vmem>>, vector<1x32x512xbf16>
    %239 = vector.shape_cast %238 : vector<1x32x512xbf16> to vector<32x512xbf16>
    %240 = arith.extf %239 : vector<32x512xbf16> to vector<32x512xf32>
    %241 = arith.truncf %232 : vector<32x128xf32> to vector<32x128xbf16>
    %c0_100 = arith.constant 0 : index
    %c0_101 = arith.constant 0 : index
    %242 = vector.load %arg6[%c0_100, %c0_101] : memref<128x512xbf16, #tpu.memory_space<vmem>>, vector<128x512xbf16>
    %cst_102 = arith.constant dense<0.000000e+00> : vector<32x512xf32>
    %243 = tpu.matmul %241, %242, %cst_102 {dimension_numbers = #tpu.dot_dimension_numbers<[1], [0], [0], [1], [0, 0, 1, 1], [], []>} : vector<32x128xbf16>, vector<128x512xbf16>, vector<32x512xf32> -> vector<32x512xf32>
    %244 = arith.addf %240, %243 : vector<32x512xf32>
    %245 = math.tanh %244 : vector<32x512xf32>
    %246 = vector.extract_strided_slice %245 {offsets = [0, 0], sizes = [32, 128], strides = [1, 1]} : vector<32x512xf32> to vector<32x128xf32>
    %cst_103 = arith.constant 5.000000e-01 : f32
    %247 = vector.broadcast %cst_103 : f32 to vector<32x128xf32>
    %248 = arith.mulf %247, %246 : vector<32x128xf32>
    %cst_104 = arith.constant 5.000000e-01 : f32
    %249 = vector.broadcast %cst_104 : f32 to vector<32x128xf32>
    %250 = arith.addf %248, %249 : vector<32x128xf32>
    %251 = vector.extract_strided_slice %245 {offsets = [0, 128], sizes = [32, 128], strides = [1, 1]} : vector<32x512xf32> to vector<32x128xf32>
    %cst_105 = arith.constant 5.000000e-01 : f32
    %252 = vector.broadcast %cst_105 : f32 to vector<32x128xf32>
    %253 = arith.mulf %252, %251 : vector<32x128xf32>
    %cst_106 = arith.constant 5.000000e-01 : f32
    %254 = vector.broadcast %cst_106 : f32 to vector<32x128xf32>
    %255 = arith.addf %253, %254 : vector<32x128xf32>
    %256 = vector.extract_strided_slice %245 {offsets = [0, 256], sizes = [32, 128], strides = [1, 1]} : vector<32x512xf32> to vector<32x128xf32>
    %257 = vector.extract_strided_slice %245 {offsets = [0, 384], sizes = [32, 128], strides = [1, 1]} : vector<32x512xf32> to vector<32x128xf32>
    %cst_107 = arith.constant 5.000000e-01 : f32
    %258 = vector.broadcast %cst_107 : f32 to vector<32x128xf32>
    %259 = arith.mulf %258, %257 : vector<32x128xf32>
    %cst_108 = arith.constant 5.000000e-01 : f32
    %260 = vector.broadcast %cst_108 : f32 to vector<32x128xf32>
    %261 = arith.addf %259, %260 : vector<32x128xf32>
    %262 = arith.mulf %255, %230 : vector<32x128xf32>
    %263 = arith.mulf %250, %256 : vector<32x128xf32>
    %264 = arith.addf %262, %263 : vector<32x128xf32>
    %265 = math.tanh %264 : vector<32x128xf32>
    %266 = arith.mulf %261, %265 : vector<32x128xf32>
    %267 = arith.index_cast %c6_i32 : i32 to index
    %c0_109 = arith.constant 0 : index
    %c0_110 = arith.constant 0 : index
    %268 = vector.load %arg14[%267, %c0_109, %c0_110] : memref<8x32x128xf32, #tpu.memory_space<vmem>>, vector<1x32x128xf32>
    %269 = vector.shape_cast %268 : vector<1x32x128xf32> to vector<32x128xf32>
    %270 = vector.shape_cast %266 : vector<32x128xf32> to vector<1x32x128xf32>
    tpu.vector_store %arg14[%267, %c0_109, %c0_110], %270 {strides = array<i32>} : memref<8x32x128xf32, #tpu.memory_space<vmem>>, vector<1x32x128xf32>,
    %c7_i32 = arith.constant 7 : i32
    %271 = arith.index_cast %c7_i32 : i32 to index
    %c0_111 = arith.constant 0 : index
    %c0_112 = arith.constant 0 : index
    %272 = vector.load %arg13[%271, %c0_111, %c0_112] : memref<8x32x512xbf16, #tpu.memory_space<vmem>>, vector<1x32x512xbf16>
    %273 = vector.shape_cast %272 : vector<1x32x512xbf16> to vector<32x512xbf16>
    %274 = arith.extf %273 : vector<32x512xbf16> to vector<32x512xf32>
    %275 = arith.truncf %266 : vector<32x128xf32> to vector<32x128xbf16>
    %c0_113 = arith.constant 0 : index
    %c0_114 = arith.constant 0 : index
    %276 = vector.load %arg6[%c0_113, %c0_114] : memref<128x512xbf16, #tpu.memory_space<vmem>>, vector<128x512xbf16>
    %cst_115 = arith.constant dense<0.000000e+00> : vector<32x512xf32>
    %277 = tpu.matmul %275, %276, %cst_115 {dimension_numbers = #tpu.dot_dimension_numbers<[1], [0], [0], [1], [0, 0, 1, 1], [], []>} : vector<32x128xbf16>, vector<128x512xbf16>, vector<32x512xf32> -> vector<32x512xf32>
    %278 = arith.addf %274, %277 : vector<32x512xf32>
    %279 = math.tanh %278 : vector<32x512xf32>
    %280 = vector.extract_strided_slice %279 {offsets = [0, 0], sizes = [32, 128], strides = [1, 1]} : vector<32x512xf32> to vector<32x128xf32>
    %cst_116 = arith.constant 5.000000e-01 : f32
    %281 = vector.broadcast %cst_116 : f32 to vector<32x128xf32>
    %282 = arith.mulf %281, %280 : vector<32x128xf32>
    %cst_117 = arith.constant 5.000000e-01 : f32
    %283 = vector.broadcast %cst_117 : f32 to vector<32x128xf32>
    %284 = arith.addf %282, %283 : vector<32x128xf32>
    %285 = vector.extract_strided_slice %279 {offsets = [0, 128], sizes = [32, 128], strides = [1, 1]} : vector<32x512xf32> to vector<32x128xf32>
    %cst_118 = arith.constant 5.000000e-01 : f32
    %286 = vector.broadcast %cst_118 : f32 to vector<32x128xf32>
    %287 = arith.mulf %286, %285 : vector<32x128xf32>
    %cst_119 = arith.constant 5.000000e-01 : f32
    %288 = vector.broadcast %cst_119 : f32 to vector<32x128xf32>
    %289 = arith.addf %287, %288 : vector<32x128xf32>
    %290 = vector.extract_strided_slice %279 {offsets = [0, 256], sizes = [32, 128], strides = [1, 1]} : vector<32x512xf32> to vector<32x128xf32>
    %291 = vector.extract_strided_slice %279 {offsets = [0, 384], sizes = [32, 128], strides = [1, 1]} : vector<32x512xf32> to vector<32x128xf32>
    %cst_120 = arith.constant 5.000000e-01 : f32
    %292 = vector.broadcast %cst_120 : f32 to vector<32x128xf32>
    %293 = arith.mulf %292, %291 : vector<32x128xf32>
    %cst_121 = arith.constant 5.000000e-01 : f32
    %294 = vector.broadcast %cst_121 : f32 to vector<32x128xf32>
    %295 = arith.addf %293, %294 : vector<32x128xf32>
    %296 = arith.mulf %289, %264 : vector<32x128xf32>
    %297 = arith.mulf %284, %290 : vector<32x128xf32>
    %298 = arith.addf %296, %297 : vector<32x128xf32>
    %299 = math.tanh %298 : vector<32x128xf32>
    %300 = arith.mulf %295, %299 : vector<32x128xf32>
    %301 = arith.index_cast %c7_i32 : i32 to index
    %c0_122 = arith.constant 0 : index
    %c0_123 = arith.constant 0 : index
    %302 = vector.load %arg14[%301, %c0_122, %c0_123] : memref<8x32x128xf32, #tpu.memory_space<vmem>>, vector<1x32x128xf32>
    %303 = vector.shape_cast %302 : vector<1x32x128xf32> to vector<32x128xf32>
    %304 = vector.shape_cast %300 : vector<32x128xf32> to vector<1x32x128xf32>
    tpu.vector_store %arg14[%301, %c0_122, %c0_123], %304 {strides = array<i32>} : memref<8x32x128xf32, #tpu.memory_space<vmem>>, vector<1x32x128xf32>,
    %c8_i32 = arith.constant 8 : i32
    %c0_124 = arith.constant 0 : index
    %c0_125 = arith.constant 0 : index
    %c0_126 = arith.constant 0 : index
    %305 = vector.load %arg14[%c0_124, %c0_125, %c0_126] : memref<8x32x128xf32, #tpu.memory_space<vmem>>, vector<8x32x128xf32>
    %306 = vector.shape_cast %305 : vector<8x32x128xf32> to vector<256x128xf32>
    %307 = arith.truncf %306 : vector<256x128xf32> to vector<256x128xbf16>
    %c0_127 = arith.constant 0 : index
    %c0_128 = arith.constant 0 : index
    %308 = vector.load %arg7[%c0_127, %c0_128] : memref<128x128xbf16, #tpu.memory_space<vmem>>, vector<128x128xbf16>
    %cst_129 = arith.constant dense<0.000000e+00> : vector<256x128xf32>
    %309 = tpu.matmul %307, %308, %cst_129 {dimension_numbers = #tpu.dot_dimension_numbers<[1], [0], [0], [1], [0, 0, 1, 1], [], []>} : vector<256x128xbf16>, vector<128x128xbf16>, vector<256x128xf32> -> vector<256x128xf32>
    %c0_130 = arith.constant 0 : index
    %c0_131 = arith.constant 0 : index
    %310 = vector.load %arg8[%c0_130, %c0_131] : memref<1x128xf32, #tpu.memory_space<vmem>>, vector<1x128xf32>
    %311 = vector.broadcast %310 : vector<1x128xf32> to vector<256x128xf32>
    %312 = arith.addf %309, %311 : vector<256x128xf32>
    %313 = math.tanh %312 : vector<256x128xf32>
    %314 = arith.truncf %313 : vector<256x128xf32> to vector<256x128xbf16>
    %c0_132 = arith.constant 0 : index
    %c0_133 = arith.constant 0 : index
    %315 = vector.load %arg9[%c0_132, %c0_133] : memref<128x1xbf16, #tpu.memory_space<vmem>>, vector<128x1xbf16>
    %cst_134 = arith.constant dense<0.000000e+00> : vector<256x1xf32>
    %316 = tpu.matmul %314, %315, %cst_134 {dimension_numbers = #tpu.dot_dimension_numbers<[1], [0], [0], [1], [0, 0, 1, 1], [], []>} : vector<256x128xbf16>, vector<128x1xbf16>, vector<256x1xf32> -> vector<256x1xf32>
    %317 = vector.shape_cast %316 : vector<256x1xf32> to vector<8x32x1xf32>
    %c0_135 = arith.constant 0 : index
    %c0_136 = arith.constant 0 : index
    %c0_137 = arith.constant 0 : index
    %318 = vector.load %arg3[%c0_135, %c0_136, %c0_137] : memref<8x32x1xf32, #tpu.memory_space<vmem>>, vector<8x32x1xf32>
    %cst_138 = arith.constant 0.000000e+00 : f32
    %319 = vector.broadcast %cst_138 : f32 to vector<8x32x1xf32>
    %320 = arith.cmpf ogt, %318, %319 : vector<8x32x1xf32>
    %cst_139 = arith.constant -1.000000e+30 : f32
    %321 = vector.broadcast %cst_139 : f32 to vector<8x32x1xf32>
    %322 = arith.select %320, %317, %321 : vector<8x32x1xi1>, vector<8x32x1xf32>
    %cst_140 = arith.constant dense<0xFF800000> : vector<32x1xf32>
    %323 = vector.multi_reduction <maximumf>, %322, %cst_140 [0] : vector<8x32x1xf32> to vector<32x1xf32>
    %324 = vector.shape_cast %323 : vector<32x1xf32> to vector<1x32x1xf32>
    %325 = vector.broadcast %324 : vector<1x32x1xf32> to vector<8x32x1xf32>
    %326 = arith.subf %322, %325 : vector<8x32x1xf32>
    %327 = math.exp %326 : vector<8x32x1xf32>
    %cst_141 = arith.constant dense<0.000000e+00> : vector<32x1xf32>
    %328 = vector.multi_reduction <add>, %327, %cst_141 [0] : vector<8x32x1xf32> to vector<32x1xf32>
    %c0_142 = arith.constant 0 : index
    %c0_143 = arith.constant 0 : index
    %c0_144 = arith.constant 0 : index
    %329 = vector.load %arg15[%c0_142, %c0_143, %c0_144] : memref<8x32x1xf32, #tpu.memory_space<vmem>>, vector<8x32x1xf32>
    tpu.vector_store %arg15[%c0_142, %c0_143, %c0_144], %327 {strides = array<i32>} : memref<8x32x1xf32, #tpu.memory_space<vmem>>, vector<8x32x1xf32>,
    %cst_145 = arith.constant 0.000000e+00 : f32
    %330 = vector.broadcast %cst_145 : f32 to vector<32x128xf32>
    %c0_i32_146 = arith.constant 0 : i32
    %331 = arith.index_cast %c0_i32_146 : i32 to index
    %c0_147 = arith.constant 0 : index
    %c0_148 = arith.constant 0 : index
    %332 = vector.load %arg15[%331, %c0_147, %c0_148] : memref<8x32x1xf32, #tpu.memory_space<vmem>>, vector<1x32x1xf32>
    %333 = vector.shape_cast %332 : vector<1x32x1xf32> to vector<32x1xf32>
    %334 = arith.index_cast %c0_i32_146 : i32 to index
    %c0_149 = arith.constant 0 : index
    %c0_150 = arith.constant 0 : index
    %335 = vector.load %arg14[%334, %c0_149, %c0_150] : memref<8x32x128xf32, #tpu.memory_space<vmem>>, vector<1x32x128xf32>
    %336 = vector.shape_cast %335 : vector<1x32x128xf32> to vector<32x128xf32>
    %337 = vector.broadcast %333 : vector<32x1xf32> to vector<32x128xf32>
    %338 = arith.mulf %337, %336 : vector<32x128xf32>
    %339 = arith.addf %330, %338 : vector<32x128xf32>
    %c1_i32_151 = arith.constant 1 : i32
    %340 = arith.index_cast %c1_i32_151 : i32 to index
    %c0_152 = arith.constant 0 : index
    %c0_153 = arith.constant 0 : index
    %341 = vector.load %arg15[%340, %c0_152, %c0_153] : memref<8x32x1xf32, #tpu.memory_space<vmem>>, vector<1x32x1xf32>
    %342 = vector.shape_cast %341 : vector<1x32x1xf32> to vector<32x1xf32>
    %343 = arith.index_cast %c1_i32_151 : i32 to index
    %c0_154 = arith.constant 0 : index
    %c0_155 = arith.constant 0 : index
    %344 = vector.load %arg14[%343, %c0_154, %c0_155] : memref<8x32x128xf32, #tpu.memory_space<vmem>>, vector<1x32x128xf32>
    %345 = vector.shape_cast %344 : vector<1x32x128xf32> to vector<32x128xf32>
    %346 = vector.broadcast %342 : vector<32x1xf32> to vector<32x128xf32>
    %347 = arith.mulf %346, %345 : vector<32x128xf32>
    %348 = arith.addf %339, %347 : vector<32x128xf32>
    %c2_i32_156 = arith.constant 2 : i32
    %349 = arith.index_cast %c2_i32_156 : i32 to index
    %c0_157 = arith.constant 0 : index
    %c0_158 = arith.constant 0 : index
    %350 = vector.load %arg15[%349, %c0_157, %c0_158] : memref<8x32x1xf32, #tpu.memory_space<vmem>>, vector<1x32x1xf32>
    %351 = vector.shape_cast %350 : vector<1x32x1xf32> to vector<32x1xf32>
    %352 = arith.index_cast %c2_i32_156 : i32 to index
    %c0_159 = arith.constant 0 : index
    %c0_160 = arith.constant 0 : index
    %353 = vector.load %arg14[%352, %c0_159, %c0_160] : memref<8x32x128xf32, #tpu.memory_space<vmem>>, vector<1x32x128xf32>
    %354 = vector.shape_cast %353 : vector<1x32x128xf32> to vector<32x128xf32>
    %355 = vector.broadcast %351 : vector<32x1xf32> to vector<32x128xf32>
    %356 = arith.mulf %355, %354 : vector<32x128xf32>
    %357 = arith.addf %348, %356 : vector<32x128xf32>
    %c3_i32_161 = arith.constant 3 : i32
    %358 = arith.index_cast %c3_i32_161 : i32 to index
    %c0_162 = arith.constant 0 : index
    %c0_163 = arith.constant 0 : index
    %359 = vector.load %arg15[%358, %c0_162, %c0_163] : memref<8x32x1xf32, #tpu.memory_space<vmem>>, vector<1x32x1xf32>
    %360 = vector.shape_cast %359 : vector<1x32x1xf32> to vector<32x1xf32>
    %361 = arith.index_cast %c3_i32_161 : i32 to index
    %c0_164 = arith.constant 0 : index
    %c0_165 = arith.constant 0 : index
    %362 = vector.load %arg14[%361, %c0_164, %c0_165] : memref<8x32x128xf32, #tpu.memory_space<vmem>>, vector<1x32x128xf32>
    %363 = vector.shape_cast %362 : vector<1x32x128xf32> to vector<32x128xf32>
    %364 = vector.broadcast %360 : vector<32x1xf32> to vector<32x128xf32>
    %365 = arith.mulf %364, %363 : vector<32x128xf32>
    %366 = arith.addf %357, %365 : vector<32x128xf32>
    %c4_i32_166 = arith.constant 4 : i32
    %367 = arith.index_cast %c4_i32_166 : i32 to index
    %c0_167 = arith.constant 0 : index
    %c0_168 = arith.constant 0 : index
    %368 = vector.load %arg15[%367, %c0_167, %c0_168] : memref<8x32x1xf32, #tpu.memory_space<vmem>>, vector<1x32x1xf32>
    %369 = vector.shape_cast %368 : vector<1x32x1xf32> to vector<32x1xf32>
    %370 = arith.index_cast %c4_i32_166 : i32 to index
    %c0_169 = arith.constant 0 : index
    %c0_170 = arith.constant 0 : index
    %371 = vector.load %arg14[%370, %c0_169, %c0_170] : memref<8x32x128xf32, #tpu.memory_space<vmem>>, vector<1x32x128xf32>
    %372 = vector.shape_cast %371 : vector<1x32x128xf32> to vector<32x128xf32>
    %373 = vector.broadcast %369 : vector<32x1xf32> to vector<32x128xf32>
    %374 = arith.mulf %373, %372 : vector<32x128xf32>
    %375 = arith.addf %366, %374 : vector<32x128xf32>
    %c5_i32_171 = arith.constant 5 : i32
    %376 = arith.index_cast %c5_i32_171 : i32 to index
    %c0_172 = arith.constant 0 : index
    %c0_173 = arith.constant 0 : index
    %377 = vector.load %arg15[%376, %c0_172, %c0_173] : memref<8x32x1xf32, #tpu.memory_space<vmem>>, vector<1x32x1xf32>
    %378 = vector.shape_cast %377 : vector<1x32x1xf32> to vector<32x1xf32>
    %379 = arith.index_cast %c5_i32_171 : i32 to index
    %c0_174 = arith.constant 0 : index
    %c0_175 = arith.constant 0 : index
    %380 = vector.load %arg14[%379, %c0_174, %c0_175] : memref<8x32x128xf32, #tpu.memory_space<vmem>>, vector<1x32x128xf32>
    %381 = vector.shape_cast %380 : vector<1x32x128xf32> to vector<32x128xf32>
    %382 = vector.broadcast %378 : vector<32x1xf32> to vector<32x128xf32>
    %383 = arith.mulf %382, %381 : vector<32x128xf32>
    %384 = arith.addf %375, %383 : vector<32x128xf32>
    %c6_i32_176 = arith.constant 6 : i32
    %385 = arith.index_cast %c6_i32_176 : i32 to index
    %c0_177 = arith.constant 0 : index
    %c0_178 = arith.constant 0 : index
    %386 = vector.load %arg15[%385, %c0_177, %c0_178] : memref<8x32x1xf32, #tpu.memory_space<vmem>>, vector<1x32x1xf32>
    %387 = vector.shape_cast %386 : vector<1x32x1xf32> to vector<32x1xf32>
    %388 = arith.index_cast %c6_i32_176 : i32 to index
    %c0_179 = arith.constant 0 : index
    %c0_180 = arith.constant 0 : index
    %389 = vector.load %arg14[%388, %c0_179, %c0_180] : memref<8x32x128xf32, #tpu.memory_space<vmem>>, vector<1x32x128xf32>
    %390 = vector.shape_cast %389 : vector<1x32x128xf32> to vector<32x128xf32>
    %391 = vector.broadcast %387 : vector<32x1xf32> to vector<32x128xf32>
    %392 = arith.mulf %391, %390 : vector<32x128xf32>
    %393 = arith.addf %384, %392 : vector<32x128xf32>
    %c7_i32_181 = arith.constant 7 : i32
    %394 = arith.index_cast %c7_i32_181 : i32 to index
    %c0_182 = arith.constant 0 : index
    %c0_183 = arith.constant 0 : index
    %395 = vector.load %arg15[%394, %c0_182, %c0_183] : memref<8x32x1xf32, #tpu.memory_space<vmem>>, vector<1x32x1xf32>
    %396 = vector.shape_cast %395 : vector<1x32x1xf32> to vector<32x1xf32>
    %397 = arith.index_cast %c7_i32_181 : i32 to index
    %c0_184 = arith.constant 0 : index
    %c0_185 = arith.constant 0 : index
    %398 = vector.load %arg14[%397, %c0_184, %c0_185] : memref<8x32x128xf32, #tpu.memory_space<vmem>>, vector<1x32x128xf32>
    %399 = vector.shape_cast %398 : vector<1x32x128xf32> to vector<32x128xf32>
    %400 = vector.broadcast %396 : vector<32x1xf32> to vector<32x128xf32>
    %401 = arith.mulf %400, %399 : vector<32x128xf32>
    %402 = arith.addf %393, %401 : vector<32x128xf32>
    %c8_i32_186 = arith.constant 8 : i32
    %403 = tpu.reciprocal %328 {approx = true} : vector<32x1xf32> -> vector<32x1xf32>
    %404 = vector.broadcast %403 : vector<32x1xf32> to vector<32x128xf32>
    %405 = arith.mulf %402, %404 : vector<32x128xf32>
    %406 = arith.truncf %405 : vector<32x128xf32> to vector<32x128xbf16>
    %c0_187 = arith.constant 0 : index
    %c0_188 = arith.constant 0 : index
    %407 = vector.load %arg10[%c0_187, %c0_188] : memref<128x128xbf16, #tpu.memory_space<vmem>>, vector<128x128xbf16>
    %cst_189 = arith.constant dense<0.000000e+00> : vector<32x128xf32>
    %408 = tpu.matmul %406, %407, %cst_189 {dimension_numbers = #tpu.dot_dimension_numbers<[1], [0], [0], [1], [0, 0, 1, 1], [], []>} : vector<32x128xbf16>, vector<128x128xbf16>, vector<32x128xf32> -> vector<32x128xf32>
    %c0_190 = arith.constant 0 : index
    %c0_191 = arith.constant 0 : index
    %409 = vector.load %arg11[%c0_190, %c0_191] : memref<1x128xf32, #tpu.memory_space<vmem>>, vector<1x128xf32>
    %410 = vector.broadcast %409 : vector<1x128xf32> to vector<32x128xf32>
    %411 = arith.addf %408, %410 : vector<32x128xf32>
    %c0_192 = arith.constant 0 : index
    %c0_193 = arith.constant 0 : index
    %412 = vector.load %arg12[%c0_192, %c0_193] : memref<32x128xf32, #tpu.memory_space<vmem>>, vector<32x128xf32>
    tpu.vector_store %arg12[%c0_192, %c0_193], %411 {strides = array<i32>} : memref<32x128xf32, #tpu.memory_space<vmem>>, vector<32x128xf32>,
    return
  }
  func.func @transform_0(%arg0: i32) -> (i32, i32, i32) {
    %c0_i32 = arith.constant 0 : i32
    %c0_i32_0 = arith.constant 0 : i32
    %c0_i32_1 = arith.constant 0 : i32
    %c0_i32_2 = arith.constant 0 : i32
    return %c0_i32, %c0_i32_0, %c0_i32_1 : i32, i32, i32
  }
  func.func @transform_1(%arg0: i32) -> (i32, i32, i32) {
    %c0_i32 = arith.constant 0 : i32
    %c0_i32_0 = arith.constant 0 : i32
    %c0_i32_1 = arith.constant 0 : i32
    return %c0_i32, %arg0, %c0_i32_0 : i32, i32, i32
  }
  func.func @transform_2(%arg0: i32) -> (i32, i32, i32) {
    %c0_i32 = arith.constant 0 : i32
    %c0_i32_0 = arith.constant 0 : i32
    %c0_i32_1 = arith.constant 0 : i32
    return %c0_i32, %arg0, %c0_i32_0 : i32, i32, i32
  }
  func.func @transform_3(%arg0: i32) -> (i32, i32) {
    %c0_i32 = arith.constant 0 : i32
    %c0_i32_0 = arith.constant 0 : i32
    %c0_i32_1 = arith.constant 0 : i32
    return %c0_i32, %c0_i32_0 : i32, i32
  }
  func.func @transform_4(%arg0: i32) -> (i32, i32) {
    %c0_i32 = arith.constant 0 : i32
    %c0_i32_0 = arith.constant 0 : i32
    %c0_i32_1 = arith.constant 0 : i32
    return %c0_i32, %c0_i32_0 : i32, i32
  }
  func.func @transform_5(%arg0: i32) -> (i32, i32) {
    %c0_i32 = arith.constant 0 : i32
    %c0_i32_0 = arith.constant 0 : i32
    %c0_i32_1 = arith.constant 0 : i32
    return %c0_i32, %c0_i32_0 : i32, i32
  }
  func.func @transform_6(%arg0: i32) -> (i32, i32) {
    %c0_i32 = arith.constant 0 : i32
    %c0_i32_0 = arith.constant 0 : i32
    %c0_i32_1 = arith.constant 0 : i32
    return %c0_i32, %c0_i32_0 : i32, i32
  }
  func.func @transform_7(%arg0: i32) -> (i32, i32) {
    %c0_i32 = arith.constant 0 : i32
    %c0_i32_0 = arith.constant 0 : i32
    %c0_i32_1 = arith.constant 0 : i32
    return %c0_i32, %c0_i32_0 : i32, i32
  }
  func.func @transform_8(%arg0: i32) -> (i32, i32) {
    %c0_i32 = arith.constant 0 : i32
    %c0_i32_0 = arith.constant 0 : i32
    %c0_i32_1 = arith.constant 0 : i32
    return %c0_i32, %c0_i32_0 : i32, i32
  }
  func.func @transform_9(%arg0: i32) -> (i32, i32) {
    %c0_i32 = arith.constant 0 : i32
    %c0_i32_0 = arith.constant 0 : i32
    %c0_i32_1 = arith.constant 0 : i32
    return %c0_i32, %c0_i32_0 : i32, i32
  }
  func.func @transform_10(%arg0: i32) -> (i32, i32) {
    %c0_i32 = arith.constant 0 : i32
    %c0_i32_0 = arith.constant 0 : i32
    %c0_i32_1 = arith.constant 0 : i32
    return %c0_i32, %c0_i32_0 : i32, i32
  }
  func.func @transform_11(%arg0: i32) -> (i32, i32) {
    %c0_i32 = arith.constant 0 : i32
    %c0_i32_0 = arith.constant 0 : i32
    return %arg0, %c0_i32 : i32, i32
  }
}

</mosaic_0001>

<bundles_post_ra>
// kernel: tpu_custom_call.1
= control target key start
LH: loop header
LB: loop body
LE: loop exit
PB: predicated region body
PF: predicated region fallthrough
CT: control target
= control target key end

     0   :  { %v9679_v2 = vmov 0   ;;  %vm586_vm0 = vcmask 1044480   ;;  %vm116_vm1 = vcmask 261120   ;;  %s9667_s0 = inlined_call_operand.vmem [shape: bf16[8,8,32], index: 0, kind: input, shape index: {}]   ;;  %s9668_s1 = inlined_call_operand.vmem [shape: s32[8,32,1], index: 1, kind: input, shape index: {}]   ;;  %s9669_s2 = inlined_call_operand.vmem [shape: f32[8,32,1], index: 2, kind: input, shape index: {}]   ;;  %s9670_s3 = inlined_call_operand.vmem [shape: bf16[10,512], index: 3, kind: input, shape index: {}]   ;;  %s9671_s4 = inlined_call_operand.vmem [shape: bf16[32,512], index: 4, kind: input, shape index: {}]   ;;  %s9672_s5 = inlined_call_operand.vmem [shape: bf16[128,512], index: 5, kind: input, shape index: {}]   ;;  %s9673_s6 = inlined_call_operand.vmem [shape: bf16[128,128], index: 6, kind: input, shape index: {}]   ;;  %s9674_s7 = inlined_call_operand.vmem [shape: f32[1,128], index: 7, kind: input, shape index: {}]   ;;  %s9675_s8 = inlined_call_operand.vmem [shape: bf16[128,1], index: 8, kind: input, shape index: {}]   ;;  %s9676_s9 = inlined_call_operand.vmem [shape: bf16[128,128], index: 9, kind: input, shape index: {}]   ;;  %s9677_s10 = inlined_call_operand.vmem [shape: f32[1,128], index: 10, kind: input, shape index: {}]   ;;  %s9678_s11 = inlined_call_operand.hbm [shape: f32[32,128], index: 11, kind: output, shape index: {}]  }
   0x1   :  { %v277_v0 = vld [vmem:[%s9668_s1 + $0x10] sm:$0xff]  ;;  %v275_v1 = vld [vmem:[%s9668_s1] sm:$0xff]  ;;  %6720 = vset.pattern.permute.xlu1 %v9679_v2  ;;  %6719 = vset.pattern.permute.xlu0 %v9679_v2  ;;  %v278_v3 = vld [vmem:[%s9668_s1 + $0x18] sm:$0xff] }
   0x2   :  { %316 = vperm.xlu1 %6720, %v277_v0   ;;  %310 = vperm.xlu0 %6719, %v275_v1   ;;  %v276_v4 = vld [vmem:[%s9668_s1 + $0x8] sm:$0xff]  ;;  %v279_v6 = vld [vmem:[%s9668_s1 + $0x20] sm:$0xff]  ;;  %v282_v7 = vld [vmem:[%s9668_s1 + $0x38] sm:$0xff] }
   0x3   :  { %161 = vmatprep.mubr.bf16.mxu0 %v9679_v2  ;;  %234 = vmatprep.mubr.bf16.mxu1 %v9679_v2  ;;  %v280_v5 = vld [vmem:[%s9668_s1 + $0x28] sm:$0xff]  ;;  %v281_v8 = vld [vmem:[%s9668_s1 + $0x30] sm:$0xff]  ;;  %v283_v13 = vld [vmem:[%s9668_s1 + $0x40] sm:$0xff] }
   0x4   :  { %v6721_v9 = vld [vmem:[%s9671_s4 + $0x4] ss:$16 sps:$4 sm:$0xff]   ;;  %v6723_v10 = vld [vmem:[%s9671_s4] ss:$16 sps:$4 sm:$0xff]   ;;  %v6724_v11 = vld [vmem:[%s9671_s4 + $0xc] ss:$16 sps:$4 sm:$0xff]  }
   0x5   :  { %v284_v12 = vld [vmem:[%s9668_s1 + $0x48] sm:$0xff]  ;;  %129 = vmatprep.subr.bf16.mxu0 %v6721_v9  ;;  %v6726_v14 = vld [vmem:[%s9671_s4 + $0x24] ss:$16 sps:$4 sm:$0xff]   ;;  %v6729_v16 = vld [vmem:[%s9671_s4 + $0x20] ss:$16 sps:$4 sm:$0xff]   ;;  %202 = vmatprep.subr.bf16.mxu1 %v6724_v11 }
   0x6   :  { %319 = vperm.xlu1 %6720, %v278_v3   ;;  %313 = vperm.xlu0 %6719, %v276_v4   ;;  %v6728_v15 = vld [vmem:[%s9671_s4 + $0x8] ss:$16 sps:$4 sm:$0xff]   ;;  %v6730_v17 = vld [vmem:[%s9671_s4 + $0x2c] ss:$16 sps:$4 sm:$0xff]   ;;  %v285_v20 = vld [vmem:[%s9668_s1 + $0x50] sm:$0xff] }
   0x7   :  { %130 = vmatpush1.bf16.msra.mxu0 %v6723_v10  ;;  %203 = vmatpush1.bf16.msra.mxu1 %v6728_v15  ;;  %v6733_v18 = vld [vmem:[%s9671_s4 + $0x28] ss:$16 sps:$4 sm:$0xff]   ;;  %v6734_v21 = vld [vmem:[%s9670_s3 + $0x4] ss:$16 sps:$4 sm:$0x1f]  }
   0x8   :  { %131 = vmatprep.subr.bf16.mxu0 %v6726_v14  ;;  %v286_v19 = vld [vmem:[%s9668_s1 + $0x58] sm:$0xff]  ;;  %204 = vmatprep.subr.bf16.mxu1 %v6730_v17  ;;  %v6736_v22 = vld [vmem:[%s9670_s3] ss:$16 sps:$4 sm:$0x1f]   ;;  %v288_v27 = vld [vmem:[%s9668_s1 + $0x68] sm:$0xff] }
   0x9   :  { %v6732_v23 = vld [vmem:[%s9667_s0] sm:$0xff]   ;;  %v6737_v24 = vld [vmem:[%s9670_s3 + $0xc] ss:$16 sps:$4 sm:$0x1f]   ;;  %v588_v26 = vsel %vm586_vm0, %v6736_v22, 0  ;;  %v289_v32 = vld [vmem:[%s9668_s1 + $0x70] sm:$0xff] }
   0xa   :  { %325 = vperm.xlu1 %6720, %v280_v5   ;;  %322 = vperm.xlu0 %6719, %v279_v6   ;;  %v6740_v25 = vld [vmem:[%s9670_s3 + $0x8] ss:$16 sps:$4 sm:$0x1f]   ;;  %v287_v29 = vld [vmem:[%s9668_s1 + $0x60] sm:$0xff]  ;;  %v6748_v34 = vld [vmem:[%s9672_s5 + $0xc] ss:$16 sps:$4 sm:$0xff]  }
   0xb   :  { %132 = vmatpush1.bf16.msra.mxu0 %v6729_v16  ;;  %205 = vmatpush1.bf16.msra.mxu1 %v6733_v18  ;;  %v594_v28 = vsel %vm586_vm0, %v6740_v25, 0  ;;  %v6745_v30 = vld [vmem:[%s9672_s5 + $0x4] ss:$16 sps:$4 sm:$0xff]   ;;  %v290_v31 = vld [vmem:[%s9668_s1 + $0x78] sm:$0xff]  ;;  %v6739_v33 = vld [vmem:[%s9667_s0 + $0x8] sm:$0xff]  }
   0xc   :  { %6224 = vmatprep.subr.msk.bf16.mxu0 %vm586_vm0, %v6734_v21  ;;  %6241 = vmatprep.subr.msk.bf16.mxu1 %vm586_vm0, %v6737_v24  ;;  %v292_v35 = vld [vmem:[%s9668_s1 + $0x88] sm:$0xff]  ;;  %v291_v36 = vld [vmem:[%s9668_s1 + $0x80] sm:$0xff]  ;;  %v294_v37 = vld [vmem:[%s9668_s1 + $0x98] sm:$0xff] }
   0xd   :  { %v293_v38 = vld [vmem:[%s9668_s1 + $0x90] sm:$0xff]  ;;  %v296_v40 = vld [vmem:[%s9668_s1 + $0xa8] sm:$0xff]  ;;  %v295_v41 = vld [vmem:[%s9668_s1 + $0xa0] sm:$0xff] }
   0xe   :  { %331 = vperm.xlu1 %6720, %v282_v7   ;;  %328 = vperm.xlu0 %6719, %v281_v8   ;;  %v6741_v39 = vld [vmem:[%s9667_s0 + $0x10] sm:$0xff]   ;;  %v298_v42 = vld [vmem:[%s9668_s1 + $0xb8] sm:$0xff]  ;;  %v300_v45 = vld [vmem:[%s9668_s1 + $0xc8] sm:$0xff] }
   0xf   :  { %6180 = vmatmul.mubr.msk.bf16.vlgmr.msra.gmra.mrb[0].mxu0 %vm116_vm1, %v6732_v23  ;;  %6184 = vmatmul.mubr.msk.bf16.vlgmr.msra.gmra.mrb[0].mxu1 %vm116_vm1, %v6732_v23  ;;  %v297_v43 = vld [vmem:[%s9668_s1 + $0xb0] sm:$0xff]  ;;  %v6742_v44 = vld [vmem:[%s9667_s0 + $0x18] sm:$0xff]   ;;  %v299_v46 = vld [vmem:[%s9668_s1 + $0xc0] sm:$0xff] }
  0x10   :  { %600 = vmatpush1.bf16.msra.mxu0 %v588_v26  ;;  %171 = vmatprep.mubr.bf16.mxu0 %v9679_v2  ;;  %v302_v47 = vld [vmem:[%s9668_s1 + $0xd8] sm:$0xff]  ;;  %v301_v48 = vld [vmem:[%s9668_s1 + $0xd0] sm:$0xff]  ;;  %v304_v49 = vld [vmem:[%s9668_s1 + $0xe8] sm:$0xff] }
  0x11   :  { %793 = vmatpush1.bf16.msra.mxu1 %v594_v28  ;;  %244 = vmatprep.mubr.bf16.mxu1 %v9679_v2  ;;  %v303_v50 = vld [vmem:[%s9668_s1 + $0xe0] sm:$0xff]  ;;  %v306_v51 = vld [vmem:[%s9668_s1 + $0xf8] sm:$0xff]  ;;  %v305_v52 = vld [vmem:[%s9668_s1 + $0xf0] sm:$0xff] }
  0x12   :  { %337 = vperm.xlu1 %6720, %v284_v12   ;;  %334 = vperm.xlu0 %6719, %v283_v13  }
  0x13   :  { %1777 = vmatprep.subr.bf16.mxu0 %v6745_v30  ;;  %1830 = vmatprep.subr.bf16.mxu1 %v6748_v34 }
  0x16   :  { %343 = vperm.xlu1 %6720, %v286_v19   ;;  %340 = vperm.xlu0 %6719, %v285_v20  }
  0x17   :  { %6181 = vmatmul.mubr.msk.bf16.gmra.mrb[4].mxu0 %vm116_vm1, %v6739_v33  ;;  %6185 = vmatmul.mubr.msk.bf16.gmra.mrb[4].mxu1 %vm116_vm1, %v6739_v33 }
  0x18   :  { %181 = vmatprep.mubr.bf16.mxu0 %v9679_v2  ;;  %254 = vmatprep.mubr.bf16.mxu1 %v9679_v2 }
  0x1a   :  { %349 = vperm.xlu1 %6720, %v288_v27   ;;  %346 = vperm.xlu0 %6719, %v287_v29  }
  0x1e   :  { %355 = vperm.xlu1 %6720, %v290_v31   ;;  %352 = vperm.xlu0 %6719, %v289_v32  }
  0x1f   :  { %6182 = vmatmul.mubr.msk.bf16.gmra.mrb[8].mxu0 %vm116_vm1, %v6741_v39  ;;  %6186 = vmatmul.mubr.msk.bf16.gmra.mrb[8].mxu1 %vm116_vm1, %v6741_v39 }
  0x20   :  { %191 = vmatprep.mubr.bf16.mxu0 %v9679_v2  ;;  %264 = vmatprep.mubr.bf16.mxu1 %v9679_v2 }
  0x22   :  { %361 = vperm.xlu1 %6720, %v292_v35   ;;  %358 = vperm.xlu0 %6719, %v291_v36  }
  0x26   :  { %367 = vperm.xlu1 %6720, %v294_v37   ;;  %364 = vperm.xlu0 %6719, %v293_v38  }
  0x27   :  { %6183 = vmatmul.mubr.msk.bf16.gmra.mrb[12].mxu0 %vm116_vm1, %v6742_v44  ;;  %6187 = vmatmul.mubr.msk.bf16.gmra.mrb[12].mxu1 %vm116_vm1, %v6742_v44 }
  0x28   :  { %631 = vmatprep.mubr.bf16.mxu0 %v9679_v2  ;;  %824 = vmatprep.mubr.bf16.mxu1 %v9679_v2 }
  0x2a   :  { %373 = vperm.xlu1 %6720, %v296_v40   ;;  %370 = vperm.xlu0 %6719, %v295_v41  }
  0x2e   :  { %379 = vperm.xlu1 %6720, %v298_v42   ;;  %376 = vperm.xlu0 %6719, %v297_v43  }
  0x32   :  { %385 = vperm.xlu1 %6720, %v300_v45   ;;  %382 = vperm.xlu0 %6719, %v299_v46  }
  0x36   :  { %391 = vperm.xlu1 %6720, %v302_v47   ;;  %388 = vperm.xlu0 %6719, %v301_v48  }
  0x3a   :  { %397 = vperm.xlu1 %6720, %v304_v49   ;;  %394 = vperm.xlu0 %6719, %v303_v50  }
  0x3e   :  { %403 = vperm.xlu1 %6720, %v306_v51   ;;  %400 = vperm.xlu0 %6719, %v305_v52  }
  0x3f   :  { %16 = vsyncpa [#allocation6], 0  ;;  %v307_v53 = vlaneseq  ;;  %vm537_vm4 = vcmask 80896   ;;  %v7472_v59 = vmov 0.0   ;;  %v6743_v62 = vld [vmem:[%s9672_s5] ss:$16 sps:$4 sm:$0xff]  }
  0x40   :  { %v6746_v63 = vld [vmem:[%s9672_s5 + $0x8] ss:$16 sps:$4 sm:$0xff]   ;;  %v6751_v4 = vld [vmem:[%s9672_s5 + $0x24] ss:$16 sps:$4 sm:$0xff]   ;;  %v6754_v5 = vld [vmem:[%s9672_s5 + $0x2c] ss:$16 sps:$4 sm:$0xff]  }
  0x41   :  { %v7710_v54 = vand.u32 127, %v307_v53  ;;  %v6749_v6 = vld [vmem:[%s9672_s5 + $0x20] ss:$16 sps:$4 sm:$0xff]   ;;  %v6752_v7 = vld [vmem:[%s9672_s5 + $0x28] ss:$16 sps:$4 sm:$0xff]   ;;  %s7473_s1 = smov [#allocation5]  }
  0x42   :  { %v6757_v8 = vld [vmem:[%s9672_s5 + $0x44] ss:$16 sps:$4 sm:$0xff]   ;;  %v6760_v9 = vld [vmem:[%s9672_s5 + $0x4c] ss:$16 sps:$4 sm:$0xff]   ;;  %v6755_v15 = vld [vmem:[%s9672_s5 + $0x40] ss:$16 sps:$4 sm:$0xff]  }
  0x43   :  { %v6758_v16 = vld [vmem:[%s9672_s5 + $0x48] ss:$16 sps:$4 sm:$0xff]   ;;  %v6763_v19 = vld [vmem:[%s9672_s5 + $0x64] ss:$16 sps:$4 sm:$0xff]   ;;  %v6766_v20 = vld [vmem:[%s9672_s5 + $0x6c] ss:$16 sps:$4 sm:$0xff]  }
  0x44   :  { %v6761_v21 = vld [vmem:[%s9672_s5 + $0x60] ss:$16 sps:$4 sm:$0xff]   ;;  %v6764_v22 = vld [vmem:[%s9672_s5 + $0x68] ss:$16 sps:$4 sm:$0xff]   ;;  %v6769_v27 = vld [vmem:[%s9672_s5 + $0x84] ss:$16 sps:$4 sm:$0xff]  }
  0x45   :  { %v6772_v28 = vld [vmem:[%s9672_s5 + $0x8c] ss:$16 sps:$4 sm:$0xff]   ;;  %v6767_v30 = vld [vmem:[%s9672_s5 + $0x80] ss:$16 sps:$4 sm:$0xff]   ;;  %v6770_v31 = vld [vmem:[%s9672_s5 + $0x88] ss:$16 sps:$4 sm:$0xff]  }
  0x46   :  { %v6775_v34 = vld [vmem:[%s9672_s5 + $0xa4] ss:$16 sps:$4 sm:$0xff]   ;;  %v6778_v35 = vld [vmem:[%s9672_s5 + $0xac] ss:$16 sps:$4 sm:$0xff]   ;;  %v6773_v36 = vld [vmem:[%s9672_s5 + $0xa0] ss:$16 sps:$4 sm:$0xff]  }
  0x47   :  { %v6776_v37 = vld [vmem:[%s9672_s5 + $0xa8] ss:$16 sps:$4 sm:$0xff]   ;;  %v6781_v42 = vld [vmem:[%s9672_s5 + $0xc4] ss:$16 sps:$4 sm:$0xff]   ;;  %v6784_v43 = vld [vmem:[%s9672_s5 + $0xcc] ss:$16 sps:$4 sm:$0xff]  }
  0x48   :  { %v6779_v45 = vld [vmem:[%s9672_s5 + $0xc0] ss:$16 sps:$4 sm:$0xff]   ;;  %v6782_v46 = vld [vmem:[%s9672_s5 + $0xc8] ss:$16 sps:$4 sm:$0xff]   ;;  %v6787_v49 = vld [vmem:[%s9672_s5 + $0xe4] ss:$16 sps:$4 sm:$0xff]  }
  0x49   :  { %v6790_v50 = vld [vmem:[%s9672_s5 + $0xec] ss:$16 sps:$4 sm:$0xff]  }
  0x81   :  { %v317_v55 = vpop.permute.xlu1 %316  ;;  %v311_v56 = vpop.permute.xlu0 %310 }
  0x82   :  { %vm405_vm2 = vcmp.eq.s32.totalorder %v7710_v54, %v311_v56  ;;  %vm407_vm5 = vcmp.eq.s32.totalorder %v7710_v54, %v317_v55  ;;  %v6785_v55 = vld [vmem:[%s9672_s5 + $0xe0] ss:$16 sps:$4 sm:$0xff]   ;;  %v6788_v56 = vld [vmem:[%s9672_s5 + $0xe8] ss:$16 sps:$4 sm:$0xff]  }
  0x83   :  { %v6188_v60 = vsel %vm405_vm2, 1.0, %v7472_v59  ;;  %v6190_v10 = vsel %vm407_vm5, 1.0, %v7472_v59 }
  0x85   :  { %v320_v57 = vpop.permute.xlu1 %319  ;;  %v314_v58 = vpop.permute.xlu0 %313 }
  0x86   :  { %vm406_vm3 = vcmp.eq.s32.totalorder %v7710_v54, %v314_v58  ;;  %vm408_vm6 = vcmp.eq.s32.totalorder %v7710_v54, %v320_v57 }
  0x87   :  { %v6189_v61 = vsel %vm406_vm3, 1.0, %v7472_v59  ;;  %v6191_v11 = vsel %vm408_vm6, 1.0, %v7472_v59 }
  0x88   :  { %v501_v0 = vpack.c.bf16 %v6189_v61, %v6188_v60  ;;  %v502_v14 = vpack.c.bf16 %v6191_v11, %v6190_v10 }
  0x89   :  { %v326_v1 = vpop.permute.xlu1 %325  ;;  %v323_v3 = vpop.permute.xlu0 %322 }
  0x8a   :  { %6225 = vmatmul.mubr.msk.bf16.vlgmr.msra.gmra.mrb[16].mxu0 %vm537_vm4, %v501_v0  ;;  %6242 = vmatmul.mubr.msk.bf16.vlgmr.msra.gmra.mrb[16].mxu1 %vm537_vm4, %v501_v0  ;;  %vm410_vm7 = vcmp.eq.s32.totalorder %v7710_v54, %v326_v1  ;;  %vm409_vm8 = vcmp.eq.s32.totalorder %v7710_v54, %v323_v3 }
  0x8b   :  { %1778 = vmatpush1.bf16.msra.mxu0 %v6743_v62  ;;  %1831 = vmatpush1.bf16.msra.mxu1 %v6746_v63  ;;  %v6193_v23 = vsel %vm410_vm7, 1.0, %v7472_v59  ;;  %v6192_v24 = vsel %vm409_vm8, 1.0, %v7472_v59 }
  0x8c   :  { %641 = vmatprep.mubr.bf16.mxu0 %v9679_v2  ;;  %834 = vmatprep.mubr.bf16.mxu1 %v9679_v2  ;;  %v503_v29 = vpack.c.bf16 %v6193_v23, %v6192_v24 }
  0x8d   :  { %v332_v12 = vpop.permute.xlu1 %331  ;;  %v329_v13 = vpop.permute.xlu0 %328  ;;  %1779 = vmatprep.subr.bf16.mxu0 %v6751_v4  ;;  %1832 = vmatprep.subr.bf16.mxu1 %v6754_v5 }
  0x8e   :  { %vm412_vm9 = vcmp.eq.s32.totalorder %v7710_v54, %v332_v12  ;;  %vm411_vm10 = vcmp.eq.s32.totalorder %v7710_v54, %v329_v13 }
  0x8f   :  { %1780 = vmatpush1.bf16.msra.mxu0 %v6749_v6  ;;  %1833 = vmatpush1.bf16.msra.mxu1 %v6752_v7  ;;  %v6195_v38 = vsel %vm412_vm9, 1.0, %v7472_v59  ;;  %v6194_v39 = vsel %vm411_vm10, 1.0, %v7472_v59 }
  0x90   :  { %1781 = vmatprep.subr.bf16.mxu0 %v6757_v8  ;;  %1834 = vmatprep.subr.bf16.mxu1 %v6760_v9  ;;  %v504_v44 = vpack.c.bf16 %v6195_v38, %v6194_v39 }
  0x91   :  { %v7754_v17 = vpop.permute.xlu1 %337  ;;  %v7756_v18 = vpop.permute.xlu0 %334 }
  0x92   :  { %6226 = vmatmul.mubr.msk.bf16.gmra.mrb[20].mxu0 %vm537_vm4, %v502_v14  ;;  %6243 = vmatmul.mubr.msk.bf16.gmra.mrb[20].mxu1 %vm537_vm4, %v502_v14  ;;  %vm414_vm11 = vcmp.eq.s32.totalorder %v7710_v54, %v7754_v17  ;;  %vm413_vm12 = vcmp.eq.s32.totalorder %v7710_v54, %v7756_v18 }
  0x93   :  { %651 = vmatprep.mubr.bf16.mxu0 %v9679_v2  ;;  %844 = vmatprep.mubr.bf16.mxu1 %v9679_v2  ;;  %v6197_v57 = vsel %vm414_vm11, 1.0, %v7472_v59  ;;  %v6196_v58 = vsel %vm413_vm12, 1.0, %v7472_v59 }
  0x94   :  { %1782 = vmatpush1.bf16.msra.mxu0 %v6755_v15  ;;  %1835 = vmatpush1.bf16.msra.mxu1 %v6758_v16  ;;  %v505_v0 = vpack.c.bf16 %v6197_v57, %v6196_v58 }
  0x95   :  { %v7778_v25 = vpop.permute.xlu1 %343  ;;  %v7780_v26 = vpop.permute.xlu0 %340  ;;  %1783 = vmatprep.subr.bf16.mxu0 %v6763_v19  ;;  %1836 = vmatprep.subr.bf16.mxu1 %v6766_v20 }
  0x96   :  { %vm416_vm1 = vcmp.eq.s32.totalorder %v7710_v54, %v7778_v25  ;;  %vm415_vm2 = vcmp.eq.s32.totalorder %v7710_v54, %v7780_v26 }
  0x97   :  { %v6199_v8 = vsel %vm416_vm1, 1.0, %v7472_v59  ;;  %v6198_v9 = vsel %vm415_vm2, 1.0, %v7472_v59 }
  0x98   :  { %1784 = vmatpush1.bf16.msra.mxu0 %v6761_v21  ;;  %1837 = vmatpush1.bf16.msra.mxu1 %v6764_v22  ;;  %v506_v14 = vpack.c.bf16 %v6199_v8, %v6198_v9 }
  0x99   :  { %v7794_v32 = vpop.permute.xlu1 %349  ;;  %v7796_v33 = vpop.permute.xlu0 %346  ;;  %1785 = vmatprep.subr.bf16.mxu0 %v6769_v27  ;;  %1838 = vmatprep.subr.bf16.mxu1 %v6772_v28 }
  0x9a   :  { %6227 = vmatmul.mubr.msk.bf16.gmra.mrb[24].mxu0 %vm537_vm4, %v503_v29  ;;  %6244 = vmatmul.mubr.msk.bf16.gmra.mrb[24].mxu1 %vm537_vm4, %v503_v29  ;;  %vm418_vm8 = vcmp.eq.s32.totalorder %v7710_v54, %v7794_v32  ;;  %vm417_vm9 = vcmp.eq.s32.totalorder %v7710_v54, %v7796_v33 }
  0x9b   :  { %661 = vmatprep.mubr.bf16.mxu0 %v9679_v2  ;;  %854 = vmatprep.mubr.bf16.mxu1 %v9679_v2  ;;  %v6201_v21 = vsel %vm418_vm8, 1.0, %v7472_v59  ;;  %v6200_v22 = vsel %vm417_vm9, 1.0, %v7472_v59 }
  0x9c   :  { %1786 = vmatpush1.bf16.msra.mxu0 %v6767_v30  ;;  %1839 = vmatpush1.bf16.msra.mxu1 %v6770_v31  ;;  %v507_v27 = vpack.c.bf16 %v6201_v21, %v6200_v22 }
  0x9d   :  { %v7818_v40 = vpop.permute.xlu1 %355  ;;  %v7820_v41 = vpop.permute.xlu0 %352  ;;  %1787 = vmatprep.subr.bf16.mxu0 %v6775_v34  ;;  %1840 = vmatprep.subr.bf16.mxu1 %v6778_v35 }
  0xa0   :  { %1788 = vmatpush1.bf16.msra.mxu0 %v6773_v36  ;;  %1841 = vmatpush1.bf16.msra.mxu1 %v6776_v37 }
  0xa1   :  { %v362_v47 = vpop.permute.xlu1 %361  ;;  %v359_v48 = vpop.permute.xlu0 %358  ;;  %1789 = vmatprep.subr.bf16.mxu0 %v6781_v42  ;;  %1842 = vmatprep.subr.bf16.mxu1 %v6784_v43 }
  0xa2   :  { %vm422_vm13 = vcmp.eq.s32.totalorder %v7710_v54, %v362_v47  ;;  %vm421_vm14 = vcmp.eq.s32.totalorder %v7710_v54, %v359_v48  ;;  %6228 = vmatmul.mubr.msk.bf16.gmra.mrb[28].mxu0 %vm537_vm4, %v504_v44  ;;  %6245 = vmatmul.mubr.msk.bf16.gmra.mrb[28].mxu1 %vm537_vm4, %v504_v44 }
  0xa3   :  { %v6205_v51 = vsel %vm422_vm13, 1.0, %v7472_v59  ;;  %v6204_v52 = vsel %vm421_vm14, 1.0, %v7472_v59  ;;  %671 = vmatprep.mubr.bf16.mxu0 %v9679_v2  ;;  %864 = vmatprep.mubr.bf16.mxu1 %v9679_v2  ;;  %vm420_vm14 = vcmp.eq.s32.totalorder %v7710_v54, %v7818_v40 }
  0xa4   :  { %v7852_v53 = vpack.c.bf16 %v6205_v51, %v6204_v52  ;;  %1790 = vmatpush1.bf16.msra.mxu0 %v6779_v45  ;;  %1843 = vmatpush1.bf16.msra.mxu1 %v6782_v46  ;;  %v6203_v34 = vsel %vm420_vm14, 1.0, %v7472_v59 }
  0xa5   :  { %v368_v60 = vpop.permute.xlu1 %367  ;;  %v365_v61 = vpop.permute.xlu0 %364  ;;  %1791 = vmatprep.subr.bf16.mxu0 %v6787_v49  ;;  %1844 = vmatprep.subr.bf16.mxu1 %v6790_v50 }
  0xa6   :  { %vm424_vm15 = vcmp.eq.s32.totalorder %v7710_v54, %v368_v60  ;;  %vm423_vm0 = vcmp.eq.s32.totalorder %v7710_v54, %v365_v61 }
  0xa7   :  { %v6207_v62 = vsel %vm424_vm15, 1.0, %v7472_v59  ;;  %v6206_v63 = vsel %vm423_vm0, 1.0, %v7472_v59  ;;  %vm419_vm15 = vcmp.eq.s32.totalorder %v7710_v54, %v7820_v41 }
  0xa8   :  { %v7869_v1 = vpack.c.bf16 %v6207_v62, %v6206_v63  ;;  %1792 = vmatpush1.bf16.msra.mxu0 %v6785_v55  ;;  %1845 = vmatpush1.bf16.msra.mxu1 %v6788_v56  ;;  %v6202_v35 = vsel %vm419_vm15, 1.0, %v7472_v59 }
  0xa9   :  { %v374_v3 = vpop.permute.xlu1 %373  ;;  %v371_v4 = vpop.permute.xlu0 %370  ;;  %v508_v40 = vpack.c.bf16 %v6203_v34, %v6202_v35 }
  0xaa   :  { %vm426_vm3 = vcmp.eq.s32.totalorder %v7710_v54, %v374_v3  ;;  %vm425_vm5 = vcmp.eq.s32.totalorder %v7710_v54, %v371_v4  ;;  %6229 = vmatmul.mubr.msk.bf16.gmra.mrb[32].mxu0 %vm537_vm4, %v505_v0  ;;  %6246 = vmatmul.mubr.msk.bf16.gmra.mrb[32].mxu1 %vm537_vm4, %v505_v0 }
  0xab   :  { %v6209_v5 = vsel %vm426_vm3, 1.0, %v7472_v59  ;;  %v6208_v6 = vsel %vm425_vm5, 1.0, %v7472_v59  ;;  %681 = vmatprep.mubr.bf16.mxu0 %v9679_v2  ;;  %874 = vmatprep.mubr.bf16.mxu1 %v9679_v2 }
  0xac   :  { %v7883_v7 = vpack.c.bf16 %v6209_v5, %v6208_v6 }
  0xad   :  { %v380_v10 = vpop.permute.xlu1 %379  ;;  %v377_v11 = vpop.permute.xlu0 %376 }
  0xae   :  { %vm428_vm6 = vcmp.eq.s32.totalorder %v7710_v54, %v380_v10  ;;  %vm427_vm7 = vcmp.eq.s32.totalorder %v7710_v54, %v377_v11 }
  0xaf   :  { %v6211_v12 = vsel %vm428_vm6, 1.0, %v7472_v59  ;;  %v6210_v13 = vsel %vm427_vm7, 1.0, %v7472_v59  ;;  %vm5454_vm6 = vcmask 7168  }
  0xb0   :  { %v7891_v15 = vpack.c.bf16 %v6211_v12, %v6210_v13 }
  0xb1   :  { %v386_v16 = vpop.permute.xlu1 %385  ;;  %v383_v17 = vpop.permute.xlu0 %382 }
  0xb2   :  { %vm430_vm10 = vcmp.eq.s32.totalorder %v7710_v54, %v386_v16  ;;  %vm429_vm11 = vcmp.eq.s32.totalorder %v7710_v54, %v383_v17  ;;  %6230 = vmatmul.mubr.msk.bf16.gmra.mrb[36].mxu0 %vm537_vm4, %v506_v14  ;;  %6247 = vmatmul.mubr.msk.bf16.gmra.mrb[36].mxu1 %vm537_vm4, %v506_v14 }
  0xb3   :  { %v6213_v18 = vsel %vm430_vm10, 1.0, %v7472_v59  ;;  %v6212_v19 = vsel %vm429_vm11, 1.0, %v7472_v59  ;;  %691 = vmatprep.mubr.bf16.mxu0 %v9679_v2  ;;  %884 = vmatprep.mubr.bf16.mxu1 %v9679_v2 }
  0xb4   :  { %v513_v20 = vpack.c.bf16 %v6213_v18, %v6212_v19 }
  0xb5   :  { %v392_v23 = vpop.permute.xlu1 %391  ;;  %v389_v24 = vpop.permute.xlu0 %388 }
  0xb6   :  { %vm432_vm12 = vcmp.eq.s32.totalorder %v7710_v54, %v392_v23  ;;  %vm431_vm13 = vcmp.eq.s32.totalorder %v7710_v54, %v389_v24 }
  0xb7   :  { %v6215_v25 = vsel %vm432_vm12, 1.0, %v7472_v59  ;;  %v6214_v26 = vsel %vm431_vm13, 1.0, %v7472_v59 }
  0xb8   :  { %v514_v28 = vpack.c.bf16 %v6215_v25, %v6214_v26 }
  0xb9   :  { %v398_v29 = vpop.permute.xlu1 %397  ;;  %v395_v30 = vpop.permute.xlu0 %394 }
  0xba   :  { %vm434_vm0 = vcmp.eq.s32.totalorder %v7710_v54, %v398_v29  ;;  %vm433_vm1 = vcmp.eq.s32.totalorder %v7710_v54, %v395_v30  ;;  %6231 = vmatmul.mubr.msk.bf16.gmra.mrb[40].mxu0 %vm537_vm4, %v507_v27  ;;  %6248 = vmatmul.mubr.msk.bf16.gmra.mrb[40].mxu1 %vm537_vm4, %v507_v27 }
  0xbb   :  { %v6217_v31 = vsel %vm434_vm0, 1.0, %v7472_v59  ;;  %v6216_v32 = vsel %vm433_vm1, 1.0, %v7472_v59  ;;  %701 = vmatprep.mubr.bf16.mxu0 %v9679_v2  ;;  %894 = vmatprep.mubr.bf16.mxu1 %v9679_v2 }
  0xbc   :  { %v515_v33 = vpack.c.bf16 %v6217_v31, %v6216_v32 }
  0xbd   :  { %v404_v36 = vpop.permute.xlu1 %403  ;;  %v401_v37 = vpop.permute.xlu0 %400 }
  0xbe   :  { %vm436_vm2 = vcmp.eq.s32.totalorder %v7710_v54, %v404_v36  ;;  %vm435_vm3 = vcmp.eq.s32.totalorder %v7710_v54, %v401_v37 }
  0xbf   :  { %v6219_v38 = vsel %vm436_vm2, 1.0, %v7472_v59  ;;  %v6218_v39 = vsel %vm435_vm3, 1.0, %v7472_v59 }
  0xc0   :  { %v516_v41 = vpack.c.bf16 %v6219_v38, %v6218_v39 }
  0xc2   :  { %6232 = vmatmul.mubr.msk.bf16.gmra.mrb[44].mxu0 %vm537_vm4, %v508_v40  ;;  %6249 = vmatmul.mubr.msk.bf16.gmra.mrb[44].mxu1 %vm537_vm4, %v508_v40 }
  0xc3   :  { %711 = vmatprep.mubr.bf16.mxu0 %v9679_v2  ;;  %904 = vmatprep.mubr.bf16.mxu1 %v9679_v2 }
  0xca   :  { %6233 = vmatmul.mubr.msk.bf16.gmra.mrb[48].mxu0 %vm537_vm4, %v7852_v53  ;;  %6250 = vmatmul.mubr.msk.bf16.gmra.mrb[48].mxu1 %vm537_vm4, %v7852_v53 }
  0xcb   :  { %721 = vmatprep.mubr.bf16.mxu0 %v9679_v2  ;;  %914 = vmatprep.mubr.bf16.mxu1 %v9679_v2 }
  0xd2   :  { %6234 = vmatmul.mubr.msk.bf16.gmra.mrb[52].mxu0 %vm537_vm4, %v7869_v1  ;;  %6251 = vmatmul.mubr.msk.bf16.gmra.mrb[52].mxu1 %vm537_vm4, %v7869_v1 }
  0xd3   :  { %731 = vmatprep.mubr.bf16.mxu0 %v9679_v2  ;;  %924 = vmatprep.mubr.bf16.mxu1 %v9679_v2 }
  0xda   :  { %6235 = vmatmul.mubr.msk.bf16.gmra.mrb[56].mxu0 %vm537_vm4, %v7883_v7  ;;  %6252 = vmatmul.mubr.msk.bf16.gmra.mrb[56].mxu1 %vm537_vm4, %v7883_v7 }
  0xdb   :  { %741 = vmatprep.mubr.bf16.mxu0 %v9679_v2  ;;  %934 = vmatprep.mubr.bf16.mxu1 %v9679_v2 }
  0xe2   :  { %6236 = vmatmul.mubr.msk.bf16.gmra.mrb[60].mxu0 %vm537_vm4, %v7891_v15  ;;  %6253 = vmatmul.mubr.msk.bf16.gmra.mrb[60].mxu1 %vm537_vm4, %v7891_v15  ;;  %v7959_v54 = vpop.f32.mrb[0].mxu0  ;;  %v7961_v59 = vpop.f32.mrb[0].mxu1 }
  0xe3   :  { %751 = vmatprep.mubr.bf16.mxu0 %v9679_v2  ;;  %944 = vmatprep.mubr.bf16.mxu1 %v9679_v2  ;;  %v7965_v42 = vpop.f32.mrb[1].mxu0  ;;  %v7967_v43 = vpop.f32.mrb[1].mxu1 }
  0xe4   :  { %v7969_v44 = vpop.f32.mrb[2].mxu0  ;;  %v7971_v45 = vpop.f32.mrb[2].mxu1 }
  0xe5   :  { %v7973_v46 = vpop.f32.mrb[3].mxu0  ;;  %v7975_v47 = vpop.f32.mrb[3].mxu1 }
  0xea   :  { %6237 = vmatmul.mubr.msk.bf16.gmra.mrb[64].mxu0 %vm537_vm4, %v513_v20  ;;  %6254 = vmatmul.mubr.msk.bf16.gmra.mrb[64].mxu1 %vm537_vm4, %v513_v20  ;;  %v7979_v48 = vpop.f32.mrb[4].mxu0  ;;  %v7981_v49 = vpop.f32.mrb[4].mxu1 }
  0xeb   :  { %761 = vmatprep.mubr.bf16.mxu0 %v9679_v2  ;;  %954 = vmatprep.mubr.bf16.mxu1 %v9679_v2  ;;  %v7985_v50 = vpop.f32.mrb[5].mxu0  ;;  %v7987_v51 = vpop.f32.mrb[5].mxu1 }
  0xec   :  { %v7989_v52 = vpop.f32.mrb[6].mxu0  ;;  %v7991_v53 = vpop.f32.mrb[6].mxu1 }
  0xed   :  { %v7993_v55 = vpop.f32.mrb[7].mxu0  ;;  %v7995_v56 = vpop.f32.mrb[7].mxu1 }
  0xf2   :  { %6238 = vmatmul.mubr.msk.bf16.gmra.mrb[68].mxu0 %vm537_vm4, %v514_v28  ;;  %6255 = vmatmul.mubr.msk.bf16.gmra.mrb[68].mxu1 %vm537_vm4, %v514_v28  ;;  %v7999_v57 = vpop.f32.mrb[8].mxu0  ;;  %v8001_v58 = vpop.f32.mrb[8].mxu1 }
  0xf3   :  { %771 = vmatprep.mubr.bf16.mxu0 %v9679_v2  ;;  %964 = vmatprep.mubr.bf16.mxu1 %v9679_v2  ;;  %v8005_v60 = vpop.f32.mrb[9].mxu0  ;;  %v8007_v61 = vpop.f32.mrb[9].mxu1 }
  0xf4   :  { %v8009_v62 = vpop.f32.mrb[10].mxu0  ;;  %v8011_v63 = vpop.f32.mrb[10].mxu1 }
  0xf5   :  { %v8013_v0 = vpop.f32.mrb[11].mxu0  ;;  %v8015_v1 = vpop.f32.mrb[11].mxu1 }
  0xfa   :  { %6239 = vmatmul.mubr.msk.bf16.gmra.mrb[72].mxu0 %vm537_vm4, %v515_v33  ;;  %6256 = vmatmul.mubr.msk.bf16.gmra.mrb[72].mxu1 %vm537_vm4, %v515_v33  ;;  %v8019_v3 = vpop.f32.mrb[12].mxu0  ;;  %v8021_v4 = vpop.f32.mrb[12].mxu1 }
  0xfb   :  { %781 = vmatprep.mubr.bf16.mxu0 %v9679_v2  ;;  %974 = vmatprep.mubr.bf16.mxu1 %v9679_v2  ;;  %v8025_v5 = vpop.f32.mrb[13].mxu0  ;;  %v8027_v6 = vpop.f32.mrb[13].mxu1 }
  0xfc   :  { %v8029_v7 = vpop.f32.mrb[14].mxu0  ;;  %v8031_v8 = vpop.f32.mrb[14].mxu1 }
  0xfd   :  { %v8033_v9 = vpop.f32.mrb[15].mxu0  ;;  %v8035_v10 = vpop.f32.mrb[15].mxu1 }
 0x102   :  { %6240 = vmatmul.mubr.msk.bf16.gmra.mrb[76].mxu0 %vm537_vm4, %v516_v41  ;;  %6257 = vmatmul.mubr.msk.bf16.gmra.mrb[76].mxu1 %vm537_vm4, %v516_v41 }
 0x103   :  { %1809 = vmatprep.mubr.bf16.mxu0 %v9679_v2  ;;  %1862 = vmatprep.mubr.bf16.mxu1 %v9679_v2 }
 0x10a   :  { %1810 = vmatmul.mubr.bf16.vlgmr.msra.gmra.mrb[80].mxu0 %v9679_v2  ;;  %1863 = vmatmul.mubr.bf16.vlgmr.msra.gmra.mrb[80].mxu1 %v9679_v2 }
 0x10b   :  { %1819 = vmatprep.mubr.bf16.mxu0 %v9679_v2  ;;  %1872 = vmatprep.mubr.bf16.mxu1 %v9679_v2 }
 0x112   :  { %1820 = vmatmul.mubr.bf16.gmra.mrb[84].mxu0 %v9679_v2  ;;  %1873 = vmatmul.mubr.bf16.gmra.mrb[84].mxu1 %v9679_v2 }
 0x113   :  { %2214 = vmatprep.mubr.bf16.mxu0 %v9679_v2  ;;  %2267 = vmatprep.mubr.bf16.mxu1 %v9679_v2 }
 0x15d   :  { %v633_v11 = vpop.f32.mrb[16].mxu0  ;;  %v826_v12 = vpop.f32.mrb[16].mxu1 }
 0x15e   :  { %v985_v13 = vadd.f32 %v633_v11, %v7959_v54  ;;  %v987_v14 = vadd.f32 %v826_v12, %v7961_v59  ;;  %v635_v15 = vpop.f32.mrb[17].mxu0  ;;  %v828_v16 = vpop.f32.mrb[17].mxu1 }
 0x15f   :  { %v986_v17 = vadd.f32 %v635_v15, %v7965_v42  ;;  %v988_v18 = vadd.f32 %v828_v16, %v7967_v43  ;;  %v637_v19 = vpop.f32.mrb[18].mxu0  ;;  %v830_v20 = vpop.f32.mrb[18].mxu1 }
 0x160   :  { %v1017_v21 = vpack.c.bf16 %v985_v13, %v985_v13  ;;  %v1019_v22 = vpack.c.bf16 %v987_v14, %v987_v14  ;;  %v1081_v23 = vadd.f32 %v637_v19, %v7959_v54  ;;  %v1083_v24 = vadd.f32 %v830_v20, %v7961_v59  ;;  %v639_v25 = vpop.f32.mrb[19].mxu0  ;;  %v832_v26 = vpop.f32.mrb[19].mxu1  ;;  %v8065_v19 = vld [vmem:[%s9672_s5 + $0xc] ss:$16 sps:$4 sm:$0xff]  }
 0x161   :  { %v1018_v27 = vpack.c.bf16 %v986_v17, %v986_v17  ;;  %v1020_v28 = vpack.c.bf16 %v988_v18, %v988_v18  ;;  %v1082_v29 = vadd.f32 %v639_v25, %v7965_v42  ;;  %v1084_v30 = vadd.f32 %v832_v26, %v7967_v43  ;;  %v8060_v18 = vld [vmem:[%s9672_s5 + $0x4] ss:$16 sps:$4 sm:$0xff]   ;;  %v6791_v26 = vld [vmem:[%s9672_s5] ss:$16 sps:$4 sm:$0xff]   ;;  %2235 = vmatprep.subr.bf16.mxu1 %v8065_v19 }
 0x162   :  { %1049 = vst [vmem:[#allocation2] sm:$0xf] %v1017_v21  ;;  %1051 = vst [vmem:[#allocation2 + $0x10] sm:$0xf] %v1019_v22  ;;  %v1113_v31 = vpack.c.bf16 %v1081_v23, %v1081_v23  ;;  %v1115_v32 = vpack.c.bf16 %v1083_v24, %v1083_v24  ;;  %2182 = vmatprep.subr.bf16.mxu0 %v8060_v18 }
 0x163   :  { %1050 = vst [vmem:[#allocation2 + $0x8] sm:$0xf] %v1018_v27  ;;  %1052 = vst [vmem:[#allocation2 + $0x18] sm:$0xf] %v1020_v28  ;;  %v1114_v33 = vpack.c.bf16 %v1082_v29, %v1082_v29  ;;  %v1116_v34 = vpack.c.bf16 %v1084_v30, %v1084_v30  ;;  %v6794_v27 = vld [vmem:[%s9672_s5 + $0x8] ss:$16 sps:$4 sm:$0xff]   ;;  %2183 = vmatpush1.bf16.msra.mxu0 %v6791_v26 }
 0x164   :  { %v1177_v35 = vrot.slane %v1113_v31, 4  ;;  %v1179_v36 = vrot.slane %v1115_v32, 4  ;;  %2236 = vmatpush1.bf16.msra.mxu1 %v6794_v27 }
 0x165   :  { %v1178_v37 = vrot.slane %v1114_v33, 4  ;;  %v1180_v38 = vrot.slane %v1116_v34, 4  ;;  %v643_v39 = vpop.f32.mrb[20].mxu0  ;;  %v836_v40 = vpop.f32.mrb[20].mxu1 }
 0x166   :  { %1241 = vst [vmem:[#allocation2] sm:$0xf0] %v1177_v35  ;;  %1243 = vst [vmem:[#allocation2 + $0x10] sm:$0xf0] %v1179_v36  ;;  %v1273_v41 = vadd.f32 %v643_v39, %v7959_v54  ;;  %v1275_v11 = vadd.f32 %v836_v40, %v7961_v59  ;;  %v645_v12 = vpop.f32.mrb[21].mxu0  ;;  %v838_v13 = vpop.f32.mrb[21].mxu1 }
 0x167   :  { %1242 = vst [vmem:[#allocation2 + $0x8] sm:$0xf0] %v1178_v37  ;;  %1244 = vst [vmem:[#allocation2 + $0x18] sm:$0xf0] %v1180_v38  ;;  %v1274_v14 = vadd.f32 %v645_v12, %v7965_v42  ;;  %v1276_v15 = vadd.f32 %v838_v13, %v7967_v43  ;;  %v647_v16 = vpop.f32.mrb[22].mxu0  ;;  %v840_v17 = vpop.f32.mrb[22].mxu1 }
 0x168   :  { %v1305_v20 = vpack.c.bf16 %v1273_v41, %v1273_v41  ;;  %v1307_v21 = vpack.c.bf16 %v1275_v11, %v1275_v11  ;;  %v1369_v22 = vadd.f32 %v647_v16, %v7959_v54  ;;  %v1371_v23 = vadd.f32 %v840_v17, %v7961_v59  ;;  %v649_v24 = vpop.f32.mrb[23].mxu0  ;;  %v842_v25 = vpop.f32.mrb[23].mxu1  ;;  %v6797_v36 = vld [vmem:[%s9672_s5 + $0x20] ss:$16 sps:$4 sm:$0xff]   ;;  %v6800_v37 = vld [vmem:[%s9672_s5 + $0x28] ss:$16 sps:$4 sm:$0xff]  }
 0x169   :  { %v1306_v28 = vpack.c.bf16 %v1274_v14, %v1274_v14  ;;  %v1308_v29 = vpack.c.bf16 %v1276_v15, %v1276_v15  ;;  %v1370_v30 = vadd.f32 %v649_v24, %v7965_v42  ;;  %v1372_v31 = vadd.f32 %v842_v25, %v7967_v43  ;;  %v6799_v42 = vld [vmem:[%s9672_s5 + $0x24] ss:$16 sps:$4 sm:$0xff]   ;;  %v6802_v43 = vld [vmem:[%s9672_s5 + $0x2c] ss:$16 sps:$4 sm:$0xff]  }
 0x16a   :  { %1337 = vst [vmem:[#allocation2 + $0x20] sm:$0xf] %v1305_v20  ;;  %1339 = vst [vmem:[#allocation2 + $0x30] sm:$0xf] %v1307_v21  ;;  %v1401_v54 = vpack.c.bf16 %v1369_v22, %v1369_v22  ;;  %v1403_v59 = vpack.c.bf16 %v1371_v23, %v1371_v23  ;;  %2184 = vmatprep.subr.bf16.mxu0 %v6799_v42  ;;  %2237 = vmatprep.subr.bf16.mxu1 %v6802_v43  ;;  %v6805_v21 = vld [vmem:[%s9672_s5 + $0x44] ss:$16 sps:$4 sm:$0xff]  }
 0x16b   :  { %1338 = vst [vmem:[#allocation2 + $0x28] sm:$0xf] %v1306_v28  ;;  %1340 = vst [vmem:[#allocation2 + $0x38] sm:$0xf] %v1308_v29  ;;  %v1402_v32 = vpack.c.bf16 %v1370_v30, %v1370_v30  ;;  %v1404_v33 = vpack.c.bf16 %v1372_v31, %v1372_v31  ;;  %2185 = vmatpush1.bf16.msra.mxu0 %v6797_v36  ;;  %2238 = vmatpush1.bf16.msra.mxu1 %v6800_v37  ;;  %v6808_v22 = vld [vmem:[%s9672_s5 + $0x4c] ss:$16 sps:$4 sm:$0xff]  }
 0x16c   :  { %v1465_v34 = vrot.slane %v1401_v54, 4  ;;  %v1467_v35 = vrot.slane %v1403_v59, 4  ;;  %v6803_v29 = vld [vmem:[%s9672_s5 + $0x40] ss:$16 sps:$4 sm:$0xff]   ;;  %v6806_v30 = vld [vmem:[%s9672_s5 + $0x48] ss:$16 sps:$4 sm:$0xff]   ;;  %2186 = vmatprep.subr.bf16.mxu0 %v6805_v21  ;;  %2239 = vmatprep.subr.bf16.mxu1 %v6808_v22 }
 0x16d   :  { %v1466_v38 = vrot.slane %v1402_v32, 4  ;;  %v1468_v39 = vrot.slane %v1404_v33, 4  ;;  %v653_v40 = vpop.f32.mrb[24].mxu0  ;;  %v846_v41 = vpop.f32.mrb[24].mxu1  ;;  %v6814_v36 = vld [vmem:[%s9672_s5 + $0x6c] ss:$16 sps:$4 sm:$0xff]  }
 0x16e   :  { %1529 = vst [vmem:[#allocation2 + $0x20] sm:$0xf0] %v1465_v34  ;;  %1531 = vst [vmem:[#allocation2 + $0x30] sm:$0xf0] %v1467_v35  ;;  %v989_v11 = vadd.f32 %v653_v40, %v7969_v44  ;;  %v991_v12 = vadd.f32 %v846_v41, %v7971_v45  ;;  %v655_v13 = vpop.f32.mrb[25].mxu0  ;;  %v848_v14 = vpop.f32.mrb[25].mxu1 }
 0x16f   :  { %1530 = vst [vmem:[#allocation2 + $0x28] sm:$0xf0] %v1466_v38  ;;  %1532 = vst [vmem:[#allocation2 + $0x38] sm:$0xf0] %v1468_v39  ;;  %v990_v15 = vadd.f32 %v655_v13, %v7973_v46  ;;  %v992_v16 = vadd.f32 %v848_v14, %v7975_v47  ;;  %v657_v17 = vpop.f32.mrb[26].mxu0  ;;  %v850_v20 = vpop.f32.mrb[26].mxu1  ;;  %2187 = vmatpush1.bf16.msra.mxu0 %v6803_v29  ;;  %2240 = vmatpush1.bf16.msra.mxu1 %v6806_v30 }
 0x170   :  { %v1021_v23 = vpack.c.bf16 %v989_v11, %v989_v11  ;;  %v1023_v24 = vpack.c.bf16 %v991_v12, %v991_v12  ;;  %v1085_v25 = vadd.f32 %v657_v17, %v7969_v44  ;;  %v1087_v26 = vadd.f32 %v850_v20, %v7971_v45  ;;  %v659_v27 = vpop.f32.mrb[27].mxu0  ;;  %v852_v28 = vpop.f32.mrb[27].mxu1  ;;  %v6811_v35 = vld [vmem:[%s9672_s5 + $0x64] ss:$16 sps:$4 sm:$0xff]   ;;  %v6809_v39 = vld [vmem:[%s9672_s5 + $0x60] ss:$16 sps:$4 sm:$0xff]   ;;  %2241 = vmatprep.subr.bf16.mxu1 %v6814_v36 }
 0x171   :  { %v1022_v31 = vpack.c.bf16 %v990_v15, %v990_v15  ;;  %v1024_v54 = vpack.c.bf16 %v992_v16, %v992_v16  ;;  %v1086_v59 = vadd.f32 %v659_v27, %v7973_v46  ;;  %v1088_v32 = vadd.f32 %v852_v28, %v7975_v47  ;;  %v6812_v40 = vld [vmem:[%s9672_s5 + $0x68] ss:$16 sps:$4 sm:$0xff]   ;;  %2188 = vmatprep.subr.bf16.mxu0 %v6811_v35  ;;  %v6823_v36 = vld [vmem:[%s9672_s5 + $0xa4] ss:$16 sps:$4 sm:$0xff]  }
 0x172   :  { %1053 = vst [vmem:[#allocation2 + $0x40] sm:$0xf] %v1021_v23  ;;  %1055 = vst [vmem:[#allocation2 + $0x50] sm:$0xf] %v1023_v24  ;;  %v1117_v33 = vpack.c.bf16 %v1085_v25, %v1085_v25  ;;  %v1119_v42 = vpack.c.bf16 %v1087_v26, %v1087_v26  ;;  %v6817_v24 = vld [vmem:[%s9672_s5 + $0x84] ss:$16 sps:$4 sm:$0xff]  }
 0x173   :  { %1054 = vst [vmem:[#allocation2 + $0x48] sm:$0xf] %v1022_v31  ;;  %1056 = vst [vmem:[#allocation2 + $0x58] sm:$0xf] %v1024_v54  ;;  %v1118_v43 = vpack.c.bf16 %v1086_v59, %v1086_v59  ;;  %v1120_v34 = vpack.c.bf16 %v1088_v32, %v1088_v32  ;;  %2189 = vmatpush1.bf16.msra.mxu0 %v6809_v39  ;;  %2242 = vmatpush1.bf16.msra.mxu1 %v6812_v40  ;;  %v6820_v25 = vld [vmem:[%s9672_s5 + $0x8c] ss:$16 sps:$4 sm:$0xff]  }
 0x174   :  { %v1181_v37 = vrot.slane %v1117_v33, 4  ;;  %v1183_v38 = vrot.slane %v1119_v42, 4  ;;  %v6815_v54 = vld [vmem:[%s9672_s5 + $0x80] ss:$16 sps:$4 sm:$0xff]   ;;  %v6818_v59 = vld [vmem:[%s9672_s5 + $0x88] ss:$16 sps:$4 sm:$0xff]   ;;  %2190 = vmatprep.subr.bf16.mxu0 %v6817_v24  ;;  %2243 = vmatprep.subr.bf16.mxu1 %v6820_v25 }
 0x175   :  { %v1182_v41 = vrot.slane %v1118_v43, 4  ;;  %v1184_v11 = vrot.slane %v1120_v34, 4  ;;  %v663_v12 = vpop.f32.mrb[28].mxu0  ;;  %v856_v13 = vpop.f32.mrb[28].mxu1  ;;  %v6824_v39 = vld [vmem:[%s9672_s5 + $0xa8] ss:$16 sps:$4 sm:$0xff]  }
 0x176   :  { %1245 = vst [vmem:[#allocation2 + $0x40] sm:$0xf0] %v1181_v37  ;;  %1247 = vst [vmem:[#allocation2 + $0x50] sm:$0xf0] %v1183_v38  ;;  %v1277_v14 = vadd.f32 %v663_v12, %v7969_v44  ;;  %v1279_v15 = vadd.f32 %v856_v13, %v7971_v45  ;;  %v665_v16 = vpop.f32.mrb[29].mxu0  ;;  %v858_v17 = vpop.f32.mrb[29].mxu1 }
 0x177   :  { %1246 = vst [vmem:[#allocation2 + $0x48] sm:$0xf0] %v1182_v41  ;;  %1248 = vst [vmem:[#allocation2 + $0x58] sm:$0xf0] %v1184_v11  ;;  %v1278_v20 = vadd.f32 %v665_v16, %v7973_v46  ;;  %v1280_v21 = vadd.f32 %v858_v17, %v7975_v47  ;;  %v667_v22 = vpop.f32.mrb[30].mxu0  ;;  %v860_v23 = vpop.f32.mrb[30].mxu1  ;;  %2191 = vmatpush1.bf16.msra.mxu0 %v6815_v54  ;;  %2244 = vmatpush1.bf16.msra.mxu1 %v6818_v59 }
 0x178   :  { %v1309_v26 = vpack.c.bf16 %v1277_v14, %v1277_v14  ;;  %v1311_v27 = vpack.c.bf16 %v1279_v15, %v1279_v15  ;;  %v1373_v28 = vadd.f32 %v667_v22, %v7969_v44  ;;  %v1375_v29 = vadd.f32 %v860_v23, %v7971_v45  ;;  %v669_v30 = vpop.f32.mrb[31].mxu0  ;;  %v862_v31 = vpop.f32.mrb[31].mxu1  ;;  %v6821_v38 = vld [vmem:[%s9672_s5 + $0xa0] ss:$16 sps:$4 sm:$0xff]   ;;  %2192 = vmatprep.subr.bf16.mxu0 %v6823_v36  ;;  %v6829_v23 = vld [vmem:[%s9672_s5 + $0xc4] ss:$16 sps:$4 sm:$0xff]  }
 0x179   :  { %v1310_v32 = vpack.c.bf16 %v1278_v20, %v1278_v20  ;;  %v1312_v33 = vpack.c.bf16 %v1280_v21, %v1280_v21  ;;  %v1374_v42 = vadd.f32 %v669_v30, %v7973_v46  ;;  %v1376_v43 = vadd.f32 %v862_v31, %v7975_v47  ;;  %v6826_v46 = vld [vmem:[%s9672_s5 + $0xac] ss:$16 sps:$4 sm:$0xff]   ;;  %v6827_v31 = vld [vmem:[%s9672_s5 + $0xc0] ss:$16 sps:$4 sm:$0xff]   ;;  %v6830_v54 = vld [vmem:[%s9672_s5 + $0xc8] ss:$16 sps:$4 sm:$0xff]  }
 0x17a   :  { %1341 = vst [vmem:[#allocation2 + $0x60] sm:$0xf] %v1309_v26  ;;  %1343 = vst [vmem:[#allocation2 + $0x70] sm:$0xf] %v1311_v27  ;;  %v1405_v44 = vpack.c.bf16 %v1373_v28, %v1373_v28  ;;  %v1407_v45 = vpack.c.bf16 %v1375_v29, %v1375_v29  ;;  %2245 = vmatprep.subr.bf16.mxu1 %v6826_v46  ;;  %v6832_v24 = vld [vmem:[%s9672_s5 + $0xcc] ss:$16 sps:$4 sm:$0xff]  }
 0x17b   :  { %1342 = vst [vmem:[#allocation2 + $0x68] sm:$0xf] %v1310_v32  ;;  %1344 = vst [vmem:[#allocation2 + $0x78] sm:$0xf] %v1312_v33  ;;  %v1406_v34 = vpack.c.bf16 %v1374_v42, %v1374_v42  ;;  %v1408_v35 = vpack.c.bf16 %v1376_v43, %v1376_v43  ;;  %2193 = vmatpush1.bf16.msra.mxu0 %v6821_v38  ;;  %2246 = vmatpush1.bf16.msra.mxu1 %v6824_v39  ;;  %v6838_v36 = vld [vmem:[%s9672_s5 + $0xec] ss:$16 sps:$4 sm:$0xff]  }
 0x17c   :  { %v1469_v47 = vrot.slane %v1405_v44, 4  ;;  %v1471_v37 = vrot.slane %v1407_v45, 4  ;;  %2194 = vmatprep.subr.bf16.mxu0 %v6829_v23  ;;  %2247 = vmatprep.subr.bf16.mxu1 %v6832_v24  ;;  %v6836_v38 = vld [vmem:[%s9672_s5 + $0xe8] ss:$16 sps:$4 sm:$0xff]  }
 0x17d   :  { %v1470_v40 = vrot.slane %v1406_v34, 4  ;;  %v1472_v41 = vrot.slane %v1408_v35, 4  ;;  %v673_v11 = vpop.f32.mrb[32].mxu0  ;;  %v866_v12 = vpop.f32.mrb[32].mxu1  ;;  %v6835_v35 = vld [vmem:[%s9672_s5 + $0xe4] ss:$16 sps:$4 sm:$0xff]  }
 0x17e   :  { %1533 = vst [vmem:[#allocation2 + $0x60] sm:$0xf0] %v1469_v47  ;;  %1535 = vst [vmem:[#allocation2 + $0x70] sm:$0xf0] %v1471_v37  ;;  %v993_v13 = vadd.f32 %v673_v11, %v7979_v48  ;;  %v995_v14 = vadd.f32 %v866_v12, %v7981_v49  ;;  %v675_v15 = vpop.f32.mrb[33].mxu0  ;;  %v868_v16 = vpop.f32.mrb[33].mxu1 }
 0x17f   :  { %1534 = vst [vmem:[#allocation2 + $0x68] sm:$0xf0] %v1470_v40  ;;  %1536 = vst [vmem:[#allocation2 + $0x78] sm:$0xf0] %v1472_v41  ;;  %v994_v17 = vadd.f32 %v675_v15, %v7985_v50  ;;  %v996_v20 = vadd.f32 %v868_v16, %v7987_v51  ;;  %v677_v21 = vpop.f32.mrb[34].mxu0  ;;  %v870_v22 = vpop.f32.mrb[34].mxu1  ;;  %2195 = vmatpush1.bf16.msra.mxu0 %v6827_v31  ;;  %2248 = vmatpush1.bf16.msra.mxu1 %v6830_v54 }
 0x180   :  { %v1025_v25 = vpack.c.bf16 %v993_v13, %v993_v13  ;;  %v1027_v26 = vpack.c.bf16 %v995_v14, %v995_v14  ;;  %v1089_v27 = vadd.f32 %v677_v21, %v7979_v48  ;;  %v1091_v28 = vadd.f32 %v870_v22, %v7981_v49  ;;  %v679_v29 = vpop.f32.mrb[35].mxu0  ;;  %v872_v30 = vpop.f32.mrb[35].mxu1  ;;  %v6833_v37 = vld [vmem:[%s9672_s5 + $0xe0] ss:$16 sps:$4 sm:$0xff]   ;;  %2196 = vmatprep.subr.bf16.mxu0 %v6835_v35 }
 0x181   :  { %v1026_v59 = vpack.c.bf16 %v994_v17, %v994_v17  ;;  %v1028_v32 = vpack.c.bf16 %v996_v20, %v996_v20  ;;  %v1090_v33 = vadd.f32 %v679_v29, %v7985_v50  ;;  %v1092_v42 = vadd.f32 %v872_v30, %v7987_v51  ;;  %2249 = vmatprep.subr.bf16.mxu1 %v6838_v36 }
 0x182   :  { %1057 = vst [vmem:[#allocation2 + $0x80] sm:$0xf] %v1025_v25  ;;  %1059 = vst [vmem:[#allocation2 + $0x90] sm:$0xf] %v1027_v26  ;;  %v1121_v43 = vpack.c.bf16 %v1089_v27, %v1089_v27  ;;  %v1123_v44 = vpack.c.bf16 %v1091_v28, %v1091_v28 }
 0x183   :  { %1058 = vst [vmem:[#allocation2 + $0x88] sm:$0xf] %v1026_v59  ;;  %1060 = vst [vmem:[#allocation2 + $0x98] sm:$0xf] %v1028_v32  ;;  %v1122_v45 = vpack.c.bf16 %v1090_v33, %v1090_v33  ;;  %v1124_v34 = vpack.c.bf16 %v1092_v42, %v1092_v42  ;;  %2197 = vmatpush1.bf16.msra.mxu0 %v6833_v37  ;;  %2250 = vmatpush1.bf16.msra.mxu1 %v6836_v38 }
 0x184   :  { %v1185_v46 = vrot.slane %v1121_v43, 4  ;;  %v1187_v47 = vrot.slane %v1123_v44, 4  ;;  %2588 = vmatprep.subr.bf16.mxu0 %v8060_v18  ;;  %2641 = vmatprep.subr.bf16.mxu1 %v8065_v19 }
 0x185   :  { %v1186_v39 = vrot.slane %v1122_v45, 4  ;;  %v1188_v40 = vrot.slane %v1124_v34, 4  ;;  %v683_v41 = vpop.f32.mrb[36].mxu0  ;;  %v876_v11 = vpop.f32.mrb[36].mxu1 }
 0x186   :  { %1249 = vst [vmem:[#allocation2 + $0x80] sm:$0xf0] %v1185_v46  ;;  %1251 = vst [vmem:[#allocation2 + $0x90] sm:$0xf0] %v1187_v47  ;;  %v1281_v12 = vadd.f32 %v683_v41, %v7979_v48  ;;  %v1283_v13 = vadd.f32 %v876_v11, %v7981_v49  ;;  %v685_v14 = vpop.f32.mrb[37].mxu0  ;;  %v878_v15 = vpop.f32.mrb[37].mxu1 }
 0x187   :  { %1250 = vst [vmem:[#allocation2 + $0x88] sm:$0xf0] %v1186_v39  ;;  %1252 = vst [vmem:[#allocation2 + $0x98] sm:$0xf0] %v1188_v40  ;;  %v1282_v16 = vadd.f32 %v685_v14, %v7985_v50  ;;  %v1284_v17 = vadd.f32 %v878_v15, %v7987_v51  ;;  %v687_v20 = vpop.f32.mrb[38].mxu0  ;;  %v880_v21 = vpop.f32.mrb[38].mxu1 }
 0x188   :  { %v1313_v22 = vpack.c.bf16 %v1281_v12, %v1281_v12  ;;  %v1315_v23 = vpack.c.bf16 %v1283_v13, %v1283_v13  ;;  %v1377_v24 = vadd.f32 %v687_v20, %v7979_v48  ;;  %v1379_v25 = vadd.f32 %v880_v21, %v7981_v49  ;;  %v689_v26 = vpop.f32.mrb[39].mxu0  ;;  %v882_v27 = vpop.f32.mrb[39].mxu1 }
 0x189   :  { %v1314_v28 = vpack.c.bf16 %v1282_v16, %v1282_v16  ;;  %v1316_v29 = vpack.c.bf16 %v1284_v17, %v1284_v17  ;;  %v1378_v30 = vadd.f32 %v689_v26, %v7985_v50  ;;  %v1380_v31 = vadd.f32 %v882_v27, %v7987_v51 }
 0x18a   :  { %1345 = vst [vmem:[#allocation2 + $0xa0] sm:$0xf] %v1313_v22  ;;  %1347 = vst [vmem:[#allocation2 + $0xb0] sm:$0xf] %v1315_v23  ;;  %v1409_v54 = vpack.c.bf16 %v1377_v24, %v1377_v24  ;;  %v1411_v18 = vpack.c.bf16 %v1379_v25, %v1379_v25 }
 0x18b   :  { %1346 = vst [vmem:[#allocation2 + $0xa8] sm:$0xf] %v1314_v28  ;;  %1348 = vst [vmem:[#allocation2 + $0xb8] sm:$0xf] %v1316_v29  ;;  %v1410_v59 = vpack.c.bf16 %v1378_v30, %v1378_v30  ;;  %v1412_v48 = vpack.c.bf16 %v1380_v31, %v1380_v31 }
 0x18c   :  { %v1473_v32 = vrot.slane %v1409_v54, 4  ;;  %v1475_v49 = vrot.slane %v1411_v18, 4 }
 0x18d   :  { %v1474_v33 = vrot.slane %v1410_v59, 4  ;;  %v1476_v42 = vrot.slane %v1412_v48, 4  ;;  %v693_v43 = vpop.f32.mrb[40].mxu0  ;;  %v886_v19 = vpop.f32.mrb[40].mxu1 }
 0x18e   :  { %1537 = vst [vmem:[#allocation2 + $0xa0] sm:$0xf0] %v1473_v32  ;;  %1539 = vst [vmem:[#allocation2 + $0xb0] sm:$0xf0] %v1475_v49  ;;  %v997_v50 = vadd.f32 %v693_v43, %v7989_v52  ;;  %v999_v51 = vadd.f32 %v886_v19, %v7991_v53  ;;  %v695_v44 = vpop.f32.mrb[41].mxu0  ;;  %v888_v45 = vpop.f32.mrb[41].mxu1 }
 0x18f   :  { %1538 = vst [vmem:[#allocation2 + $0xa8] sm:$0xf0] %v1474_v33  ;;  %1540 = vst [vmem:[#allocation2 + $0xb8] sm:$0xf0] %v1476_v42  ;;  %v998_v34 = vadd.f32 %v695_v44, %v7993_v55  ;;  %v1000_v35 = vadd.f32 %v888_v45, %v7995_v56  ;;  %v697_v36 = vpop.f32.mrb[42].mxu0  ;;  %v890_v46 = vpop.f32.mrb[42].mxu1 }
 0x190   :  { %v1029_v47 = vpack.c.bf16 %v997_v50, %v997_v50  ;;  %v1031_v37 = vpack.c.bf16 %v999_v51, %v999_v51  ;;  %v1093_v38 = vadd.f32 %v697_v36, %v7989_v52  ;;  %v1095_v39 = vadd.f32 %v890_v46, %v7991_v53  ;;  %v699_v40 = vpop.f32.mrb[43].mxu0  ;;  %v892_v41 = vpop.f32.mrb[43].mxu1 }
 0x191   :  { %v1030_v11 = vpack.c.bf16 %v998_v34, %v998_v34  ;;  %v1032_v12 = vpack.c.bf16 %v1000_v35, %v1000_v35  ;;  %v1094_v13 = vadd.f32 %v699_v40, %v7993_v55  ;;  %v1096_v14 = vadd.f32 %v892_v41, %v7995_v56 }
 0x192   :  { %1061 = vst [vmem:[#allocation2 + $0xc0] sm:$0xf] %v1029_v47  ;;  %1063 = vst [vmem:[#allocation2 + $0xd0] sm:$0xf] %v1031_v37  ;;  %v1125_v15 = vpack.c.bf16 %v1093_v38, %v1093_v38  ;;  %v1127_v16 = vpack.c.bf16 %v1095_v39, %v1095_v39 }
 0x193   :  { %1062 = vst [vmem:[#allocation2 + $0xc8] sm:$0xf] %v1030_v11  ;;  %1064 = vst [vmem:[#allocation2 + $0xd8] sm:$0xf] %v1032_v12  ;;  %v1126_v17 = vpack.c.bf16 %v1094_v13, %v1094_v13  ;;  %v1128_v20 = vpack.c.bf16 %v1096_v14, %v1096_v14 }
 0x194   :  { %v1189_v21 = vrot.slane %v1125_v15, 4  ;;  %v1191_v22 = vrot.slane %v1127_v16, 4 }
 0x195   :  { %v1190_v23 = vrot.slane %v1126_v17, 4  ;;  %v1192_v24 = vrot.slane %v1128_v20, 4  ;;  %v703_v25 = vpop.f32.mrb[44].mxu0  ;;  %v896_v26 = vpop.f32.mrb[44].mxu1 }
 0x196   :  { %1253 = vst [vmem:[#allocation2 + $0xc0] sm:$0xf0] %v1189_v21  ;;  %1255 = vst [vmem:[#allocation2 + $0xd0] sm:$0xf0] %v1191_v22  ;;  %v1285_v27 = vadd.f32 %v703_v25, %v7989_v52  ;;  %v1287_v28 = vadd.f32 %v896_v26, %v7991_v53  ;;  %v705_v29 = vpop.f32.mrb[45].mxu0  ;;  %v898_v30 = vpop.f32.mrb[45].mxu1 }
 0x197   :  { %1254 = vst [vmem:[#allocation2 + $0xc8] sm:$0xf0] %v1190_v23  ;;  %1256 = vst [vmem:[#allocation2 + $0xd8] sm:$0xf0] %v1192_v24  ;;  %v1286_v31 = vadd.f32 %v705_v29, %v7993_v55  ;;  %v1288_v54 = vadd.f32 %v898_v30, %v7995_v56  ;;  %v707_v18 = vpop.f32.mrb[46].mxu0  ;;  %v900_v59 = vpop.f32.mrb[46].mxu1 }
 0x198   :  { %v1317_v48 = vpack.c.bf16 %v1285_v27, %v1285_v27  ;;  %v1319_v32 = vpack.c.bf16 %v1287_v28, %v1287_v28  ;;  %v1381_v49 = vadd.f32 %v707_v18, %v7989_v52  ;;  %v1383_v33 = vadd.f32 %v900_v59, %v7991_v53  ;;  %v709_v42 = vpop.f32.mrb[47].mxu0  ;;  %v902_v43 = vpop.f32.mrb[47].mxu1 }
 0x199   :  { %v1318_v19 = vpack.c.bf16 %v1286_v31, %v1286_v31  ;;  %v1320_v50 = vpack.c.bf16 %v1288_v54, %v1288_v54  ;;  %v1382_v51 = vadd.f32 %v709_v42, %v7993_v55  ;;  %v1384_v44 = vadd.f32 %v902_v43, %v7995_v56 }
 0x19a   :  { %1349 = vst [vmem:[#allocation2 + $0xe0] sm:$0xf] %v1317_v48  ;;  %1351 = vst [vmem:[#allocation2 + $0xf0] sm:$0xf] %v1319_v32  ;;  %v1413_v45 = vpack.c.bf16 %v1381_v49, %v1381_v49  ;;  %v1415_v34 = vpack.c.bf16 %v1383_v33, %v1383_v33 }
 0x19b   :  { %1350 = vst [vmem:[#allocation2 + $0xe8] sm:$0xf] %v1318_v19  ;;  %1352 = vst [vmem:[#allocation2 + $0xf8] sm:$0xf] %v1320_v50  ;;  %v1414_v35 = vpack.c.bf16 %v1382_v51, %v1382_v51  ;;  %v1416_v36 = vpack.c.bf16 %v1384_v44, %v1384_v44 }
 0x19c   :  { %v1477_v46 = vrot.slane %v1413_v45, 4  ;;  %v1479_v52 = vrot.slane %v1415_v34, 4 }
 0x19d   :  { %v1478_v47 = vrot.slane %v1414_v35, 4  ;;  %v1480_v53 = vrot.slane %v1416_v36, 4  ;;  %v713_v37 = vpop.f32.mrb[48].mxu0  ;;  %v906_v38 = vpop.f32.mrb[48].mxu1 }
 0x19e   :  { %1541 = vst [vmem:[#allocation2 + $0xe0] sm:$0xf0] %v1477_v46  ;;  %1543 = vst [vmem:[#allocation2 + $0xf0] sm:$0xf0] %v1479_v52  ;;  %v1001_v55 = vadd.f32 %v713_v37, %v7999_v57  ;;  %v1003_v56 = vadd.f32 %v906_v38, %v8001_v58  ;;  %v715_v39 = vpop.f32.mrb[49].mxu0  ;;  %v908_v40 = vpop.f32.mrb[49].mxu1 }
 0x19f   :  { %1542 = vst [vmem:[#allocation2 + $0xe8] sm:$0xf0] %v1478_v47  ;;  %1544 = vst [vmem:[#allocation2 + $0xf8] sm:$0xf0] %v1480_v53  ;;  %v1002_v41 = vadd.f32 %v715_v39, %v8005_v60  ;;  %v1004_v11 = vadd.f32 %v908_v40, %v8007_v61  ;;  %v717_v12 = vpop.f32.mrb[50].mxu0  ;;  %v910_v13 = vpop.f32.mrb[50].mxu1 }
 0x1a0   :  { %v1033_v14 = vpack.c.bf16 %v1001_v55, %v1001_v55  ;;  %v1035_v15 = vpack.c.bf16 %v1003_v56, %v1003_v56  ;;  %v1097_v16 = vadd.f32 %v717_v12, %v7999_v57  ;;  %v1099_v17 = vadd.f32 %v910_v13, %v8001_v58  ;;  %v719_v20 = vpop.f32.mrb[51].mxu0  ;;  %v912_v21 = vpop.f32.mrb[51].mxu1 }
 0x1a1   :  { %v1034_v22 = vpack.c.bf16 %v1002_v41, %v1002_v41  ;;  %v1036_v23 = vpack.c.bf16 %v1004_v11, %v1004_v11  ;;  %v1098_v24 = vadd.f32 %v719_v20, %v8005_v60  ;;  %v1100_v25 = vadd.f32 %v912_v21, %v8007_v61 }
 0x1a2   :  { %1065 = vst [vmem:[#allocation2 + $0x100] sm:$0xf] %v1033_v14  ;;  %1067 = vst [vmem:[#allocation2 + $0x110] sm:$0xf] %v1035_v15  ;;  %v1129_v26 = vpack.c.bf16 %v1097_v16, %v1097_v16  ;;  %v1131_v27 = vpack.c.bf16 %v1099_v17, %v1099_v17 }
 0x1a3   :  { %1066 = vst [vmem:[#allocation2 + $0x108] sm:$0xf] %v1034_v22  ;;  %1068 = vst [vmem:[#allocation2 + $0x118] sm:$0xf] %v1036_v23  ;;  %v1130_v28 = vpack.c.bf16 %v1098_v24, %v1098_v24  ;;  %v1132_v29 = vpack.c.bf16 %v1100_v25, %v1100_v25 }
 0x1a4   :  { %v1193_v30 = vrot.slane %v1129_v26, 4  ;;  %v1195_v31 = vrot.slane %v1131_v27, 4 }
 0x1a5   :  { %v1194_v54 = vrot.slane %v1130_v28, 4  ;;  %v1196_v18 = vrot.slane %v1132_v29, 4  ;;  %v723_v59 = vpop.f32.mrb[52].mxu0  ;;  %v916_v48 = vpop.f32.mrb[52].mxu1 }
 0x1a6   :  { %1257 = vst [vmem:[#allocation2 + $0x100] sm:$0xf0] %v1193_v30  ;;  %1259 = vst [vmem:[#allocation2 + $0x110] sm:$0xf0] %v1195_v31  ;;  %v1289_v32 = vadd.f32 %v723_v59, %v7999_v57  ;;  %v1291_v49 = vadd.f32 %v916_v48, %v8001_v58  ;;  %v725_v33 = vpop.f32.mrb[53].mxu0  ;;  %v918_v42 = vpop.f32.mrb[53].mxu1 }
 0x1a7   :  { %1258 = vst [vmem:[#allocation2 + $0x108] sm:$0xf0] %v1194_v54  ;;  %1260 = vst [vmem:[#allocation2 + $0x118] sm:$0xf0] %v1196_v18  ;;  %v1290_v43 = vadd.f32 %v725_v33, %v8005_v60  ;;  %v1292_v19 = vadd.f32 %v918_v42, %v8007_v61  ;;  %v727_v50 = vpop.f32.mrb[54].mxu0  ;;  %v920_v51 = vpop.f32.mrb[54].mxu1 }
 0x1a8   :  { %v1321_v44 = vpack.c.bf16 %v1289_v32, %v1289_v32  ;;  %v1323_v45 = vpack.c.bf16 %v1291_v49, %v1291_v49  ;;  %v1385_v34 = vadd.f32 %v727_v50, %v7999_v57  ;;  %v1387_v35 = vadd.f32 %v920_v51, %v8001_v58  ;;  %v729_v36 = vpop.f32.mrb[55].mxu0  ;;  %v922_v46 = vpop.f32.mrb[55].mxu1 }
 0x1a9   :  { %v1322_v52 = vpack.c.bf16 %v1290_v43, %v1290_v43  ;;  %v1324_v47 = vpack.c.bf16 %v1292_v19, %v1292_v19  ;;  %v1386_v53 = vadd.f32 %v729_v36, %v8005_v60  ;;  %v1388_v37 = vadd.f32 %v922_v46, %v8007_v61 }
 0x1aa   :  { %1353 = vst [vmem:[#allocation2 + $0x120] sm:$0xf] %v1321_v44  ;;  %1355 = vst [vmem:[#allocation2 + $0x130] sm:$0xf] %v1323_v45  ;;  %v1417_v38 = vpack.c.bf16 %v1385_v34, %v1385_v34  ;;  %v1419_v55 = vpack.c.bf16 %v1387_v35, %v1387_v35 }
 0x1ab   :  { %1354 = vst [vmem:[#allocation2 + $0x128] sm:$0xf] %v1322_v52  ;;  %1356 = vst [vmem:[#allocation2 + $0x138] sm:$0xf] %v1324_v47  ;;  %v1418_v56 = vpack.c.bf16 %v1386_v53, %v1386_v53  ;;  %v1420_v39 = vpack.c.bf16 %v1388_v37, %v1388_v37 }
 0x1ac   :  { %v1481_v40 = vrot.slane %v1417_v38, 4  ;;  %v1483_v57 = vrot.slane %v1419_v55, 4 }
 0x1ad   :  { %v1482_v41 = vrot.slane %v1418_v56, 4  ;;  %v1484_v58 = vrot.slane %v1420_v39, 4  ;;  %v733_v11 = vpop.f32.mrb[56].mxu0  ;;  %v926_v12 = vpop.f32.mrb[56].mxu1 }
 0x1ae   :  { %1545 = vst [vmem:[#allocation2 + $0x120] sm:$0xf0] %v1481_v40  ;;  %1547 = vst [vmem:[#allocation2 + $0x130] sm:$0xf0] %v1483_v57  ;;  %v1005_v60 = vadd.f32 %v733_v11, %v8009_v62  ;;  %v1007_v61 = vadd.f32 %v926_v12, %v8011_v63  ;;  %v735_v13 = vpop.f32.mrb[57].mxu0  ;;  %v928_v14 = vpop.f32.mrb[57].mxu1 }
 0x1af   :  { %1546 = vst [vmem:[#allocation2 + $0x128] sm:$0xf0] %v1482_v41  ;;  %1548 = vst [vmem:[#allocation2 + $0x138] sm:$0xf0] %v1484_v58  ;;  %v1006_v15 = vadd.f32 %v735_v13, %v8013_v0  ;;  %v1008_v16 = vadd.f32 %v928_v14, %v8015_v1  ;;  %v737_v17 = vpop.f32.mrb[58].mxu0  ;;  %v930_v20 = vpop.f32.mrb[58].mxu1 }
 0x1b0   :  { %v1037_v21 = vpack.c.bf16 %v1005_v60, %v1005_v60  ;;  %v1039_v22 = vpack.c.bf16 %v1007_v61, %v1007_v61  ;;  %v1101_v23 = vadd.f32 %v737_v17, %v8009_v62  ;;  %v1103_v24 = vadd.f32 %v930_v20, %v8011_v63  ;;  %v739_v25 = vpop.f32.mrb[59].mxu0  ;;  %v932_v26 = vpop.f32.mrb[59].mxu1 }
 0x1b1   :  { %v1038_v27 = vpack.c.bf16 %v1006_v15, %v1006_v15  ;;  %v1040_v28 = vpack.c.bf16 %v1008_v16, %v1008_v16  ;;  %v1102_v29 = vadd.f32 %v739_v25, %v8013_v0  ;;  %v1104_v30 = vadd.f32 %v932_v26, %v8015_v1 }
 0x1b2   :  { %1069 = vst [vmem:[#allocation2 + $0x140] sm:$0xf] %v1037_v21  ;;  %1071 = vst [vmem:[#allocation2 + $0x150] sm:$0xf] %v1039_v22  ;;  %v1133_v31 = vpack.c.bf16 %v1101_v23, %v1101_v23  ;;  %v1135_v54 = vpack.c.bf16 %v1103_v24, %v1103_v24 }
 0x1b3   :  { %1070 = vst [vmem:[#allocation2 + $0x148] sm:$0xf] %v1038_v27  ;;  %1072 = vst [vmem:[#allocation2 + $0x158] sm:$0xf] %v1040_v28  ;;  %v1134_v18 = vpack.c.bf16 %v1102_v29, %v1102_v29  ;;  %v1136_v59 = vpack.c.bf16 %v1104_v30, %v1104_v30 }
 0x1b4   :  { %v1197_v48 = vrot.slane %v1133_v31, 4  ;;  %v1199_v32 = vrot.slane %v1135_v54, 4 }
 0x1b5   :  { %v1198_v49 = vrot.slane %v1134_v18, 4  ;;  %v1200_v33 = vrot.slane %v1136_v59, 4  ;;  %v743_v42 = vpop.f32.mrb[60].mxu0  ;;  %v936_v43 = vpop.f32.mrb[60].mxu1 }
 0x1b6   :  { %1261 = vst [vmem:[#allocation2 + $0x140] sm:$0xf0] %v1197_v48  ;;  %1263 = vst [vmem:[#allocation2 + $0x150] sm:$0xf0] %v1199_v32  ;;  %v1293_v19 = vadd.f32 %v743_v42, %v8009_v62  ;;  %v1295_v50 = vadd.f32 %v936_v43, %v8011_v63  ;;  %v745_v51 = vpop.f32.mrb[61].mxu0  ;;  %v938_v44 = vpop.f32.mrb[61].mxu1 }
 0x1b7   :  { %1262 = vst [vmem:[#allocation2 + $0x148] sm:$0xf0] %v1198_v49  ;;  %1264 = vst [vmem:[#allocation2 + $0x158] sm:$0xf0] %v1200_v33  ;;  %v1294_v45 = vadd.f32 %v745_v51, %v8013_v0  ;;  %v1296_v34 = vadd.f32 %v938_v44, %v8015_v1  ;;  %v747_v35 = vpop.f32.mrb[62].mxu0  ;;  %v940_v36 = vpop.f32.mrb[62].mxu1 }
 0x1b8   :  { %v1325_v46 = vpack.c.bf16 %v1293_v19, %v1293_v19  ;;  %v1327_v52 = vpack.c.bf16 %v1295_v50, %v1295_v50  ;;  %v1389_v47 = vadd.f32 %v747_v35, %v8009_v62  ;;  %v1391_v53 = vadd.f32 %v940_v36, %v8011_v63  ;;  %v749_v37 = vpop.f32.mrb[63].mxu0  ;;  %v942_v38 = vpop.f32.mrb[63].mxu1 }
 0x1b9   :  { %v1326_v55 = vpack.c.bf16 %v1294_v45, %v1294_v45  ;;  %v1328_v56 = vpack.c.bf16 %v1296_v34, %v1296_v34  ;;  %v1390_v39 = vadd.f32 %v749_v37, %v8013_v0  ;;  %v1392_v40 = vadd.f32 %v942_v38, %v8015_v1 }
 0x1ba   :  { %1357 = vst [vmem:[#allocation2 + $0x160] sm:$0xf] %v1325_v46  ;;  %1359 = vst [vmem:[#allocation2 + $0x170] sm:$0xf] %v1327_v52  ;;  %v1421_v57 = vpack.c.bf16 %v1389_v47, %v1389_v47  ;;  %v1423_v41 = vpack.c.bf16 %v1391_v53, %v1391_v53 }
 0x1bb   :  { %1358 = vst [vmem:[#allocation2 + $0x168] sm:$0xf] %v1326_v55  ;;  %1360 = vst [vmem:[#allocation2 + $0x178] sm:$0xf] %v1328_v56  ;;  %v1422_v58 = vpack.c.bf16 %v1390_v39, %v1390_v39  ;;  %v1424_v11 = vpack.c.bf16 %v1392_v40, %v1392_v40 }
 0x1bc   :  { %v1485_v12 = vrot.slane %v1421_v57, 4  ;;  %v1487_v62 = vrot.slane %v1423_v41, 4 }
 0x1bd   :  { %v1486_v60 = vrot.slane %v1422_v58, 4  ;;  %v1488_v63 = vrot.slane %v1424_v11, 4  ;;  %v753_v61 = vpop.f32.mrb[64].mxu0  ;;  %v946_v13 = vpop.f32.mrb[64].mxu1 }
 0x1be   :  { %1549 = vst [vmem:[#allocation2 + $0x160] sm:$0xf0] %v1485_v12  ;;  %1551 = vst [vmem:[#allocation2 + $0x170] sm:$0xf0] %v1487_v62  ;;  %v1009_v0 = vadd.f32 %v753_v61, %v8019_v3  ;;  %v1011_v1 = vadd.f32 %v946_v13, %v8021_v4  ;;  %v755_v14 = vpop.f32.mrb[65].mxu0  ;;  %v948_v15 = vpop.f32.mrb[65].mxu1 }
 0x1bf   :  { %1550 = vst [vmem:[#allocation2 + $0x168] sm:$0xf0] %v1486_v60  ;;  %1552 = vst [vmem:[#allocation2 + $0x178] sm:$0xf0] %v1488_v63  ;;  %v1010_v16 = vadd.f32 %v755_v14, %v8025_v5  ;;  %v1012_v17 = vadd.f32 %v948_v15, %v8027_v6  ;;  %v757_v20 = vpop.f32.mrb[66].mxu0  ;;  %v950_v21 = vpop.f32.mrb[66].mxu1 }
 0x1c0   :  { %v1041_v22 = vpack.c.bf16 %v1009_v0, %v1009_v0  ;;  %v1043_v23 = vpack.c.bf16 %v1011_v1, %v1011_v1  ;;  %v1105_v24 = vadd.f32 %v757_v20, %v8019_v3  ;;  %v1107_v25 = vadd.f32 %v950_v21, %v8021_v4  ;;  %v759_v26 = vpop.f32.mrb[67].mxu0  ;;  %v952_v27 = vpop.f32.mrb[67].mxu1 }
 0x1c1   :  { %v1042_v28 = vpack.c.bf16 %v1010_v16, %v1010_v16  ;;  %v1044_v29 = vpack.c.bf16 %v1012_v17, %v1012_v17  ;;  %v1106_v30 = vadd.f32 %v759_v26, %v8025_v5  ;;  %v1108_v31 = vadd.f32 %v952_v27, %v8027_v6 }
 0x1c2   :  { %1073 = vst [vmem:[#allocation2 + $0x180] sm:$0xf] %v1041_v22  ;;  %1075 = vst [vmem:[#allocation2 + $0x190] sm:$0xf] %v1043_v23  ;;  %v1137_v54 = vpack.c.bf16 %v1105_v24, %v1105_v24  ;;  %v1139_v18 = vpack.c.bf16 %v1107_v25, %v1107_v25 }
 0x1c3   :  { %1074 = vst [vmem:[#allocation2 + $0x188] sm:$0xf] %v1042_v28  ;;  %1076 = vst [vmem:[#allocation2 + $0x198] sm:$0xf] %v1044_v29  ;;  %v1138_v59 = vpack.c.bf16 %v1106_v30, %v1106_v30  ;;  %v1140_v48 = vpack.c.bf16 %v1108_v31, %v1108_v31 }
 0x1c4   :  { %v1201_v32 = vrot.slane %v1137_v54, 4  ;;  %v1203_v49 = vrot.slane %v1139_v18, 4 }
 0x1c5   :  { %v1202_v33 = vrot.slane %v1138_v59, 4  ;;  %v1204_v42 = vrot.slane %v1140_v48, 4  ;;  %v763_v43 = vpop.f32.mrb[68].mxu0  ;;  %v956_v19 = vpop.f32.mrb[68].mxu1 }
 0x1c6   :  { %1265 = vst [vmem:[#allocation2 + $0x180] sm:$0xf0] %v1201_v32  ;;  %1267 = vst [vmem:[#allocation2 + $0x190] sm:$0xf0] %v1203_v49  ;;  %v1297_v50 = vadd.f32 %v763_v43, %v8019_v3  ;;  %v1299_v51 = vadd.f32 %v956_v19, %v8021_v4  ;;  %v765_v44 = vpop.f32.mrb[69].mxu0  ;;  %v958_v45 = vpop.f32.mrb[69].mxu1 }
 0x1c7   :  { %1266 = vst [vmem:[#allocation2 + $0x188] sm:$0xf0] %v1202_v33  ;;  %1268 = vst [vmem:[#allocation2 + $0x198] sm:$0xf0] %v1204_v42  ;;  %v1298_v34 = vadd.f32 %v765_v44, %v8025_v5  ;;  %v1300_v35 = vadd.f32 %v958_v45, %v8027_v6  ;;  %v767_v36 = vpop.f32.mrb[70].mxu0  ;;  %v960_v46 = vpop.f32.mrb[70].mxu1 }
 0x1c8   :  { %v1329_v52 = vpack.c.bf16 %v1297_v50, %v1297_v50  ;;  %v1331_v47 = vpack.c.bf16 %v1299_v51, %v1299_v51  ;;  %v1393_v53 = vadd.f32 %v767_v36, %v8019_v3  ;;  %v1395_v37 = vadd.f32 %v960_v46, %v8021_v4  ;;  %v769_v38 = vpop.f32.mrb[71].mxu0  ;;  %v962_v55 = vpop.f32.mrb[71].mxu1 }
 0x1c9   :  { %v1330_v56 = vpack.c.bf16 %v1298_v34, %v1298_v34  ;;  %v1332_v39 = vpack.c.bf16 %v1300_v35, %v1300_v35  ;;  %v1394_v40 = vadd.f32 %v769_v38, %v8025_v5  ;;  %v1396_v57 = vadd.f32 %v962_v55, %v8027_v6 }
 0x1ca   :  { %1361 = vst [vmem:[#allocation2 + $0x1a0] sm:$0xf] %v1329_v52  ;;  %1363 = vst [vmem:[#allocation2 + $0x1b0] sm:$0xf] %v1331_v47  ;;  %v1425_v41 = vpack.c.bf16 %v1393_v53, %v1393_v53  ;;  %v1427_v58 = vpack.c.bf16 %v1395_v37, %v1395_v37 }
 0x1cb   :  { %1362 = vst [vmem:[#allocation2 + $0x1a8] sm:$0xf] %v1330_v56  ;;  %1364 = vst [vmem:[#allocation2 + $0x1b8] sm:$0xf] %v1332_v39  ;;  %v1426_v11 = vpack.c.bf16 %v1394_v40, %v1394_v40  ;;  %v1428_v12 = vpack.c.bf16 %v1396_v57, %v1396_v57  ;;  %v1561_v39 = vld [vmem:[#allocation2] sm:$0xff] }
 0x1cc   :  { %v1489_v62 = vrot.slane %v1425_v41, 4  ;;  %v1491_v3 = vrot.slane %v1427_v58, 4  ;;  %v1563_v41 = vld [vmem:[#allocation2 + $0x10] sm:$0xff]  ;;  %v1562_v58 = vld [vmem:[#allocation2 + $0x8] sm:$0xff] }
 0x1cd   :  { %v1490_v60 = vrot.slane %v1426_v11, 4  ;;  %v1492_v4 = vrot.slane %v1428_v12, 4  ;;  %v773_v63 = vpop.f32.mrb[72].mxu0  ;;  %v966_v61 = vpop.f32.mrb[72].mxu1 }
 0x1ce   :  { %1553 = vst [vmem:[#allocation2 + $0x1a0] sm:$0xf0] %v1489_v62  ;;  %1555 = vst [vmem:[#allocation2 + $0x1b0] sm:$0xf0] %v1491_v3  ;;  %v1013_v5 = vadd.f32 %v773_v63, %v8029_v7  ;;  %v1015_v6 = vadd.f32 %v966_v61, %v8031_v8  ;;  %v775_v13 = vpop.f32.mrb[73].mxu0  ;;  %v968_v0 = vpop.f32.mrb[73].mxu1  ;;  %v1569_v62 = vunpack.c.l.bf16 %v1561_v39 }
 0x1cf   :  { %1554 = vst [vmem:[#allocation2 + $0x1a8] sm:$0xf0] %v1490_v60  ;;  %1556 = vst [vmem:[#allocation2 + $0x1b8] sm:$0xf0] %v1492_v4  ;;  %v1014_v1 = vadd.f32 %v775_v13, %v8033_v9  ;;  %v1016_v14 = vadd.f32 %v968_v0, %v8035_v10  ;;  %v777_v15 = vpop.f32.mrb[74].mxu0  ;;  %v970_v16 = vpop.f32.mrb[74].mxu1  ;;  %v1573_v13 = vunpack.c.h.bf16 %v1561_v39 }
 0x1d0   :  { %v1045_v17 = vpack.c.bf16 %v1013_v5, %v1013_v5  ;;  %v1047_v20 = vpack.c.bf16 %v1015_v6, %v1015_v6  ;;  %v1109_v21 = vadd.f32 %v777_v15, %v8029_v7  ;;  %v1111_v22 = vadd.f32 %v970_v16, %v8031_v8  ;;  %v779_v23 = vpop.f32.mrb[75].mxu0  ;;  %v972_v24 = vpop.f32.mrb[75].mxu1 }
 0x1d1   :  { %v1046_v25 = vpack.c.bf16 %v1014_v1, %v1014_v1  ;;  %v1048_v26 = vpack.c.bf16 %v1016_v14, %v1016_v14  ;;  %v1110_v27 = vadd.f32 %v779_v23, %v8033_v9  ;;  %v1112_v28 = vadd.f32 %v972_v24, %v8035_v10  ;;  %v1565_v23 = vld [vmem:[#allocation2 + $0x20] sm:$0xff] }
 0x1d2   :  { %1077 = vst [vmem:[#allocation2 + $0x1c0] sm:$0xf] %v1045_v17  ;;  %1079 = vst [vmem:[#allocation2 + $0x1d0] sm:$0xf] %v1047_v20  ;;  %v1141_v29 = vpack.c.bf16 %v1109_v21, %v1109_v21  ;;  %v1143_v30 = vpack.c.bf16 %v1111_v22, %v1111_v22  ;;  %v1574_v17 = vunpack.c.h.bf16 %v1562_v58  ;;  %v1575_v22 = vunpack.c.h.bf16 %v1563_v41 }
 0x1d3   :  { %1078 = vst [vmem:[#allocation2 + $0x1c8] sm:$0xf] %v1046_v25  ;;  %1080 = vst [vmem:[#allocation2 + $0x1d8] sm:$0xf] %v1048_v26  ;;  %v1142_v31 = vpack.c.bf16 %v1110_v27, %v1110_v27  ;;  %v1144_v54 = vpack.c.bf16 %v1112_v28, %v1112_v28  ;;  %v1567_v25 = vld [vmem:[#allocation2 + $0x30] sm:$0xff]  ;;  %v1566_v26 = vld [vmem:[#allocation2 + $0x28] sm:$0xff] }
 0x1d4   :  { %v1205_v18 = vrot.slane %v1141_v29, 4  ;;  %v1207_v59 = vrot.slane %v1143_v30, 4  ;;  %v1564_v28 = vld [vmem:[#allocation2 + $0x18] sm:$0xff]  ;;  %v1577_v29 = vunpack.c.l.bf16 %v1565_v23 }
 0x1d5   :  { %v1206_v48 = vrot.slane %v1142_v31, 4  ;;  %v1208_v32 = vrot.slane %v1144_v54, 4  ;;  %v783_v49 = vpop.f32.mrb[76].mxu0  ;;  %v976_v33 = vpop.f32.mrb[76].mxu1  ;;  %v1579_v31 = vunpack.c.l.bf16 %v1567_v25 }
 0x1d6   :  { %1269 = vst [vmem:[#allocation2 + $0x1c0] sm:$0xf0] %v1205_v18  ;;  %1271 = vst [vmem:[#allocation2 + $0x1d0] sm:$0xf0] %v1207_v59  ;;  %v1301_v42 = vadd.f32 %v783_v49, %v8029_v7  ;;  %v1303_v43 = vadd.f32 %v976_v33, %v8031_v8  ;;  %v785_v19 = vpop.f32.mrb[77].mxu0  ;;  %v978_v50 = vpop.f32.mrb[77].mxu1  ;;  %v1578_v18 = vunpack.c.l.bf16 %v1566_v26  ;;  %v1581_v49 = vunpack.c.h.bf16 %v1565_v23 }
 0x1d7   :  { %1270 = vst [vmem:[#allocation2 + $0x1c8] sm:$0xf0] %v1206_v48  ;;  %1272 = vst [vmem:[#allocation2 + $0x1d8] sm:$0xf0] %v1208_v32  ;;  %v1302_v51 = vadd.f32 %v785_v19, %v8033_v9  ;;  %v1304_v44 = vadd.f32 %v978_v50, %v8035_v10  ;;  %v787_v45 = vpop.f32.mrb[78].mxu0  ;;  %v980_v34 = vpop.f32.mrb[78].mxu1  ;;  %v1572_v33 = vunpack.c.l.bf16 %v1564_v28 }
 0x1d8   :  { %v1333_v35 = vpack.c.bf16 %v1301_v42, %v1301_v42  ;;  %v1335_v36 = vpack.c.bf16 %v1303_v43, %v1303_v43  ;;  %v1397_v46 = vadd.f32 %v787_v45, %v8029_v7  ;;  %v1399_v52 = vadd.f32 %v980_v34, %v8031_v8  ;;  %v789_v47 = vpop.f32.mrb[79].mxu0  ;;  %v982_v53 = vpop.f32.mrb[79].mxu1 }
 0x1d9   :  { %v1334_v37 = vpack.c.bf16 %v1302_v51, %v1302_v51  ;;  %v1336_v38 = vpack.c.bf16 %v1304_v44, %v1304_v44  ;;  %v1398_v55 = vadd.f32 %v789_v47, %v8033_v9  ;;  %v1400_v56 = vadd.f32 %v982_v53, %v8035_v10 }
 0x1da   :  { %1365 = vst [vmem:[#allocation2 + $0x1e0] sm:$0xf] %v1333_v35  ;;  %1367 = vst [vmem:[#allocation2 + $0x1f0] sm:$0xf] %v1335_v36  ;;  %v1429_v40 = vpack.c.bf16 %v1397_v46, %v1397_v46  ;;  %v1431_v57 = vpack.c.bf16 %v1399_v52, %v1399_v52  ;;  %v1571_v9 = vunpack.c.l.bf16 %v1563_v41  ;;  %v1570_v10 = vunpack.c.l.bf16 %v1562_v58 }
 0x1db   :  { %1366 = vst [vmem:[#allocation2 + $0x1e8] sm:$0xf] %v1334_v37  ;;  %1368 = vst [vmem:[#allocation2 + $0x1f8] sm:$0xf] %v1336_v38  ;;  %v1430_v7 = vpack.c.bf16 %v1398_v55, %v1398_v55  ;;  %v1432_v11 = vpack.c.bf16 %v1400_v56, %v1400_v56  ;;  %v1582_v44 = vunpack.c.h.bf16 %v1566_v26  ;;  %v1576_v36 = vunpack.c.h.bf16 %v1564_v28  ;;  %v1568_v38 = vld [vmem:[#allocation2 + $0x38] sm:$0xff] }
 0x1dc   :  { %v1493_v8 = vrot.slane %v1429_v40, 4  ;;  %v1495_v12 = vrot.slane %v1431_v57, 4  ;;  %v1583_v52 = vunpack.c.h.bf16 %v1567_v25  ;;  %v1580_v58 = vunpack.c.l.bf16 %v1568_v38 }
 0x1dd   :  { %v1494_v3 = vrot.slane %v1430_v7, 4  ;;  %v1496_v60 = vrot.slane %v1432_v11, 4  ;;  %v1811_v4 = vpop.f32.mrb[80].mxu0  ;;  %v1864_v63 = vpop.f32.mrb[80].mxu1 }
 0x1de   :  { %1557 = vst [vmem:[#allocation2 + $0x1e0] sm:$0xf0] %v1493_v8  ;;  %1559 = vst [vmem:[#allocation2 + $0x1f0] sm:$0xf0] %v1495_v12  ;;  %v1883_v61 = vadd.f32 %v1811_v4, %v1569_v62  ;;  %v1813_v5 = vpop.f32.mrb[81].mxu0  ;;  %v1866_v6 = vpop.f32.mrb[81].mxu1  ;;  %v1885_v0 = vadd.f32 %v1864_v63, %v1571_v9 }
 0x1df   :  { %1558 = vst [vmem:[#allocation2 + $0x1e8] sm:$0xf0] %v1494_v3  ;;  %1560 = vst [vmem:[#allocation2 + $0x1f8] sm:$0xf0] %v1496_v60  ;;  %v1884_v1 = vadd.f32 %v1813_v5, %v1570_v10  ;;  %v1815_v14 = vpop.f32.mrb[82].mxu0  ;;  %v1868_v15 = vpop.f32.mrb[82].mxu1  ;;  %v1886_v35 = vadd.f32 %v1866_v6, %v1572_v33  ;;  %v1584_v10 = vunpack.c.h.bf16 %v1568_v38 }
 0x1e0   :  { %6959 = vtanh.f32 %v1883_v61  ;;  %v1887_v16 = vadd.f32 %v1815_v14, %v1573_v13  ;;  %v1817_v20 = vpop.f32.mrb[83].mxu0  ;;  %v1870_v21 = vpop.f32.mrb[83].mxu1  ;;  %v1889_v27 = vadd.f32 %v1868_v15, %v1575_v22  ;;  %v8310_v38 = vld [vmem:[%s9672_s5 + $0x8] ss:$16 sps:$4 sm:$0xff]  }
 0x1e1   :  { %6961 = vtanh.f32 %v1884_v1  ;;  %v1888_v24 = vadd.f32 %v1817_v20, %v1574_v17  ;;  %v1890_v37 = vadd.f32 %v1870_v21, %v1576_v36 }
 0x1e2   :  { %6963 = vtanh.f32 %v1885_v0 }
 0x1e3   :  { %6965 = vtanh.f32 %v1887_v16 }
 0x1e4   :  { %6967 = vtanh.f32 %v1888_v24 }
 0x1e5   :  { %v1821_v30 = vpop.f32.mrb[84].mxu0  ;;  %v1874_v54 = vpop.f32.mrb[84].mxu1  ;;  %6969 = vtanh.f32 %v1889_v27 }
 0x1e6   :  { %v1891_v59 = vadd.f32 %v1821_v30, %v1577_v29  ;;  %v1823_v48 = vpop.f32.mrb[85].mxu0  ;;  %v1876_v32 = vpop.f32.mrb[85].mxu1  ;;  %v1893_v42 = vadd.f32 %v1874_v54, %v1579_v31 }
 0x1e7   :  { %v1892_v43 = vadd.f32 %v1823_v48, %v1578_v18  ;;  %v1825_v19 = vpop.f32.mrb[86].mxu0  ;;  %v1878_v50 = vpop.f32.mrb[86].mxu1  ;;  %v1894_v9 = vadd.f32 %v1876_v32, %v1580_v58  ;;  %v8336_v58 = vld [vmem:[%s9672_s5 + $0x20] ss:$16 sps:$4 sm:$0xff]  }
 0x1e8   :  { %6971 = vtanh.f32 %v1891_v59  ;;  %v1895_v51 = vadd.f32 %v1825_v19, %v1581_v49  ;;  %v1827_v45 = vpop.f32.mrb[87].mxu0  ;;  %v1880_v34 = vpop.f32.mrb[87].mxu1  ;;  %v1897_v56 = vadd.f32 %v1878_v50, %v1583_v52 }
 0x1e9   :  { %6973 = vtanh.f32 %v1892_v43  ;;  %v1896_v47 = vadd.f32 %v1827_v45, %v1582_v44  ;;  %v1898_v1 = vadd.f32 %v1880_v34, %v1584_v10  ;;  %v8406_v10 = vld [vmem:[%s9672_s5 + $0x8c] ss:$16 sps:$4 sm:$0xff]  }
 0x1ea   :  { %v6960_v46 = vpop.eup %6959  ;;  %6975 = vtanh.f32 %v1893_v42 }
 0x1eb   :  { %v1915_v53 = vmul.f32 0.5, %v6960_v46  ;;  %v6962_v55 = vpop.eup %6961  ;;  %6977 = vtanh.f32 %v1895_v51 }
 0x1ec   :  { %v6964_v39 = vpop.eup %6963  ;;  %v1923_v57 = vmul.f32 0.5, %v6962_v55  ;;  %6979 = vtanh.f32 %v1886_v35 }
 0x1ed   :  { %v1919_v40 = vadd.f32 0.5, %v1915_v53  ;;  %v6966_v41 = vpop.eup %6965  ;;  %6981 = vtanh.f32 %v1896_v47 }
 0x1ee   :  { %v1927_v7 = vadd.f32 0.5, %v1923_v57  ;;  %v1916_v8 = vmul.f32 0.5, %v6966_v41  ;;  %6983 = vtanh.f32 %v1890_v37  ;;  %v6968_v12 = vpop.eup %6967  ;;  %v8304_v37 = vld [vmem:[%s9672_s5] ss:$16 sps:$4 sm:$0xff]  }
 0x1ef   :  { %v1943_v11 = vmul.f32 %v6964_v39, %v1919_v40  ;;  %6985 = vtanh.f32 %v1897_v56  ;;  %v6970_v62 = vpop.eup %6969  ;;  %v1924_v4 = vmul.f32 0.5, %v6968_v12  ;;  %v8316_v56 = vld [vmem:[%s9672_s5 + $0x24] ss:$16 sps:$4 sm:$0xff]   ;;  %v8322_v39 = vld [vmem:[%s9672_s5 + $0x2c] ss:$16 sps:$4 sm:$0xff]  }
 0x1f0   :  { %v1939_v3 = vmul.f32 0.0, %v1927_v7  ;;  %v1920_v60 = vadd.f32 0.5, %v1916_v8  ;;  %6987 = vtanh.f32 %v1894_v9  ;;  %v8342_v7 = vld [vmem:[%s9672_s5 + $0x28] ss:$16 sps:$4 sm:$0xff]   ;;  %v8354_v8 = vld [vmem:[%s9672_s5 + $0x4c] ss:$16 sps:$4 sm:$0xff]  }
 0x1f1   :  { %v1928_v5 = vadd.f32 0.5, %v1924_v4  ;;  %v8364_v12 = vld [vmem:[%s9672_s5 + $0x40] ss:$16 sps:$4 sm:$0xff]   ;;  %v8394_v9 = vld [vmem:[%s9672_s5 + $0x68] ss:$16 sps:$4 sm:$0xff]  }
 0x1f2   :  { %v6972_v63 = vpop.eup %6971  ;;  %v8277_v61 = vadd.f32 %v1943_v11, %v1939_v3  ;;  %v1944_v6 = vmul.f32 %v6970_v62, %v1920_v60  ;;  %v8348_v11 = vld [vmem:[%s9672_s5 + $0x44] ss:$16 sps:$4 sm:$0xff]   ;;  %v8370_v62 = vld [vmem:[%s9672_s5 + $0x48] ss:$16 sps:$4 sm:$0xff]   ;;  %v8382_v60 = vld [vmem:[%s9672_s5 + $0x6c] ss:$16 sps:$4 sm:$0xff]  }
 0x1f3   :  { %v1917_v13 = vmul.f32 0.5, %v6972_v63  ;;  %v6974_v0 = vpop.eup %6973  ;;  %v1940_v15 = vmul.f32 0.0, %v1928_v5  ;;  %v8376_v3 = vld [vmem:[%s9672_s5 + $0x64] ss:$16 sps:$4 sm:$0xff]   ;;  %v8388_v4 = vld [vmem:[%s9672_s5 + $0x60] ss:$16 sps:$4 sm:$0xff]  }
 0x1f4   :  { %v6976_v14 = vpop.eup %6975  ;;  %v1925_v17 = vmul.f32 0.5, %v6974_v0  ;;  %6989 = vtanh.f32 %v8277_v61  ;;  %v8400_v63 = vld [vmem:[%s9672_s5 + $0x84] ss:$16 sps:$4 sm:$0xff]   ;;  %v8412_v5 = vld [vmem:[%s9672_s5 + $0x80] ss:$16 sps:$4 sm:$0xff]  }
 0x1f5   :  { %v1921_v16 = vadd.f32 0.5, %v1917_v13  ;;  %v6978_v20 = vpop.eup %6977  ;;  %v8280_v22 = vadd.f32 %v1944_v6, %v1940_v15  ;;  %6991 = vtanh.f32 %v1898_v1  ;;  %v8418_v6 = vld [vmem:[%s9672_s5 + $0x88] ss:$16 sps:$4 sm:$0xff]   ;;  %v8424_v13 = vld [vmem:[%s9672_s5 + $0xa4] ss:$16 sps:$4 sm:$0xff]  }
 0x1f6   :  { %v6980_v21 = vpop.eup %6979  ;;  %v1929_v23 = vadd.f32 0.5, %v1925_v17  ;;  %v1918_v25 = vmul.f32 0.5, %v6978_v20  ;;  %v8430_v0 = vld [vmem:[%s9672_s5 + $0xac] ss:$16 sps:$4 sm:$0xff]   ;;  %v8436_v1 = vld [vmem:[%s9672_s5 + $0xa0] ss:$16 sps:$4 sm:$0xff]  }
 0x1f7   :  { %v1945_v24 = vmul.f32 %v6976_v14, %v1921_v16  ;;  %v6982_v26 = vpop.eup %6981  ;;  %6993 = vtanh.f32 %v8280_v22  ;;  %v1931_v32 = vmul.f32 0.5, %v6980_v21  ;;  %v8442_v14 = vld [vmem:[%s9672_s5 + $0xa8] ss:$16 sps:$4 sm:$0xff]   ;;  %v8448_v15 = vld [vmem:[%s9672_s5 + $0xc4] ss:$16 sps:$4 sm:$0xff]  }
 0x1f8   :  { %v6984_v27 = vpop.eup %6983  ;;  %v1941_v28 = vmul.f32 0.0, %v1929_v23  ;;  %v1922_v29 = vadd.f32 0.5, %v1918_v25  ;;  %v1926_v30 = vmul.f32 0.5, %v6982_v26  ;;  %v8454_v16 = vld [vmem:[%s9672_s5 + $0xcc] ss:$16 sps:$4 sm:$0xff]  }
 0x1f9   :  { %v6986_v31 = vpop.eup %6985  ;;  %v1932_v49 = vmul.f32 0.5, %v6984_v27  ;;  %v1935_v50 = vadd.f32 0.5, %v1931_v32  ;;  %v8460_v17 = vld [vmem:[%s9672_s5 + $0xc0] ss:$16 sps:$4 sm:$0xff]   ;;  %v8466_v20 = vld [vmem:[%s9672_s5 + $0xc8] ss:$16 sps:$4 sm:$0xff]  }
 0x1fa   :  { %v8283_v54 = vadd.f32 %v1945_v24, %v1941_v28  ;;  %v1930_v18 = vadd.f32 0.5, %v1926_v30  ;;  %v1946_v59 = vmul.f32 %v6986_v31, %v1922_v29  ;;  %v6988_v33 = vpop.eup %6987  ;;  %v8472_v21 = vld [vmem:[%s9672_s5 + $0xe4] ss:$16 sps:$4 sm:$0xff]   ;;  %v8478_v23 = vld [vmem:[%s9672_s5 + $0xec] ss:$16 sps:$4 sm:$0xff]  }
 0x1fb   :  { %v1936_v51 = vadd.f32 0.5, %v1932_v49  ;;  %v1933_v36 = vmul.f32 0.5, %v6988_v33  ;;  %v8484_v24 = vld [vmem:[%s9672_s5 + $0xe0] ss:$16 sps:$4 sm:$0xff]   ;;  %v8490_v25 = vld [vmem:[%s9672_s5 + $0xe8] ss:$16 sps:$4 sm:$0xff]  }
 0x1fc   :  { %v1942_v48 = vmul.f32 0.0, %v1930_v18  ;;  %6995 = vtanh.f32 %v8283_v54  ;;  %v7445_v26 = vld [vmem:[%s9672_s5 + $0x4] ss:$16 sps:$4 sm:$0xff]   ;;  %v7446_v27 = vld [vmem:[%s9672_s5 + $0xc] ss:$16 sps:$4 sm:$0xff]  }
 0x1fd   :  { %v1937_v47 = vadd.f32 0.5, %v1933_v36  ;;  %v1964_v28 = vld [vmem:[#allocation2 + $0x40] sm:$0xff]  ;;  %v1966_v29 = vld [vmem:[#allocation2 + $0x50] sm:$0xff]  ;;  %v1965_v30 = vld [vmem:[#allocation2 + $0x48] sm:$0xff] }
 0x1fe   :  { %v8286_v42 = vadd.f32 %v1946_v59, %v1942_v48  ;;  %v6990_v43 = vpop.eup %6989  ;;  %v1972_v31 = vunpack.c.l.bf16 %v1964_v28  ;;  %v1974_v59 = vunpack.c.l.bf16 %v1966_v29  ;;  %v1973_v32 = vunpack.c.l.bf16 %v1965_v30 }
 0x1ff   :  { %v6992_v19 = vpop.eup %6991  ;;  %v8289_v45 = vmul.f32 %v6990_v43, %v1935_v50 }
 0x200   :  { %6997 = vtanh.f32 %v8286_v42  ;;  %v1934_v46 = vmul.f32 0.5, %v6992_v19  ;;  %v1976_v19 = vunpack.c.h.bf16 %v1964_v28 }
 0x201   :  { %v6994_v44 = vpop.eup %6993  ;;  %9711 = vst [vmem:[#allocation8_spill] sm:$0xff] %v8289_v45 }
 0x202   :  { %v8291_v34 = vmul.f32 %v6994_v44, %v1936_v51  ;;  %v1938_v53 = vadd.f32 0.5, %v1934_v46 }
 0x204   :  { %9712 = vst [vmem:[#allocation9_spill] sm:$0xff] %v8291_v34  ;;  %v8295_v35 = vpack.c.bf16 %v8291_v34, %v8289_v45 }
 0x206   :  { %9713 = vst [vmem:[#allocation10_spill] sm:$0xff] %v8295_v35  ;;  %2215 = vmatmul.mubr.bf16.vlgmr.msra.gmra.mrb[88].mxu0 %v8295_v35  ;;  %2268 = vmatmul.mubr.bf16.vlgmr.msra.gmra.mrb[88].mxu1 %v8295_v35  ;;  %v6996_v52 = vpop.eup %6995 }
 0x207   :  { %2224 = vmatprep.mubr.bf16.mxu0 %v9679_v2  ;;  %2277 = vmatprep.mubr.bf16.mxu1 %v9679_v2  ;;  %v8325_v40 = vmul.f32 %v6996_v52, %v1937_v47  ;;  %v1977_v52 = vunpack.c.h.bf16 %v1965_v30 }
 0x208   :  { %2589 = vmatpush1.bf16.msra.mxu0 %v8304_v37  ;;  %2642 = vmatpush1.bf16.msra.mxu1 %v8310_v38 }
 0x209   :  { %2590 = vmatprep.subr.bf16.mxu0 %v8316_v56  ;;  %2643 = vmatprep.subr.bf16.mxu1 %v8322_v39  ;;  %9714 = vst [vmem:[#allocation11_spill] sm:$0xff] %v8325_v40 }
 0x20a   :  { %v6998_v55 = vpop.eup %6997 }
 0x20b   :  { %v8327_v57 = vmul.f32 %v6998_v55, %v1938_v53  ;;  %v1978_v55 = vunpack.c.h.bf16 %v1966_v29 }
 0x20c   :  { %2591 = vmatpush1.bf16.msra.mxu0 %v8336_v58  ;;  %2644 = vmatpush1.bf16.msra.mxu1 %v8342_v7 }
 0x20d   :  { %9715 = vst [vmem:[#allocation12_spill] sm:$0xff] %v8327_v57  ;;  %v8331_v41 = vpack.c.bf16 %v8327_v57, %v8325_v40  ;;  %2592 = vmatprep.subr.bf16.mxu0 %v8348_v11  ;;  %2645 = vmatprep.subr.bf16.mxu1 %v8354_v8  ;;  %v1969_v57 = vld [vmem:[#allocation2 + $0x68] sm:$0xff] }
 0x20f   :  { %9716 = vst [vmem:[#allocation13_spill] sm:$0xff] %v8331_v41  ;;  %2225 = vmatmul.mubr.bf16.gmra.mrb[92].mxu0 %v8331_v41  ;;  %2278 = vmatmul.mubr.bf16.gmra.mrb[92].mxu1 %v8331_v41 }
 0x210   :  { %2620 = vmatprep.mubr.bf16.mxu0 %v9679_v2  ;;  %2673 = vmatprep.mubr.bf16.mxu1 %v9679_v2  ;;  %v1970_v2 = vld [vmem:[#allocation2 + $0x70] sm:$0xff] }
 0x211   :  { %2593 = vmatpush1.bf16.msra.mxu0 %v8364_v12  ;;  %2646 = vmatpush1.bf16.msra.mxu1 %v8370_v62 }
 0x212   :  { %2594 = vmatprep.subr.bf16.mxu0 %v8376_v3  ;;  %2647 = vmatprep.subr.bf16.mxu1 %v8382_v60 }
 0x215   :  { %2595 = vmatpush1.bf16.msra.mxu0 %v8388_v4  ;;  %2648 = vmatpush1.bf16.msra.mxu1 %v8394_v9 }
 0x216   :  { %2596 = vmatprep.subr.bf16.mxu0 %v8400_v63  ;;  %2649 = vmatprep.subr.bf16.mxu1 %v8406_v10 }
 0x219   :  { %2597 = vmatpush1.bf16.msra.mxu0 %v8412_v5  ;;  %2650 = vmatpush1.bf16.msra.mxu1 %v8418_v6 }
 0x21a   :  { %2598 = vmatprep.subr.bf16.mxu0 %v8424_v13  ;;  %2651 = vmatprep.subr.bf16.mxu1 %v8430_v0 }
 0x21d   :  { %2599 = vmatpush1.bf16.msra.mxu0 %v8436_v1  ;;  %2652 = vmatpush1.bf16.msra.mxu1 %v8442_v14 }
 0x21e   :  { %2600 = vmatprep.subr.bf16.mxu0 %v8448_v15  ;;  %2653 = vmatprep.subr.bf16.mxu1 %v8454_v16 }
 0x221   :  { %2601 = vmatpush1.bf16.msra.mxu0 %v8460_v17  ;;  %2654 = vmatpush1.bf16.msra.mxu1 %v8466_v20 }
 0x222   :  { %2602 = vmatprep.subr.bf16.mxu0 %v8472_v21  ;;  %2655 = vmatprep.subr.bf16.mxu1 %v8478_v23 }
 0x225   :  { %2603 = vmatpush1.bf16.msra.mxu0 %v8484_v24  ;;  %2656 = vmatpush1.bf16.msra.mxu1 %v8490_v25 }
 0x226   :  { %2994 = vmatprep.subr.bf16.mxu0 %v7445_v26  ;;  %3047 = vmatprep.subr.bf16.mxu1 %v7446_v27  ;;  %v1968_v26 = vld [vmem:[#allocation2 + $0x60] sm:$0xff] }
 0x227   :  { %v1980_v28 = vunpack.c.l.bf16 %v1968_v26 }
 0x2d9   :  { %v2216_v18 = vpop.f32.mrb[88].mxu0  ;;  %v2269_v48 = vpop.f32.mrb[88].mxu1 }
 0x2da   :  { %v2288_v49 = vadd.f32 %v2216_v18, %v1972_v31  ;;  %v2218_v33 = vpop.f32.mrb[89].mxu0  ;;  %v2271_v43 = vpop.f32.mrb[89].mxu1  ;;  %v2290_v50 = vadd.f32 %v2269_v48, %v1974_v59  ;;  %v1967_v18 = vld [vmem:[#allocation2 + $0x58] sm:$0xff]  ;;  %v1982_v48 = vunpack.c.l.bf16 %v1970_v2 }
 0x2db   :  { %v2289_v51 = vadd.f32 %v2218_v33, %v1973_v32  ;;  %v2220_v44 = vpop.f32.mrb[90].mxu0  ;;  %v2273_v36 = vpop.f32.mrb[90].mxu1  ;;  %v1981_v33 = vunpack.c.l.bf16 %v1969_v57  ;;  %v1975_v29 = vunpack.c.l.bf16 %v1967_v18  ;;  %v1979_v45 = vunpack.c.h.bf16 %v1967_v18 }
 0x2dc   :  { %6999 = vtanh.f32 %v2288_v49  ;;  %v2292_v46 = vadd.f32 %v2220_v44, %v1976_v19  ;;  %v2222_v47 = vpop.f32.mrb[91].mxu0  ;;  %v2275_v53 = vpop.f32.mrb[91].mxu1  ;;  %v2294_v31 = vadd.f32 %v2273_v36, %v1978_v55  ;;  %v1984_v44 = vunpack.c.h.bf16 %v1968_v26  ;;  %v1971_v26 = vld [vmem:[#allocation2 + $0x78] sm:$0xff] }
 0x2dd   :  { %7001 = vtanh.f32 %v2289_v51  ;;  %v2293_v27 = vadd.f32 %v2222_v47, %v1977_v52  ;;  %v1985_v36 = vunpack.c.h.bf16 %v1969_v57  ;;  %v2291_v34 = vadd.f32 %v2271_v43, %v1975_v29 }
 0x2de   :  { %7003 = vtanh.f32 %v2290_v50  ;;  %v2295_v35 = vadd.f32 %v2275_v53, %v1979_v45 }
 0x2df   :  { %7005 = vtanh.f32 %v2292_v46 }
 0x2e0   :  { %7007 = vtanh.f32 %v2293_v27  ;;  %v1986_v27 = vunpack.c.h.bf16 %v1970_v2 }
 0x2e1   :  { %7009 = vtanh.f32 %v2294_v31 }
 0x2e2   :  { %v2226_v59 = vpop.f32.mrb[92].mxu0  ;;  %v2279_v32 = vpop.f32.mrb[92].mxu1 }
 0x2e3   :  { %v2296_v49 = vadd.f32 %v2226_v59, %v1980_v28  ;;  %v2228_v30 = vpop.f32.mrb[93].mxu0  ;;  %v2281_v19 = vpop.f32.mrb[93].mxu1  ;;  %v2298_v51 = vadd.f32 %v2279_v32, %v1982_v48 }
 0x2e4   :  { %v2297_v52 = vadd.f32 %v2228_v30, %v1981_v33  ;;  %v2230_v47 = vpop.f32.mrb[94].mxu0  ;;  %v2283_v40 = vpop.f32.mrb[94].mxu1  ;;  %v1983_v30 = vunpack.c.l.bf16 %v1971_v26 }
 0x2e5   :  { %7011 = vtanh.f32 %v2296_v49  ;;  %v2300_v50 = vadd.f32 %v2230_v47, %v1984_v44  ;;  %v2232_v46 = vpop.f32.mrb[95].mxu0  ;;  %v2285_v55 = vpop.f32.mrb[95].mxu1  ;;  %v2302_v48 = vadd.f32 %v2283_v40, %v1986_v27 }
 0x2e6   :  { %v7000_v41 = vpop.eup %6999  ;;  %7013 = vtanh.f32 %v2297_v52  ;;  %v2301_v28 = vadd.f32 %v2232_v46, %v1985_v36  ;;  %v1987_v52 = vunpack.c.h.bf16 %v1971_v26 }
 0x2e7   :  { %v2320_v59 = vmul.f32 0.5, %v7000_v41  ;;  %7015 = vtanh.f32 %v2298_v51  ;;  %v7002_v31 = vpop.eup %7001  ;;  %v2299_v51 = vadd.f32 %v2281_v19, %v1983_v30 }
 0x2e8   :  { %7017 = vtanh.f32 %v2300_v50  ;;  %v7004_v32 = vpop.eup %7003  ;;  %v2328_v49 = vmul.f32 0.5, %v7002_v31  ;;  %v2303_v27 = vadd.f32 %v2285_v55, %v1987_v52 }
 0x2e9   :  { %v2324_v33 = vadd.f32 0.5, %v2320_v59  ;;  %7019 = vtanh.f32 %v2291_v34  ;;  %v7006_v57 = vpop.eup %7005 }
 0x2ea   :  { %7021 = vtanh.f32 %v2301_v28  ;;  %v2332_v43 = vadd.f32 0.5, %v2328_v49  ;;  %v2321_v44 = vmul.f32 0.5, %v7006_v57  ;;  %v7008_v2 = vpop.eup %7007 }
 0x2eb   :  { %v2348_v18 = vmul.f32 %v7004_v32, %v2324_v33  ;;  %7023 = vtanh.f32 %v2295_v35  ;;  %v7010_v41 = vpop.eup %7009  ;;  %v2329_v29 = vmul.f32 0.5, %v7008_v2 }
 0x2ec   :  { %7025 = vtanh.f32 %v2302_v48  ;;  %v2344_v45 = vmul.f32 %v2332_v43, %v8277_v61  ;;  %v2325_v53 = vadd.f32 0.5, %v2321_v44 }
 0x2ed   :  { %v2333_v34 = vadd.f32 0.5, %v2329_v29  ;;  %7027 = vtanh.f32 %v2299_v51 }
 0x2ee   :  { %v8500_v47 = vadd.f32 %v2348_v18, %v2344_v45  ;;  %v2349_v50 = vmul.f32 %v7010_v41, %v2325_v53 }
 0x2ef   :  { %v7012_v40 = vpop.eup %7011  ;;  %v2345_v35 = vmul.f32 %v2333_v34, %v8280_v22 }
 0x2f0   :  { %v2322_v36 = vmul.f32 0.5, %v7012_v40  ;;  %v7014_v46 = vpop.eup %7013  ;;  %7029 = vtanh.f32 %v8500_v47 }
 0x2f1   :  { %v7016_v28 = vpop.eup %7015  ;;  %v2330_v31 = vmul.f32 0.5, %v7014_v46  ;;  %v8504_v19 = vadd.f32 %v2349_v50, %v2345_v35  ;;  %7031 = vtanh.f32 %v2303_v27 }
 0x2f2   :  { %v2326_v59 = vadd.f32 0.5, %v2322_v36  ;;  %v7018_v48 = vpop.eup %7017 }
 0x2f3   :  { %v7020_v61 = vpop.eup %7019  ;;  %v2334_v26 = vadd.f32 0.5, %v2330_v31  ;;  %v2323_v33 = vmul.f32 0.5, %v7018_v48  ;;  %7033 = vtanh.f32 %v8504_v19 }
 0x2f4   :  { %v2350_v32 = vmul.f32 %v7016_v28, %v2326_v59  ;;  %v7022_v49 = vpop.eup %7021  ;;  %v2336_v45 = vmul.f32 0.5, %v7020_v61  ;;  %v9720_v59 = vmov 0  }
 0x2f5   :  { %v7024_v57 = vpop.eup %7023  ;;  %v2346_v55 = vmul.f32 %v2334_v26, %v8283_v54  ;;  %v2327_v22 = vadd.f32 0.5, %v2323_v33  ;;  %v2331_v30 = vmul.f32 0.5, %v7022_v49 }
 0x2f6   :  { %v7026_v43 = vpop.eup %7025  ;;  %v2337_v53 = vmul.f32 0.5, %v7024_v57  ;;  %v2340_v52 = vadd.f32 0.5, %v2336_v45 }
 0x2f7   :  { %v8508_v18 = vadd.f32 %v2350_v32, %v2346_v55  ;;  %v2335_v44 = vadd.f32 0.5, %v2331_v30  ;;  %v2351_v2 = vmul.f32 %v7026_v43, %v2327_v22  ;;  %v7028_v29 = vpop.eup %7027 }
 0x2f8   :  { %v2341_v34 = vadd.f32 0.5, %v2337_v53  ;;  %v2338_v27 = vmul.f32 0.5, %v7028_v29 }
 0x2f9   :  { %v2347_v41 = vmul.f32 %v2335_v44, %v8286_v42  ;;  %7035 = vtanh.f32 %v8508_v18 }
 0x2fa   :  { %v7030_v40 = vpop.eup %7029  ;;  %v2342_v31 = vadd.f32 0.5, %v2338_v27 }
 0x2fb   :  { %v8512_v51 = vadd.f32 %v2351_v2, %v2347_v41  ;;  %v7032_v54 = vpop.eup %7031  ;;  %v8515_v36 = vmul.f32 %v7030_v40, %v2340_v52 }
 0x2fc   :  { %v2339_v28 = vmul.f32 0.5, %v7032_v54 }
 0x2fd   :  { %7037 = vtanh.f32 %v8512_v51  ;;  %v7034_v50 = vpop.eup %7033  ;;  %9717 = vst [vmem:[#allocation14_spill] sm:$0xff] %v8515_v36 }
 0x2fe   :  { %v8517_v46 = vmul.f32 %v7034_v50, %v2341_v34  ;;  %v2343_v48 = vadd.f32 0.5, %v2339_v28 }
 0x300   :  { %9718 = vst [vmem:[#allocation15_spill] sm:$0xff] %v8517_v46  ;;  %v8521_v42 = vpack.c.bf16 %v8517_v46, %v8515_v36  ;;  %v2780_v46 = vld [vmem:[#allocation2 + $0xe0] sm:$0xff] }
 0x302   :  { %9719 = vst [vmem:[#allocation16_spill] sm:$0xff] %v8521_v42  ;;  %2621 = vmatmul.mubr.bf16.vlgmr.msra.gmra.mrb[96].mxu0 %v8521_v42  ;;  %2674 = vmatmul.mubr.bf16.vlgmr.msra.gmra.mrb[96].mxu1 %v8521_v42 }
 0x303   :  { %v7036_v35 = vpop.eup %7035  ;;  %2630 = vmatprep.mubr.bf16.mxu0 %v9720_v59  ;;  %2683 = vmatprep.mubr.bf16.mxu1 %v9720_v59 }
 0x304   :  { %2995 = vmatpush1.bf16.msra.mxu0 %v8304_v37  ;;  %3048 = vmatpush1.bf16.msra.mxu1 %v8310_v38  ;;  %v8531_v26 = vmul.f32 %v7036_v35, %v2342_v31  ;;  %v2370_v37 = vld [vmem:[#allocation2 + $0x80] sm:$0xff]  ;;  %v2372_v38 = vld [vmem:[#allocation2 + $0x90] sm:$0xff] }
 0x305   :  { %2996 = vmatprep.subr.bf16.mxu0 %v8316_v56  ;;  %3049 = vmatprep.subr.bf16.mxu1 %v8322_v39  ;;  %v2371_v56 = vld [vmem:[#allocation2 + $0x88] sm:$0xff]  ;;  %v2378_v39 = vunpack.c.l.bf16 %v2370_v37 }
 0x306   :  { %9721 = vst [vmem:[#allocation17_spill] sm:$0xff] %v8531_v26 }
 0x307   :  { %v7038_v61 = vpop.eup %7037 }
 0x308   :  { %v8533_v32 = vmul.f32 %v7038_v61, %v2343_v48  ;;  %2997 = vmatpush1.bf16.msra.mxu0 %v8336_v58  ;;  %3050 = vmatpush1.bf16.msra.mxu1 %v8342_v7  ;;  %v2380_v7 = vunpack.c.l.bf16 %v2372_v38  ;;  %v2377_v61 = vld [vmem:[#allocation2 + $0xb8] sm:$0xff] }
 0x309   :  { %2998 = vmatprep.subr.bf16.mxu0 %v8348_v11  ;;  %3051 = vmatprep.subr.bf16.mxu1 %v8354_v8  ;;  %v2379_v8 = vunpack.c.l.bf16 %v2371_v56 }
 0x30a   :  { %9722 = vst [vmem:[#allocation18_spill] sm:$0xff] %v8533_v32  ;;  %v8537_v33 = vpack.c.bf16 %v8533_v32, %v8531_v26 }
 0x30c   :  { %9723 = vst [vmem:[#allocation19_spill] sm:$0xff] %v8537_v33  ;;  %2631 = vmatmul.mubr.bf16.gmra.mrb[100].mxu0 %v8537_v33  ;;  %2684 = vmatmul.mubr.bf16.gmra.mrb[100].mxu1 %v8537_v33 }
 0x30d   :  { %3026 = vmatprep.mubr.bf16.mxu0 %v9720_v59  ;;  %3079 = vmatprep.mubr.bf16.mxu1 %v9720_v59 }
 0x30e   :  { %2999 = vmatpush1.bf16.msra.mxu0 %v8364_v12  ;;  %3052 = vmatpush1.bf16.msra.mxu1 %v8370_v62 }
 0x30f   :  { %3000 = vmatprep.subr.bf16.mxu0 %v8376_v3  ;;  %3053 = vmatprep.subr.bf16.mxu1 %v8382_v60  ;;  %v2382_v60 = vunpack.c.h.bf16 %v2370_v37 }
 0x312   :  { %3001 = vmatpush1.bf16.msra.mxu0 %v8388_v4  ;;  %3054 = vmatpush1.bf16.msra.mxu1 %v8394_v9 }
 0x313   :  { %3002 = vmatprep.subr.bf16.mxu0 %v8400_v63  ;;  %3055 = vmatprep.subr.bf16.mxu1 %v8406_v10 }
 0x316   :  { %3003 = vmatpush1.bf16.msra.mxu0 %v8412_v5  ;;  %3056 = vmatpush1.bf16.msra.mxu1 %v8418_v6  ;;  %v2383_v6 = vunpack.c.h.bf16 %v2371_v56 }
 0x317   :  { %3004 = vmatprep.subr.bf16.mxu0 %v8424_v13  ;;  %3057 = vmatprep.subr.bf16.mxu1 %v8430_v0 }
 0x31a   :  { %3005 = vmatpush1.bf16.msra.mxu0 %v8436_v1  ;;  %3058 = vmatpush1.bf16.msra.mxu1 %v8442_v14  ;;  %v2384_v1 = vunpack.c.h.bf16 %v2372_v38  ;;  %v2374_v14 = vld [vmem:[#allocation2 + $0xa0] sm:$0xff] }
 0x31b   :  { %3006 = vmatprep.subr.bf16.mxu0 %v8448_v15  ;;  %3059 = vmatprep.subr.bf16.mxu1 %v8454_v16  ;;  %v2376_v16 = vld [vmem:[#allocation2 + $0xb0] sm:$0xff]  ;;  %v2390_v43 = vunpack.c.h.bf16 %v2374_v14 }
 0x31c   :  { %v2392_v28 = vunpack.c.h.bf16 %v2376_v16 }
 0x31e   :  { %3007 = vmatpush1.bf16.msra.mxu0 %v8460_v17  ;;  %3060 = vmatpush1.bf16.msra.mxu1 %v8466_v20  ;;  %v2375_v17 = vld [vmem:[#allocation2 + $0xa8] sm:$0xff] }
 0x31f   :  { %3008 = vmatprep.subr.bf16.mxu0 %v8472_v21  ;;  %3061 = vmatprep.subr.bf16.mxu1 %v8478_v23  ;;  %v2373_v21 = vld [vmem:[#allocation2 + $0x98] sm:$0xff]  ;;  %v2386_v23 = vunpack.c.l.bf16 %v2374_v14  ;;  %v2387_v57 = vunpack.c.l.bf16 %v2375_v17  ;;  %v2391_v40 = vunpack.c.h.bf16 %v2375_v17 }
 0x320   :  { %v2381_v44 = vunpack.c.l.bf16 %v2373_v21  ;;  %v2385_v50 = vunpack.c.h.bf16 %v2373_v21 }
 0x322   :  { %3009 = vmatpush1.bf16.msra.mxu0 %v8484_v24  ;;  %3062 = vmatpush1.bf16.msra.mxu1 %v8490_v25  ;;  %v2388_v25 = vunpack.c.l.bf16 %v2376_v16 }
 0x3d5   :  { %v2622_v58 = vpop.f32.mrb[96].mxu0  ;;  %v2675_v11 = vpop.f32.mrb[96].mxu1 }
 0x3d6   :  { %v2694_v12 = vadd.f32 %v2622_v58, %v2378_v39  ;;  %v2624_v62 = vpop.f32.mrb[97].mxu0  ;;  %v2677_v3 = vpop.f32.mrb[97].mxu1  ;;  %v2696_v4 = vadd.f32 %v2675_v11, %v2380_v7  ;;  %v2389_v11 = vunpack.c.l.bf16 %v2377_v61 }
 0x3d7   :  { %v2695_v9 = vadd.f32 %v2624_v62, %v2379_v8  ;;  %v2626_v63 = vpop.f32.mrb[98].mxu0  ;;  %v2679_v10 = vpop.f32.mrb[98].mxu1  ;;  %v2697_v34 = vadd.f32 %v2677_v3, %v2381_v44 }
 0x3d8   :  { %7039 = vtanh.f32 %v2694_v12  ;;  %v2698_v5 = vadd.f32 %v2626_v63, %v2382_v60  ;;  %v2628_v13 = vpop.f32.mrb[99].mxu0  ;;  %v2681_v0 = vpop.f32.mrb[99].mxu1  ;;  %v2700_v20 = vadd.f32 %v2679_v10, %v2384_v1 }
 0x3d9   :  { %7041 = vtanh.f32 %v2695_v9  ;;  %v2699_v15 = vadd.f32 %v2628_v13, %v2383_v6  ;;  %v2701_v48 = vadd.f32 %v2681_v0, %v2385_v50  ;;  %v2393_v6 = vunpack.c.h.bf16 %v2377_v61 }
 0x3da   :  { %7043 = vtanh.f32 %v2696_v4 }
 0x3db   :  { %7045 = vtanh.f32 %v2698_v5 }
 0x3dc   :  { %7047 = vtanh.f32 %v2699_v15 }
 0x3dd   :  { %7049 = vtanh.f32 %v2700_v20 }
 0x3df   :  { %v2632_v24 = vpop.f32.mrb[100].mxu0  ;;  %v2685_v49 = vpop.f32.mrb[100].mxu1 }
 0x3e0   :  { %v2702_v55 = vadd.f32 %v2632_v24, %v2386_v23  ;;  %v2634_v22 = vpop.f32.mrb[101].mxu0  ;;  %v2687_v30 = vpop.f32.mrb[101].mxu1  ;;  %v2704_v2 = vadd.f32 %v2685_v49, %v2388_v25 }
 0x3e1   :  { %v2703_v41 = vadd.f32 %v2634_v22, %v2387_v57  ;;  %v2636_v45 = vpop.f32.mrb[102].mxu0  ;;  %v2689_v53 = vpop.f32.mrb[102].mxu1  ;;  %v2705_v10 = vadd.f32 %v2687_v30, %v2389_v11 }
 0x3e2   :  { %7051 = vtanh.f32 %v2702_v55  ;;  %v2706_v29 = vadd.f32 %v2636_v45, %v2390_v43  ;;  %v2638_v54 = vpop.f32.mrb[103].mxu0  ;;  %v2691_v52 = vpop.f32.mrb[103].mxu1  ;;  %v2708_v38 = vadd.f32 %v2689_v53, %v2392_v28 }
 0x3e3   :  { %v7040_v27 = vpop.eup %7039  ;;  %7053 = vtanh.f32 %v2703_v41  ;;  %v2707_v35 = vadd.f32 %v2638_v54, %v2391_v40  ;;  %v2709_v16 = vadd.f32 %v2691_v52, %v2393_v6  ;;  %v8665_v6 = vld [vmem:[%s9672_s5 + $0x4c] ss:$16 sps:$4 sm:$0xff]  }
 0x3e4   :  { %v2726_v31 = vmul.f32 0.5, %v7040_v27  ;;  %7055 = vtanh.f32 %v2704_v2  ;;  %v7042_v37 = vpop.eup %7041 }
 0x3e5   :  { %7057 = vtanh.f32 %v2706_v29  ;;  %v7044_v56 = vpop.eup %7043  ;;  %v2734_v58 = vmul.f32 0.5, %v7042_v37 }
 0x3e6   :  { %v2730_v39 = vadd.f32 0.5, %v2726_v31  ;;  %7059 = vtanh.f32 %v2697_v34  ;;  %v7046_v7 = vpop.eup %7045 }
 0x3e7   :  { %7061 = vtanh.f32 %v2707_v35  ;;  %v2738_v8 = vadd.f32 0.5, %v2734_v58  ;;  %v2727_v62 = vmul.f32 0.5, %v7046_v7  ;;  %v7048_v3 = vpop.eup %7047 }
 0x3e8   :  { %v2754_v12 = vmul.f32 %v7044_v56, %v2730_v39  ;;  %7063 = vtanh.f32 %v2701_v48  ;;  %v7050_v60 = vpop.eup %7049  ;;  %v2735_v63 = vmul.f32 0.5, %v7048_v3  ;;  %v8622_v3 = vld [vmem:[%s9672_s5] ss:$16 sps:$4 sm:$0xff]  }
 0x3e9   :  { %7065 = vtanh.f32 %v2708_v38  ;;  %v2750_v4 = vmul.f32 %v2738_v8, %v8500_v47  ;;  %v2731_v9 = vadd.f32 0.5, %v2727_v62  ;;  %v8617_v62 = vld [vmem:[%s9672_s5 + $0xc] ss:$16 sps:$4 sm:$0xff]  }
 0x3ea   :  { %v2739_v0 = vadd.f32 0.5, %v2735_v63  ;;  %7067 = vtanh.f32 %v2705_v10  ;;  %9731 = vst [vmem:[#allocation27_spill] sm:$0xff] %v8617_v62  ;;  %3453 = vmatprep.subr.bf16.mxu1 %v8617_v62  ;;  %v8646_v63 = vld [vmem:[%s9672_s5 + $0x20] ss:$16 sps:$4 sm:$0xff]   ;;  %v8651_v10 = vld [vmem:[%s9672_s5 + $0x28] ss:$16 sps:$4 sm:$0xff]  }
 0x3eb   :  { %v8570_v13 = vadd.f32 %v2754_v12, %v2750_v4  ;;  %v2755_v1 = vmul.f32 %v7050_v60, %v2731_v9  ;;  %v8612_v12 = vld [vmem:[%s9672_s5 + $0x4] ss:$16 sps:$4 sm:$0xff]   ;;  %v8627_v60 = vld [vmem:[%s9672_s5 + $0x8] ss:$16 sps:$4 sm:$0xff]   ;;  %v8641_v9 = vld [vmem:[%s9672_s5 + $0x2c] ss:$16 sps:$4 sm:$0xff]  }
 0x3ec   :  { %v7052_v5 = vpop.eup %7051  ;;  %v2751_v20 = vmul.f32 %v2739_v0, %v8504_v19  ;;  %9730 = vst [vmem:[#allocation26_spill] sm:$0xff] %v8612_v12  ;;  %3400 = vmatprep.subr.bf16.mxu0 %v8612_v12  ;;  %v8636_v4 = vld [vmem:[%s9672_s5 + $0x24] ss:$16 sps:$4 sm:$0xff]   ;;  %v8670_v0 = vld [vmem:[%s9672_s5 + $0x40] ss:$16 sps:$4 sm:$0xff]  }
 0x3ed   :  { %v2728_v14 = vmul.f32 0.5, %v7052_v5  ;;  %v7054_v15 = vpop.eup %7053  ;;  %7069 = vtanh.f32 %v8570_v13  ;;  %v8660_v5 = vld [vmem:[%s9672_s5 + $0x44] ss:$16 sps:$4 sm:$0xff]  }
 0x3ee   :  { %v7056_v17 = vpop.eup %7055  ;;  %v2736_v23 = vmul.f32 0.5, %v7054_v15  ;;  %v8574_v25 = vadd.f32 %v2755_v1, %v2751_v20  ;;  %7071 = vtanh.f32 %v2709_v16  ;;  %v8675_v1 = vld [vmem:[%s9672_s5 + $0x48] ss:$16 sps:$4 sm:$0xff]   ;;  %v8689_v15 = vld [vmem:[%s9672_s5 + $0x6c] ss:$16 sps:$4 sm:$0xff]  }
 0x3ef   :  { %v2732_v21 = vadd.f32 0.5, %v2728_v14  ;;  %v7058_v24 = vpop.eup %7057  ;;  %v8684_v14 = vld [vmem:[%s9672_s5 + $0x64] ss:$16 sps:$4 sm:$0xff]   ;;  %v8694_v16 = vld [vmem:[%s9672_s5 + $0x60] ss:$16 sps:$4 sm:$0xff]  }
 0x3f0   :  { %v7060_v47 = vpop.eup %7059  ;;  %v2740_v49 = vadd.f32 0.5, %v2736_v23  ;;  %v2729_v55 = vmul.f32 0.5, %v7058_v24  ;;  %7073 = vtanh.f32 %v8574_v25  ;;  %v8708_v20 = vld [vmem:[%s9672_s5 + $0x84] ss:$16 sps:$4 sm:$0xff]   ;;  %v8718_v23 = vld [vmem:[%s9672_s5 + $0x80] ss:$16 sps:$4 sm:$0xff]  }
 0x3f1   :  { %v2756_v57 = vmul.f32 %v7056_v17, %v2732_v21  ;;  %v7062_v22 = vpop.eup %7061  ;;  %v2742_v40 = vmul.f32 0.5, %v7060_v47  ;;  %v8699_v17 = vld [vmem:[%s9672_s5 + $0x68] ss:$16 sps:$4 sm:$0xff]   ;;  %v8713_v21 = vld [vmem:[%s9672_s5 + $0x8c] ss:$16 sps:$4 sm:$0xff]  }
 0x3f2   :  { %v7064_v30 = vpop.eup %7063  ;;  %v2752_v43 = vmul.f32 %v2740_v49, %v8508_v18  ;;  %v2733_v19 = vadd.f32 0.5, %v2729_v55  ;;  %v2737_v44 = vmul.f32 0.5, %v7062_v22  ;;  %v8723_v24 = vld [vmem:[%s9672_s5 + $0x88] ss:$16 sps:$4 sm:$0xff]   ;;  %v8732_v47 = vld [vmem:[%s9672_s5 + $0xa4] ss:$16 sps:$4 sm:$0xff]  }
 0x3f3   :  { %v7066_v2 = vpop.eup %7065  ;;  %v2743_v54 = vmul.f32 0.5, %v7064_v30  ;;  %v2746_v27 = vadd.f32 0.5, %v2742_v40  ;;  %v8737_v49 = vld [vmem:[%s9672_s5 + $0xac] ss:$16 sps:$4 sm:$0xff]   ;;  %v8747_v55 = vld [vmem:[%s9672_s5 + $0xa8] ss:$16 sps:$4 sm:$0xff]  }
 0x3f4   :  { %v8578_v41 = vadd.f32 %v2756_v57, %v2752_v43  ;;  %v2741_v45 = vadd.f32 0.5, %v2737_v44  ;;  %v2757_v53 = vmul.f32 %v7066_v2, %v2733_v19  ;;  %v7068_v52 = vpop.eup %7067  ;;  %v8742_v57 = vld [vmem:[%s9672_s5 + $0xa0] ss:$16 sps:$4 sm:$0xff]   ;;  %v8756_v22 = vld [vmem:[%s9672_s5 + $0xc4] ss:$16 sps:$4 sm:$0xff]  }
 0x3f5   :  { %v2747_v28 = vadd.f32 0.5, %v2743_v54  ;;  %v2744_v61 = vmul.f32 0.5, %v7068_v52  ;;  %v8761_v30 = vld [vmem:[%s9672_s5 + $0xcc] ss:$16 sps:$4 sm:$0xff]   ;;  %v8766_v43 = vld [vmem:[%s9672_s5 + $0xc0] ss:$16 sps:$4 sm:$0xff]  }
 0x3f6   :  { %v2753_v29 = vmul.f32 %v2741_v45, %v8512_v51  ;;  %7075 = vtanh.f32 %v8578_v41  ;;  %v8771_v19 = vld [vmem:[%s9672_s5 + $0xc8] ss:$16 sps:$4 sm:$0xff]   ;;  %v8780_v44 = vld [vmem:[%s9672_s5 + $0xe4] ss:$16 sps:$4 sm:$0xff]   ;;  %v8785_v2 = vld [vmem:[%s9672_s5 + $0xec] ss:$16 sps:$4 sm:$0xff]  }
 0x3f7   :  { %v7070_v50 = vpop.eup %7069  ;;  %v2748_v56 = vadd.f32 0.5, %v2744_v61  ;;  %v8790_v45 = vld [vmem:[%s9672_s5 + $0xe0] ss:$16 sps:$4 sm:$0xff]   ;;  %v2777_v54 = vld [vmem:[#allocation2 + $0xc8] sm:$0xff] }
 0x3f8   :  { %v8582_v34 = vadd.f32 %v2757_v53, %v2753_v29  ;;  %v7072_v18 = vpop.eup %7071  ;;  %v8585_v31 = vmul.f32 %v7070_v50, %v2746_v27  ;;  %v8795_v53 = vld [vmem:[%s9672_s5 + $0xe8] ss:$16 sps:$4 sm:$0xff]   ;;  %v2776_v29 = vld [vmem:[#allocation2 + $0xc0] sm:$0xff]  ;;  %v2778_v40 = vld [vmem:[#allocation2 + $0xd0] sm:$0xff]  ;;  %v2789_v32 = vunpack.c.h.bf16 %v2777_v54 }
 0x3f9   :  { %v2745_v37 = vmul.f32 0.5, %v7072_v18  ;;  %9732 = vst [vmem:[#allocation28_spill] sm:$0xff] %v8795_v53  ;;  %v2784_v52 = vunpack.c.l.bf16 %v2776_v29  ;;  %v2786_v18 = vunpack.c.l.bf16 %v2778_v40 }
 0x3fa   :  { %7077 = vtanh.f32 %v8582_v34  ;;  %v7074_v35 = vpop.eup %7073  ;;  %9724 = vst [vmem:[#allocation20_spill] sm:$0xff] %v8585_v31 }
 0x3fb   :  { %v8587_v48 = vmul.f32 %v7074_v35, %v2747_v28  ;;  %v2749_v39 = vadd.f32 0.5, %v2745_v37  ;;  %v2785_v28 = vunpack.c.l.bf16 %v2777_v54 }
 0x3fd   :  { %9725 = vst [vmem:[#allocation21_spill] sm:$0xff] %v8587_v48  ;;  %v8591_v51 = vpack.c.bf16 %v8587_v48, %v8585_v31  ;;  %v2790_v31 = vunpack.c.h.bf16 %v2778_v40 }
 0x3ff   :  { %9726 = vst [vmem:[#allocation22_spill] sm:$0xff] %v8591_v51  ;;  %3027 = vmatmul.mubr.bf16.vlgmr.msra.gmra.mrb[104].mxu0 %v8591_v51  ;;  %3080 = vmatmul.mubr.bf16.vlgmr.msra.gmra.mrb[104].mxu1 %v8591_v51  ;;  %v2781_v51 = vld [vmem:[#allocation2 + $0xe8] sm:$0xff] }
 0x400   :  { %v7076_v38 = vpop.eup %7075  ;;  %3036 = vmatprep.mubr.bf16.mxu0 %v9720_v59  ;;  %3089 = vmatprep.mubr.bf16.mxu1 %v9720_v59 }
 0x401   :  { %v8597_v7 = vmul.f32 %v7076_v38, %v2748_v56  ;;  %3401 = vmatpush1.bf16.msra.mxu0 %v8622_v3  ;;  %3454 = vmatpush1.bf16.msra.mxu1 %v8627_v60  ;;  %v2788_v38 = vunpack.c.h.bf16 %v2776_v29  ;;  %v2792_v29 = vunpack.c.l.bf16 %v2780_v46 }
 0x402   :  { %3402 = vmatprep.subr.bf16.mxu0 %v8636_v4  ;;  %3455 = vmatprep.subr.bf16.mxu1 %v8641_v9 }
 0x403   :  { %9727 = vst [vmem:[#allocation23_spill] sm:$0xff] %v8597_v7 }
 0x404   :  { %v7078_v58 = vpop.eup %7077 }
 0x405   :  { %v8599_v11 = vmul.f32 %v7078_v58, %v2749_v39  ;;  %3403 = vmatpush1.bf16.msra.mxu0 %v8646_v63  ;;  %3456 = vmatpush1.bf16.msra.mxu1 %v8651_v10 }
 0x406   :  { %3404 = vmatprep.subr.bf16.mxu0 %v8660_v5  ;;  %3457 = vmatprep.subr.bf16.mxu1 %v8665_v6 }
 0x407   :  { %9728 = vst [vmem:[#allocation24_spill] sm:$0xff] %v8599_v11  ;;  %v8603_v8 = vpack.c.bf16 %v8599_v11, %v8597_v7 }
 0x409   :  { %9729 = vst [vmem:[#allocation25_spill] sm:$0xff] %v8603_v8  ;;  %3037 = vmatmul.mubr.bf16.gmra.mrb[108].mxu0 %v8603_v8  ;;  %3090 = vmatmul.mubr.bf16.gmra.mrb[108].mxu1 %v8603_v8  ;;  %v2782_v8 = vld [vmem:[#allocation2 + $0xf0] sm:$0xff] }
 0x40a   :  { %3432 = vmatprep.mubr.bf16.mxu0 %v9720_v59  ;;  %3485 = vmatprep.mubr.bf16.mxu1 %v9720_v59 }
 0x40b   :  { %3405 = vmatpush1.bf16.msra.mxu0 %v8670_v0  ;;  %3458 = vmatpush1.bf16.msra.mxu1 %v8675_v1 }
 0x40c   :  { %3406 = vmatprep.subr.bf16.mxu0 %v8684_v14  ;;  %3459 = vmatprep.subr.bf16.mxu1 %v8689_v15 }
 0x40f   :  { %3407 = vmatpush1.bf16.msra.mxu0 %v8694_v16  ;;  %3460 = vmatpush1.bf16.msra.mxu1 %v8699_v17 }
 0x410   :  { %3408 = vmatprep.subr.bf16.mxu0 %v8708_v20  ;;  %3461 = vmatprep.subr.bf16.mxu1 %v8713_v21 }
 0x413   :  { %3409 = vmatpush1.bf16.msra.mxu0 %v8718_v23  ;;  %3462 = vmatpush1.bf16.msra.mxu1 %v8723_v24 }
 0x414   :  { %3410 = vmatprep.subr.bf16.mxu0 %v8732_v47  ;;  %3463 = vmatprep.subr.bf16.mxu1 %v8737_v49 }
 0x417   :  { %3411 = vmatpush1.bf16.msra.mxu0 %v8742_v57  ;;  %3464 = vmatpush1.bf16.msra.mxu1 %v8747_v55 }
 0x418   :  { %3412 = vmatprep.subr.bf16.mxu0 %v8756_v22  ;;  %3465 = vmatprep.subr.bf16.mxu1 %v8761_v30 }
 0x41b   :  { %3413 = vmatpush1.bf16.msra.mxu0 %v8766_v43  ;;  %3466 = vmatpush1.bf16.msra.mxu1 %v8771_v19 }
 0x41c   :  { %3414 = vmatprep.subr.bf16.mxu0 %v8780_v44  ;;  %3467 = vmatprep.subr.bf16.mxu1 %v8785_v2 }
 0x41f   :  { %3415 = vmatpush1.bf16.msra.mxu0 %v8790_v45  ;;  %3468 = vmatpush1.bf16.msra.mxu1 %v8795_v53 }
 0x420   :  { %3806 = vmatprep.subr.bf16.mxu0 %v8612_v12  ;;  %3859 = vmatprep.subr.bf16.mxu1 %v8617_v62 }
 0x4d2   :  { %v3028_v50 = vpop.f32.mrb[104].mxu0  ;;  %v3081_v27 = vpop.f32.mrb[104].mxu1 }
 0x4d3   :  { %v3100_v35 = vadd.f32 %v3028_v50, %v2784_v52  ;;  %v3030_v61 = vpop.f32.mrb[105].mxu0  ;;  %v3083_v37 = vpop.f32.mrb[105].mxu1  ;;  %v3102_v56 = vadd.f32 %v3081_v27, %v2786_v18  ;;  %v2779_v50 = vld [vmem:[#allocation2 + $0xd8] sm:$0xff]  ;;  %v2794_v27 = vunpack.c.l.bf16 %v2782_v8 }
 0x4d4   :  { %v3101_v39 = vadd.f32 %v3030_v61, %v2785_v28  ;;  %v3032_v58 = vpop.f32.mrb[106].mxu0  ;;  %v3085_v11 = vpop.f32.mrb[106].mxu1  ;;  %v2793_v61 = vunpack.c.l.bf16 %v2781_v51  ;;  %v2787_v40 = vunpack.c.l.bf16 %v2779_v50  ;;  %v2791_v62 = vunpack.c.h.bf16 %v2779_v50 }
 0x4d5   :  { %7079 = vtanh.f32 %v3100_v35  ;;  %v3104_v7 = vadd.f32 %v3032_v58, %v2788_v38  ;;  %v3034_v26 = vpop.f32.mrb[107].mxu0  ;;  %v3087_v48 = vpop.f32.mrb[107].mxu1  ;;  %v3106_v52 = vadd.f32 %v3085_v11, %v2790_v31  ;;  %v2796_v58 = vunpack.c.h.bf16 %v2780_v46  ;;  %v2783_v46 = vld [vmem:[#allocation2 + $0xf8] sm:$0xff] }
 0x4d6   :  { %7081 = vtanh.f32 %v3101_v39  ;;  %v3105_v36 = vadd.f32 %v3034_v26, %v2789_v32  ;;  %v2797_v11 = vunpack.c.h.bf16 %v2781_v51  ;;  %v3103_v42 = vadd.f32 %v3083_v37, %v2787_v40 }
 0x4d7   :  { %7083 = vtanh.f32 %v3102_v56  ;;  %v3107_v53 = vadd.f32 %v3087_v48, %v2791_v62 }
 0x4d8   :  { %7085 = vtanh.f32 %v3104_v7 }
 0x4d9   :  { %7087 = vtanh.f32 %v3105_v36  ;;  %v2798_v36 = vunpack.c.h.bf16 %v2782_v8 }
 0x4da   :  { %7089 = vtanh.f32 %v3106_v52 }
 0x4dc   :  { %v3038_v18 = vpop.f32.mrb[108].mxu0  ;;  %v3091_v28 = vpop.f32.mrb[108].mxu1 }
 0x4dd   :  { %v3108_v35 = vadd.f32 %v3038_v18, %v2792_v29  ;;  %v3040_v54 = vpop.f32.mrb[109].mxu0  ;;  %v3093_v38 = vpop.f32.mrb[109].mxu1  ;;  %v3110_v39 = vadd.f32 %v3091_v28, %v2794_v27 }
 0x4de   :  { %v3109_v26 = vadd.f32 %v3040_v54, %v2793_v61  ;;  %v3042_v32 = vpop.f32.mrb[110].mxu0  ;;  %v3095_v33 = vpop.f32.mrb[110].mxu1  ;;  %v2795_v54 = vunpack.c.l.bf16 %v2783_v46 }
 0x4df   :  { %7091 = vtanh.f32 %v3108_v35  ;;  %v3112_v31 = vadd.f32 %v3042_v32, %v2796_v58  ;;  %v3044_v7 = vpop.f32.mrb[111].mxu0  ;;  %v3097_v56 = vpop.f32.mrb[111].mxu1  ;;  %v3114_v27 = vadd.f32 %v3095_v33, %v2798_v36 }
 0x4e0   :  { %v7080_v12 = vpop.eup %7079  ;;  %7093 = vtanh.f32 %v3109_v26  ;;  %v3113_v29 = vadd.f32 %v3044_v7, %v2797_v11  ;;  %v2799_v26 = vunpack.c.h.bf16 %v2783_v46 }
 0x4e1   :  { %v3132_v18 = vmul.f32 0.5, %v7080_v12  ;;  %7095 = vtanh.f32 %v3110_v39  ;;  %v7082_v52 = vpop.eup %7081  ;;  %v3111_v39 = vadd.f32 %v3093_v38, %v2795_v54 }
 0x4e2   :  { %7097 = vtanh.f32 %v3112_v31  ;;  %v7084_v28 = vpop.eup %7083  ;;  %v3140_v35 = vmul.f32 0.5, %v7082_v52  ;;  %v3115_v36 = vadd.f32 %v3097_v56, %v2799_v26 }
 0x4e3   :  { %v3136_v61 = vadd.f32 0.5, %v3132_v18  ;;  %7099 = vtanh.f32 %v3103_v42  ;;  %v7086_v51 = vpop.eup %7085 }
 0x4e4   :  { %7101 = vtanh.f32 %v3113_v29  ;;  %v3144_v37 = vadd.f32 0.5, %v3140_v35  ;;  %v3133_v58 = vmul.f32 0.5, %v7086_v51  ;;  %v7088_v8 = vpop.eup %7087 }
 0x4e5   :  { %v3160_v50 = vmul.f32 %v7084_v28, %v3136_v61  ;;  %7103 = vtanh.f32 %v3107_v53  ;;  %v7090_v12 = vpop.eup %7089  ;;  %v3141_v40 = vmul.f32 0.5, %v7088_v8 }
 0x4e6   :  { %7105 = vtanh.f32 %v3114_v27  ;;  %v3156_v48 = vmul.f32 %v3144_v37, %v8570_v13  ;;  %v3137_v62 = vadd.f32 0.5, %v3133_v58 }
 0x4e7   :  { %v3145_v42 = vadd.f32 0.5, %v3141_v40  ;;  %7107 = vtanh.f32 %v3111_v39 }
 0x4e8   :  { %v8804_v32 = vadd.f32 %v3160_v50, %v3156_v48  ;;  %v3161_v31 = vmul.f32 %v7090_v12, %v3137_v62 }
 0x4e9   :  { %v7092_v33 = vpop.eup %7091  ;;  %v3157_v53 = vmul.f32 %v3145_v42, %v8574_v25 }
 0x4ea   :  { %v3134_v11 = vmul.f32 0.5, %v7092_v33  ;;  %v7094_v7 = vpop.eup %7093  ;;  %7109 = vtanh.f32 %v8804_v32 }
 0x4eb   :  { %v7096_v29 = vpop.eup %7095  ;;  %v3142_v52 = vmul.f32 0.5, %v7094_v7  ;;  %v8808_v38 = vadd.f32 %v3161_v31, %v3157_v53  ;;  %7111 = vtanh.f32 %v3115_v36 }
 0x4ec   :  { %v3138_v18 = vadd.f32 0.5, %v3134_v11  ;;  %v7098_v27 = vpop.eup %7097 }
 0x4ed   :  { %v7100_v13 = vpop.eup %7099  ;;  %v3146_v46 = vadd.f32 0.5, %v3142_v52  ;;  %v3135_v61 = vmul.f32 0.5, %v7098_v27  ;;  %7113 = vtanh.f32 %v8808_v38 }
 0x4ee   :  { %v3162_v28 = vmul.f32 %v7096_v29, %v3138_v18  ;;  %v7102_v35 = vpop.eup %7101  ;;  %v3148_v48 = vmul.f32 0.5, %v7100_v13 }
 0x4ef   :  { %v7104_v51 = vpop.eup %7103  ;;  %v3158_v56 = vmul.f32 %v3146_v46, %v8578_v41  ;;  %v3139_v25 = vadd.f32 0.5, %v3135_v61  ;;  %v3143_v54 = vmul.f32 0.5, %v7102_v35  ;;  %v9739_v61 = vld [vmem:[#allocation28_spill] sm:$0xff]  ;;  %v9740_v35 = vld [vmem:[#allocation26_spill] sm:$0xff] }
 0x4f0   :  { %v7106_v37 = vpop.eup %7105  ;;  %v3149_v62 = vmul.f32 0.5, %v7104_v51  ;;  %v3152_v26 = vadd.f32 0.5, %v3148_v48  ;;  %v9741_v51 = vld [vmem:[#allocation27_spill] sm:$0xff] }
 0x4f1   :  { %v8812_v50 = vadd.f32 %v3162_v28, %v3158_v56  ;;  %v3147_v58 = vadd.f32 0.5, %v3143_v54  ;;  %v3163_v8 = vmul.f32 %v7106_v37, %v3139_v25  ;;  %v7108_v40 = vpop.eup %7107  ;;  %v3182_v56 = vld [vmem:[#allocation2 + $0x100] sm:$0xff]  ;;  %v3184_v25 = vld [vmem:[#allocation2 + $0x110] sm:$0xff]  ;;  %v3183_v54 = vld [vmem:[#allocation2 + $0x108] sm:$0xff] }
 0x4f2   :  { %v3153_v42 = vadd.f32 0.5, %v3149_v62  ;;  %v3150_v36 = vmul.f32 0.5, %v7108_v40  ;;  %v3190_v37 = vunpack.c.l.bf16 %v3182_v56  ;;  %v3191_v48 = vunpack.c.l.bf16 %v3183_v54 }
 0x4f3   :  { %v3159_v12 = vmul.f32 %v3147_v58, %v8582_v34  ;;  %7115 = vtanh.f32 %v8812_v50 }
 0x4f4   :  { %v7110_v33 = vpop.eup %7109  ;;  %v3154_v18 = vadd.f32 0.5, %v3150_v36 }
 0x4f5   :  { %v8816_v39 = vadd.f32 %v3163_v8, %v3159_v12  ;;  %v7112_v41 = vpop.eup %7111  ;;  %v8819_v11 = vmul.f32 %v7110_v33, %v3152_v26  ;;  %v3192_v8 = vunpack.c.l.bf16 %v3184_v25 }
 0x4f6   :  { %v3151_v29 = vmul.f32 0.5, %v7112_v41  ;;  %v3194_v41 = vunpack.c.h.bf16 %v3182_v56 }
 0x4f7   :  { %7117 = vtanh.f32 %v8816_v39  ;;  %v7114_v31 = vpop.eup %7113  ;;  %9733 = vst [vmem:[#allocation29_spill] sm:$0xff] %v8819_v11 }
 0x4f8   :  { %v8821_v7 = vmul.f32 %v7114_v31, %v3153_v42  ;;  %v3155_v52 = vadd.f32 0.5, %v3151_v29 }
 0x4fa   :  { %9734 = vst [vmem:[#allocation30_spill] sm:$0xff] %v8821_v7  ;;  %v8825_v34 = vpack.c.bf16 %v8821_v7, %v8819_v11 }
 0x4fc   :  { %9735 = vst [vmem:[#allocation31_spill] sm:$0xff] %v8825_v34  ;;  %3433 = vmatmul.mubr.bf16.vlgmr.msra.gmra.mrb[112].mxu0 %v8825_v34  ;;  %3486 = vmatmul.mubr.bf16.vlgmr.msra.gmra.mrb[112].mxu1 %v8825_v34 }
 0x4fd   :  { %v7116_v53 = vpop.eup %7115  ;;  %3442 = vmatprep.mubr.bf16.mxu0 %v9720_v59  ;;  %3495 = vmatprep.mubr.bf16.mxu1 %v9720_v59 }
 0x4fe   :  { %3807 = vmatpush1.bf16.msra.mxu0 %v8622_v3  ;;  %3860 = vmatpush1.bf16.msra.mxu1 %v8627_v60  ;;  %v8835_v13 = vmul.f32 %v7116_v53, %v3154_v18  ;;  %v3195_v53 = vunpack.c.h.bf16 %v3183_v54 }
 0x4ff   :  { %3808 = vmatprep.subr.bf16.mxu0 %v8636_v4  ;;  %3861 = vmatprep.subr.bf16.mxu1 %v8641_v9 }
 0x500   :  { %9736 = vst [vmem:[#allocation32_spill] sm:$0xff] %v8835_v13 }
 0x501   :  { %v7118_v27 = vpop.eup %7117 }
 0x502   :  { %v8837_v46 = vmul.f32 %v7118_v27, %v3155_v52  ;;  %3809 = vmatpush1.bf16.msra.mxu0 %v8646_v63  ;;  %3862 = vmatpush1.bf16.msra.mxu1 %v8651_v10  ;;  %v3196_v27 = vunpack.c.h.bf16 %v3184_v25 }
 0x503   :  { %3810 = vmatprep.subr.bf16.mxu0 %v8660_v5  ;;  %3863 = vmatprep.subr.bf16.mxu1 %v8665_v6 }
 0x504   :  { %9737 = vst [vmem:[#allocation33_spill] sm:$0xff] %v8837_v46  ;;  %v8841_v28 = vpack.c.bf16 %v8837_v46, %v8835_v13  ;;  %v3188_v46 = vld [vmem:[#allocation2 + $0x130] sm:$0xff]  ;;  %v3187_v13 = vld [vmem:[#allocation2 + $0x128] sm:$0xff] }
 0x506   :  { %9738 = vst [vmem:[#allocation34_spill] sm:$0xff] %v8841_v28  ;;  %3443 = vmatmul.mubr.bf16.gmra.mrb[116].mxu0 %v8841_v28  ;;  %3496 = vmatmul.mubr.bf16.gmra.mrb[116].mxu1 %v8841_v28 }
 0x507   :  { %3838 = vmatprep.mubr.bf16.mxu0 %v9720_v59  ;;  %3891 = vmatprep.mubr.bf16.mxu1 %v9720_v59 }
 0x508   :  { %3811 = vmatpush1.bf16.msra.mxu0 %v8670_v0  ;;  %3864 = vmatpush1.bf16.msra.mxu1 %v8675_v1 }
 0x509   :  { %3812 = vmatprep.subr.bf16.mxu0 %v8684_v14  ;;  %3865 = vmatprep.subr.bf16.mxu1 %v8689_v15 }
 0x50c   :  { %3813 = vmatpush1.bf16.msra.mxu0 %v8694_v16  ;;  %3866 = vmatpush1.bf16.msra.mxu1 %v8699_v17 }
 0x50d   :  { %3814 = vmatprep.subr.bf16.mxu0 %v8708_v20  ;;  %3867 = vmatprep.subr.bf16.mxu1 %v8713_v21 }
 0x510   :  { %3815 = vmatpush1.bf16.msra.mxu0 %v8718_v23  ;;  %3868 = vmatpush1.bf16.msra.mxu1 %v8723_v24 }
 0x511   :  { %3816 = vmatprep.subr.bf16.mxu0 %v8732_v47  ;;  %3869 = vmatprep.subr.bf16.mxu1 %v8737_v49 }
 0x514   :  { %3817 = vmatpush1.bf16.msra.mxu0 %v8742_v57  ;;  %3870 = vmatpush1.bf16.msra.mxu1 %v8747_v55 }
 0x515   :  { %3818 = vmatprep.subr.bf16.mxu0 %v8756_v22  ;;  %3871 = vmatprep.subr.bf16.mxu1 %v8761_v30 }
 0x518   :  { %3819 = vmatpush1.bf16.msra.mxu0 %v8766_v43  ;;  %3872 = vmatpush1.bf16.msra.mxu1 %v8771_v19 }
 0x519   :  { %3820 = vmatprep.subr.bf16.mxu0 %v8780_v44  ;;  %3873 = vmatprep.subr.bf16.mxu1 %v8785_v2 }
 0x51c   :  { %3821 = vmatpush1.bf16.msra.mxu0 %v8790_v45  ;;  %3874 = vmatpush1.bf16.msra.mxu1 %v9739_v61 }
 0x51d   :  { %4212 = vmatprep.subr.bf16.mxu0 %v9740_v35  ;;  %4265 = vmatprep.subr.bf16.mxu1 %v9741_v51  ;;  %v3186_v35 = vld [vmem:[#allocation2 + $0x120] sm:$0xff] }
 0x51e   :  { %v3198_v56 = vunpack.c.l.bf16 %v3186_v35 }
 0x5cf   :  { %v3434_v58 = vpop.f32.mrb[112].mxu0  ;;  %v3487_v12 = vpop.f32.mrb[112].mxu1 }
 0x5d0   :  { %v3506_v62 = vadd.f32 %v3434_v58, %v3190_v37  ;;  %v3436_v40 = vpop.f32.mrb[113].mxu0  ;;  %v3489_v33 = vpop.f32.mrb[113].mxu1  ;;  %v3508_v26 = vadd.f32 %v3487_v12, %v3192_v8  ;;  %v3185_v58 = vld [vmem:[#allocation2 + $0x118] sm:$0xff]  ;;  %v3200_v12 = vunpack.c.l.bf16 %v3188_v46 }
 0x5d1   :  { %v3507_v42 = vadd.f32 %v3436_v40, %v3191_v48  ;;  %v3438_v31 = vpop.f32.mrb[114].mxu0  ;;  %v3491_v36 = vpop.f32.mrb[114].mxu1  ;;  %v3199_v40 = vunpack.c.l.bf16 %v3187_v13  ;;  %v3193_v25 = vunpack.c.l.bf16 %v3185_v58  ;;  %v3197_v28 = vunpack.c.h.bf16 %v3185_v58 }
 0x5d2   :  { %7119 = vtanh.f32 %v3506_v62  ;;  %v3510_v29 = vadd.f32 %v3438_v31, %v3194_v41  ;;  %v3440_v18 = vpop.f32.mrb[115].mxu0  ;;  %v3493_v52 = vpop.f32.mrb[115].mxu1  ;;  %v3512_v37 = vadd.f32 %v3491_v36, %v3196_v27  ;;  %v3202_v31 = vunpack.c.h.bf16 %v3186_v35  ;;  %v3189_v35 = vld [vmem:[#allocation2 + $0x138] sm:$0xff] }
 0x5d3   :  { %7121 = vtanh.f32 %v3507_v42  ;;  %v3511_v51 = vadd.f32 %v3440_v18, %v3195_v53  ;;  %v3203_v36 = vunpack.c.h.bf16 %v3187_v13  ;;  %v3509_v11 = vadd.f32 %v3489_v33, %v3193_v25 }
 0x5d4   :  { %7123 = vtanh.f32 %v3508_v26  ;;  %v3513_v61 = vadd.f32 %v3493_v52, %v3197_v28 }
 0x5d5   :  { %7125 = vtanh.f32 %v3510_v29 }
 0x5d6   :  { %7127 = vtanh.f32 %v3511_v51  ;;  %v3204_v51 = vunpack.c.h.bf16 %v3188_v46 }
 0x5d7   :  { %7129 = vtanh.f32 %v3512_v37 }
 0x5d9   :  { %v3444_v8 = vpop.f32.mrb[116].mxu0  ;;  %v3497_v48 = vpop.f32.mrb[116].mxu1 }
 0x5da   :  { %v3514_v62 = vadd.f32 %v3444_v8, %v3198_v56  ;;  %v3446_v54 = vpop.f32.mrb[117].mxu0  ;;  %v3499_v41 = vpop.f32.mrb[117].mxu1  ;;  %v3516_v42 = vadd.f32 %v3497_v48, %v3200_v12 }
 0x5db   :  { %v3515_v53 = vadd.f32 %v3446_v54, %v3199_v40  ;;  %v3448_v18 = vpop.f32.mrb[118].mxu0  ;;  %v3501_v7 = vpop.f32.mrb[118].mxu1  ;;  %v3201_v54 = vunpack.c.l.bf16 %v3189_v35 }
 0x5dc   :  { %7131 = vtanh.f32 %v3514_v62  ;;  %v3518_v26 = vadd.f32 %v3448_v18, %v3202_v31  ;;  %v3450_v29 = vpop.f32.mrb[119].mxu0  ;;  %v3503_v27 = vpop.f32.mrb[119].mxu1  ;;  %v3520_v12 = vadd.f32 %v3501_v7, %v3204_v51 }
 0x5dd   :  { %v7120_v34 = vpop.eup %7119  ;;  %7133 = vtanh.f32 %v3515_v53  ;;  %v3519_v56 = vadd.f32 %v3450_v29, %v3203_v36  ;;  %v3205_v53 = vunpack.c.h.bf16 %v3189_v35 }
 0x5de   :  { %v3538_v8 = vmul.f32 0.5, %v7120_v34  ;;  %7135 = vtanh.f32 %v3516_v42  ;;  %v7122_v37 = vpop.eup %7121  ;;  %v3517_v42 = vadd.f32 %v3499_v41, %v3201_v54 }
 0x5df   :  { %7137 = vtanh.f32 %v3518_v26  ;;  %v7124_v48 = vpop.eup %7123  ;;  %v3546_v62 = vmul.f32 0.5, %v7122_v37  ;;  %v3521_v51 = vadd.f32 %v3503_v27, %v3205_v53 }
 0x5e0   :  { %v3542_v40 = vadd.f32 0.5, %v3538_v8  ;;  %7139 = vtanh.f32 %v3509_v11  ;;  %v7126_v13 = vpop.eup %7125 }
 0x5e1   :  { %7141 = vtanh.f32 %v3519_v56  ;;  %v3550_v33 = vadd.f32 0.5, %v3546_v62  ;;  %v3539_v31 = vmul.f32 0.5, %v7126_v13  ;;  %v7128_v46 = vpop.eup %7127 }
 0x5e2   :  { %v3566_v58 = vmul.f32 %v7124_v48, %v3542_v40  ;;  %7143 = vtanh.f32 %v3513_v61  ;;  %v7130_v34 = vpop.eup %7129  ;;  %v3547_v25 = vmul.f32 0.5, %v7128_v46 }
 0x5e3   :  { %7145 = vtanh.f32 %v3520_v12  ;;  %v3562_v28 = vmul.f32 %v3550_v33, %v8804_v32  ;;  %v3543_v52 = vadd.f32 0.5, %v3539_v31 }
 0x5e4   :  { %v3551_v11 = vadd.f32 0.5, %v3547_v25  ;;  %7147 = vtanh.f32 %v3517_v42 }
 0x5e5   :  { %v8876_v18 = vadd.f32 %v3566_v58, %v3562_v28  ;;  %v3567_v26 = vmul.f32 %v7130_v34, %v3543_v52 }
 0x5e6   :  { %v7132_v7 = vpop.eup %7131  ;;  %v3563_v61 = vmul.f32 %v3551_v11, %v8808_v38 }
 0x5e7   :  { %v3540_v36 = vmul.f32 0.5, %v7132_v7  ;;  %v7134_v29 = vpop.eup %7133  ;;  %7149 = vtanh.f32 %v8876_v18 }
 0x5e8   :  { %v7136_v56 = vpop.eup %7135  ;;  %v3548_v37 = vmul.f32 0.5, %v7134_v29  ;;  %v8880_v41 = vadd.f32 %v3567_v26, %v3563_v61  ;;  %7151 = vtanh.f32 %v3521_v51 }
 0x5e9   :  { %v3544_v8 = vadd.f32 0.5, %v3540_v36  ;;  %v7138_v12 = vpop.eup %7137 }
 0x5ea   :  { %v7140_v32 = vpop.eup %7139  ;;  %v3552_v35 = vadd.f32 0.5, %v3548_v37  ;;  %v3541_v40 = vmul.f32 0.5, %v7138_v12  ;;  %7153 = vtanh.f32 %v8880_v41 }
 0x5eb   :  { %v3568_v48 = vmul.f32 %v7136_v56, %v3544_v8  ;;  %v7142_v62 = vpop.eup %7141  ;;  %v3554_v28 = vmul.f32 0.5, %v7140_v32 }
 0x5ec   :  { %v7144_v13 = vpop.eup %7143  ;;  %v3564_v27 = vmul.f32 %v3552_v35, %v8812_v50  ;;  %v3545_v38 = vadd.f32 0.5, %v3541_v40  ;;  %v3549_v54 = vmul.f32 0.5, %v7142_v62 }
 0x5ed   :  { %v7146_v33 = vpop.eup %7145  ;;  %v3555_v52 = vmul.f32 0.5, %v7144_v13  ;;  %v3558_v53 = vadd.f32 0.5, %v3554_v28 }
 0x5ee   :  { %v8884_v58 = vadd.f32 %v3568_v48, %v3564_v27  ;;  %v3553_v31 = vadd.f32 0.5, %v3549_v54  ;;  %v3569_v46 = vmul.f32 %v7146_v33, %v3545_v38  ;;  %v7148_v25 = vpop.eup %7147 }
 0x5ef   :  { %v3559_v11 = vadd.f32 0.5, %v3555_v52  ;;  %v3556_v51 = vmul.f32 0.5, %v7148_v25 }
 0x5f0   :  { %v3565_v34 = vmul.f32 %v3553_v31, %v8816_v39  ;;  %7155 = vtanh.f32 %v8884_v58 }
 0x5f1   :  { %v7150_v7 = vpop.eup %7149  ;;  %v3560_v8 = vadd.f32 0.5, %v3556_v51 }
 0x5f2   :  { %v8888_v42 = vadd.f32 %v3569_v46, %v3565_v34  ;;  %v7152_v50 = vpop.eup %7151  ;;  %v8891_v36 = vmul.f32 %v7150_v7, %v3558_v53 }
 0x5f3   :  { %v3557_v56 = vmul.f32 0.5, %v7152_v50 }
 0x5f4   :  { %7157 = vtanh.f32 %v8888_v42  ;;  %v7154_v26 = vpop.eup %7153 }
 0x5f5   :  { %v8893_v29 = vmul.f32 %v7154_v26, %v3559_v11  ;;  %v3561_v37 = vadd.f32 0.5, %v3557_v56 }
 0x5f7   :  { %v8897_v39 = vpack.c.bf16 %v8893_v29, %v8891_v36 }
 0x5f9   :  { %3839 = vmatmul.mubr.bf16.vlgmr.msra.gmra.mrb[120].mxu0 %v8897_v39  ;;  %3892 = vmatmul.mubr.bf16.vlgmr.msra.gmra.mrb[120].mxu1 %v8897_v39 }
 0x5fa   :  { %v7156_v61 = vpop.eup %7155  ;;  %3848 = vmatprep.mubr.bf16.mxu0 %v9720_v59  ;;  %3901 = vmatprep.mubr.bf16.mxu1 %v9720_v59 }
 0x5fb   :  { %4213 = vmatpush1.bf16.msra.mxu0 %v8622_v3  ;;  %4266 = vmatpush1.bf16.msra.mxu1 %v8627_v60  ;;  %v8907_v32 = vmul.f32 %v7156_v61, %v3560_v8  ;;  %v9742_v3 = vld [vmem:[#allocation28_spill] sm:$0xff] }
 0x5fc   :  { %4214 = vmatprep.subr.bf16.mxu0 %v8636_v4  ;;  %4267 = vmatprep.subr.bf16.mxu1 %v8641_v9  ;;  %v3588_v60 = vld [vmem:[#allocation2 + $0x140] sm:$0xff]  ;;  %v3590_v4 = vld [vmem:[#allocation2 + $0x150] sm:$0xff]  ;;  %v3589_v9 = vld [vmem:[#allocation2 + $0x148] sm:$0xff] }
 0x5fe   :  { %v7158_v12 = vpop.eup %7157 }
 0x5ff   :  { %v8909_v35 = vmul.f32 %v7158_v12, %v3561_v37  ;;  %4215 = vmatpush1.bf16.msra.mxu0 %v8646_v63  ;;  %4268 = vmatpush1.bf16.msra.mxu1 %v8651_v10  ;;  %v3596_v63 = vunpack.c.l.bf16 %v3588_v60 }
 0x600   :  { %4216 = vmatprep.subr.bf16.mxu0 %v8660_v5  ;;  %4269 = vmatprep.subr.bf16.mxu1 %v8665_v6  ;;  %v3598_v5 = vunpack.c.l.bf16 %v3590_v4 }
 0x601   :  { %v8913_v48 = vpack.c.bf16 %v8909_v35, %v8907_v32 }
 0x603   :  { %3849 = vmatmul.mubr.bf16.gmra.mrb[124].mxu0 %v8913_v48  ;;  %3902 = vmatmul.mubr.bf16.gmra.mrb[124].mxu1 %v8913_v48 }
 0x604   :  { %4244 = vmatprep.mubr.bf16.mxu0 %v9720_v59  ;;  %4297 = vmatprep.mubr.bf16.mxu1 %v9720_v59 }
 0x605   :  { %4217 = vmatpush1.bf16.msra.mxu0 %v8670_v0  ;;  %4270 = vmatpush1.bf16.msra.mxu1 %v8675_v1  ;;  %v3597_v0 = vunpack.c.l.bf16 %v3589_v9 }
 0x606   :  { %4218 = vmatprep.subr.bf16.mxu0 %v8684_v14  ;;  %4271 = vmatprep.subr.bf16.mxu1 %v8689_v15 }
 0x609   :  { %4219 = vmatpush1.bf16.msra.mxu0 %v8694_v16  ;;  %4272 = vmatpush1.bf16.msra.mxu1 %v8699_v17  ;;  %v3600_v16 = vunpack.c.h.bf16 %v3588_v60 }
 0x60a   :  { %4220 = vmatprep.subr.bf16.mxu0 %v8708_v20  ;;  %4273 = vmatprep.subr.bf16.mxu1 %v8713_v21 }
 0x60d   :  { %4221 = vmatpush1.bf16.msra.mxu0 %v8718_v23  ;;  %4274 = vmatpush1.bf16.msra.mxu1 %v8723_v24 }
 0x60e   :  { %4222 = vmatprep.subr.bf16.mxu0 %v8732_v47  ;;  %4275 = vmatprep.subr.bf16.mxu1 %v8737_v49  ;;  %v3601_v47 = vunpack.c.h.bf16 %v3589_v9 }
 0x611   :  { %4223 = vmatpush1.bf16.msra.mxu0 %v8742_v57  ;;  %4276 = vmatpush1.bf16.msra.mxu1 %v8747_v55  ;;  %v3602_v55 = vunpack.c.h.bf16 %v3590_v4 }
 0x612   :  { %4224 = vmatprep.subr.bf16.mxu0 %v8756_v22  ;;  %4277 = vmatprep.subr.bf16.mxu1 %v8761_v30  ;;  %v3592_v22 = vld [vmem:[#allocation2 + $0x160] sm:$0xff] }
 0x613   :  { %v3608_v31 = vunpack.c.h.bf16 %v3592_v22 }
 0x615   :  { %4225 = vmatpush1.bf16.msra.mxu0 %v8766_v43  ;;  %4278 = vmatpush1.bf16.msra.mxu1 %v8771_v19  ;;  %v3594_v43 = vld [vmem:[#allocation2 + $0x170] sm:$0xff]  ;;  %v3593_v19 = vld [vmem:[#allocation2 + $0x168] sm:$0xff] }
 0x616   :  { %4226 = vmatprep.subr.bf16.mxu0 %v8780_v44  ;;  %4279 = vmatprep.subr.bf16.mxu1 %v8785_v2  ;;  %v3591_v2 = vld [vmem:[#allocation2 + $0x158] sm:$0xff]  ;;  %v3606_v62 = vunpack.c.l.bf16 %v3594_v43  ;;  %v3605_v27 = vunpack.c.l.bf16 %v3593_v19  ;;  %v3609_v50 = vunpack.c.h.bf16 %v3593_v19  ;;  %v3610_v61 = vunpack.c.h.bf16 %v3594_v43 }
 0x617   :  { %v3599_v46 = vunpack.c.l.bf16 %v3591_v2  ;;  %v3603_v51 = vunpack.c.h.bf16 %v3591_v2 }
 0x619   :  { %4227 = vmatpush1.bf16.msra.mxu0 %v8790_v45  ;;  %4280 = vmatpush1.bf16.msra.mxu1 %v9742_v3  ;;  %v3604_v45 = vunpack.c.l.bf16 %v3592_v22  ;;  %v3595_v3 = vld [vmem:[#allocation2 + $0x178] sm:$0xff] }
 0x6cc   :  { %v3840_v10 = vpop.f32.mrb[120].mxu0  ;;  %v3893_v6 = vpop.f32.mrb[120].mxu1 }
 0x6cd   :  { %v3912_v1 = vadd.f32 %v3840_v10, %v3596_v63  ;;  %v3842_v14 = vpop.f32.mrb[121].mxu0  ;;  %v3895_v15 = vpop.f32.mrb[121].mxu1  ;;  %v3914_v17 = vadd.f32 %v3893_v6, %v3598_v5  ;;  %v3607_v6 = vunpack.c.l.bf16 %v3595_v3 }
 0x6ce   :  { %v3913_v20 = vadd.f32 %v3842_v14, %v3597_v0  ;;  %v3844_v21 = vpop.f32.mrb[122].mxu0  ;;  %v3897_v23 = vpop.f32.mrb[122].mxu1  ;;  %v3915_v26 = vadd.f32 %v3895_v15, %v3599_v46 }
 0x6cf   :  { %7159 = vtanh.f32 %v3912_v1  ;;  %v3916_v24 = vadd.f32 %v3844_v21, %v3600_v16  ;;  %v3846_v49 = vpop.f32.mrb[123].mxu0  ;;  %v3899_v57 = vpop.f32.mrb[123].mxu1  ;;  %v3918_v44 = vadd.f32 %v3897_v23, %v3602_v55 }
 0x6d0   :  { %7161 = vtanh.f32 %v3913_v20  ;;  %v3917_v30 = vadd.f32 %v3846_v49, %v3601_v47  ;;  %v3919_v12 = vadd.f32 %v3899_v57, %v3603_v51  ;;  %v3611_v47 = vunpack.c.h.bf16 %v3595_v3 }
 0x6d1   :  { %7163 = vtanh.f32 %v3914_v17 }
 0x6d2   :  { %7165 = vtanh.f32 %v3916_v24 }
 0x6d3   :  { %7167 = vtanh.f32 %v3917_v30 }
 0x6d4   :  { %7169 = vtanh.f32 %v3918_v44 }
 0x6d6   :  { %v3850_v40 = vpop.f32.mrb[124].mxu0  ;;  %v3903_v13 = vpop.f32.mrb[124].mxu1 }
 0x6d7   :  { %v3920_v38 = vadd.f32 %v3850_v40, %v3604_v45  ;;  %v3852_v54 = vpop.f32.mrb[125].mxu0  ;;  %v3905_v33 = vpop.f32.mrb[125].mxu1  ;;  %v3922_v34 = vadd.f32 %v3903_v13, %v3606_v62 }
 0x6d8   :  { %v3921_v28 = vadd.f32 %v3852_v54, %v3605_v27  ;;  %v3854_v52 = vpop.f32.mrb[126].mxu0  ;;  %v3907_v25 = vpop.f32.mrb[126].mxu1  ;;  %v3923_v23 = vadd.f32 %v3905_v33, %v3607_v6 }
 0x6d9   :  { %7171 = vtanh.f32 %v3920_v38  ;;  %v3924_v7 = vadd.f32 %v3854_v52, %v3608_v31  ;;  %v3856_v53 = vpop.f32.mrb[127].mxu0  ;;  %v3909_v11 = vpop.f32.mrb[127].mxu1  ;;  %v3926_v4 = vadd.f32 %v3907_v25, %v3610_v61 }
 0x6da   :  { %v7160_v56 = vpop.eup %7159  ;;  %7173 = vtanh.f32 %v3921_v28  ;;  %v3925_v8 = vadd.f32 %v3856_v53, %v3609_v50  ;;  %v3927_v43 = vadd.f32 %v3909_v11, %v3611_v47  ;;  %v6899_v47 = vld [vmem:[%s9672_s5 + $0x40] ss:$16 sps:$4 sm:$0xff]  }
 0x6db   :  { %v3944_v37 = vmul.f32 0.5, %v7160_v56  ;;  %7175 = vtanh.f32 %v3922_v34  ;;  %v7162_v60 = vpop.eup %7161 }
 0x6dc   :  { %7177 = vtanh.f32 %v3924_v7  ;;  %v7164_v9 = vpop.eup %7163  ;;  %v3952_v10 = vmul.f32 0.5, %v7162_v60 }
 0x6dd   :  { %v3948_v63 = vadd.f32 0.5, %v3944_v37  ;;  %7179 = vtanh.f32 %v3915_v26  ;;  %v7166_v5 = vpop.eup %7165 }
 0x6de   :  { %7181 = vtanh.f32 %v3925_v8  ;;  %v3956_v0 = vadd.f32 0.5, %v3952_v10  ;;  %v3945_v14 = vmul.f32 0.5, %v7166_v5  ;;  %v7168_v15 = vpop.eup %7167 }
 0x6df   :  { %v3972_v1 = vmul.f32 %v7164_v9, %v3948_v63  ;;  %7183 = vtanh.f32 %v3919_v12  ;;  %v7170_v16 = vpop.eup %7169  ;;  %v3953_v21 = vmul.f32 0.5, %v7168_v15  ;;  %v6892_v15 = vld [vmem:[%s9672_s5 + $0xc] ss:$16 sps:$4 sm:$0xff]  }
 0x6e0   :  { %7185 = vtanh.f32 %v3926_v4  ;;  %v3968_v17 = vmul.f32 %v3956_v0, %v8876_v18  ;;  %v3949_v20 = vadd.f32 0.5, %v3945_v14  ;;  %v6887_v14 = vld [vmem:[%s9672_s5] ss:$16 sps:$4 sm:$0xff]   ;;  %4671 = vmatprep.subr.bf16.mxu1 %v6892_v15 }
 0x6e1   :  { %v3957_v57 = vadd.f32 0.5, %v3953_v21  ;;  %7187 = vtanh.f32 %v3923_v23  ;;  %v6898_v21 = vld [vmem:[%s9672_s5 + $0x2c] ss:$16 sps:$4 sm:$0xff]   ;;  %v6896_v23 = vld [vmem:[%s9672_s5 + $0x28] ss:$16 sps:$4 sm:$0xff]  }
 0x6e2   :  { %v8946_v49 = vadd.f32 %v3972_v1, %v3968_v17  ;;  %v3973_v55 = vmul.f32 %v7170_v16, %v3949_v20  ;;  %v6889_v1 = vld [vmem:[%s9672_s5 + $0x4] ss:$16 sps:$4 sm:$0xff]   ;;  %v6890_v16 = vld [vmem:[%s9672_s5 + $0x8] ss:$16 sps:$4 sm:$0xff]   ;;  %v6893_v20 = vld [vmem:[%s9672_s5 + $0x20] ss:$16 sps:$4 sm:$0xff]  }
 0x6e3   :  { %v7172_v24 = vpop.eup %7171  ;;  %v3969_v44 = vmul.f32 %v3957_v57, %v8880_v41  ;;  %4618 = vmatprep.subr.bf16.mxu0 %v6889_v1  ;;  %v6895_v17 = vld [vmem:[%s9672_s5 + $0x24] ss:$16 sps:$4 sm:$0xff]   ;;  %v6904_v57 = vld [vmem:[%s9672_s5 + $0x4c] ss:$16 sps:$4 sm:$0xff]  }
 0x6e4   :  { %v3946_v22 = vmul.f32 0.5, %v7172_v24  ;;  %v7174_v30 = vpop.eup %7173  ;;  %7189 = vtanh.f32 %v8946_v49  ;;  %v6901_v24 = vld [vmem:[%s9672_s5 + $0x44] ss:$16 sps:$4 sm:$0xff]  }
 0x6e5   :  { %v7176_v19 = vpop.eup %7175  ;;  %v3954_v45 = vmul.f32 0.5, %v7174_v30  ;;  %v8950_v62 = vadd.f32 %v3973_v55, %v3969_v44  ;;  %7191 = vtanh.f32 %v3927_v43  ;;  %v6902_v55 = vld [vmem:[%s9672_s5 + $0x48] ss:$16 sps:$4 sm:$0xff]   ;;  %v6905_v30 = vld [vmem:[%s9672_s5 + $0x60] ss:$16 sps:$4 sm:$0xff]  }
 0x6e6   :  { %v3950_v2 = vadd.f32 0.5, %v3946_v22  ;;  %v7178_v40 = vpop.eup %7177  ;;  %v6907_v22 = vld [vmem:[%s9672_s5 + $0x64] ss:$16 sps:$4 sm:$0xff]   ;;  %v6910_v43 = vld [vmem:[%s9672_s5 + $0x6c] ss:$16 sps:$4 sm:$0xff]  }
 0x6e7   :  { %v7180_v18 = vpop.eup %7179  ;;  %v3958_v13 = vadd.f32 0.5, %v3954_v45  ;;  %v3947_v38 = vmul.f32 0.5, %v7178_v40  ;;  %7193 = vtanh.f32 %v8950_v62  ;;  %v6913_v44 = vld [vmem:[%s9672_s5 + $0x84] ss:$16 sps:$4 sm:$0xff]   ;;  %v6916_v45 = vld [vmem:[%s9672_s5 + $0x8c] ss:$16 sps:$4 sm:$0xff]  }
 0x6e8   :  { %v3974_v27 = vmul.f32 %v7176_v19, %v3950_v2  ;;  %v7182_v54 = vpop.eup %7181  ;;  %v3960_v50 = vmul.f32 0.5, %v7180_v18  ;;  %v6908_v19 = vld [vmem:[%s9672_s5 + $0x68] ss:$16 sps:$4 sm:$0xff]   ;;  %v6911_v2 = vld [vmem:[%s9672_s5 + $0x80] ss:$16 sps:$4 sm:$0xff]  }
 0x6e9   :  { %v7184_v33 = vpop.eup %7183  ;;  %v3970_v31 = vmul.f32 %v3958_v13, %v8884_v58  ;;  %v3951_v41 = vadd.f32 0.5, %v3947_v38  ;;  %v3955_v46 = vmul.f32 0.5, %v7182_v54  ;;  %v6914_v40 = vld [vmem:[%s9672_s5 + $0x88] ss:$16 sps:$4 sm:$0xff]   ;;  %v6919_v18 = vld [vmem:[%s9672_s5 + $0xa4] ss:$16 sps:$4 sm:$0xff]  }
 0x6ea   :  { %v7186_v34 = vpop.eup %7185  ;;  %v3961_v53 = vmul.f32 0.5, %v7184_v33  ;;  %v3964_v56 = vadd.f32 0.5, %v3960_v50  ;;  %v6917_v13 = vld [vmem:[%s9672_s5 + $0xa0] ss:$16 sps:$4 sm:$0xff]   ;;  %v6920_v38 = vld [vmem:[%s9672_s5 + $0xa8] ss:$16 sps:$4 sm:$0xff]  }
 0x6eb   :  { %v8954_v28 = vadd.f32 %v3974_v27, %v3970_v31  ;;  %v3959_v52 = vadd.f32 0.5, %v3955_v46  ;;  %v3975_v25 = vmul.f32 %v7186_v34, %v3951_v41  ;;  %v7188_v11 = vpop.eup %7187  ;;  %v6922_v27 = vld [vmem:[%s9672_s5 + $0xac] ss:$16 sps:$4 sm:$0xff]   ;;  %v6925_v54 = vld [vmem:[%s9672_s5 + $0xc4] ss:$16 sps:$4 sm:$0xff]  }
 0x6ec   :  { %v3965_v61 = vadd.f32 0.5, %v3961_v53  ;;  %v3962_v3 = vmul.f32 0.5, %v7188_v11  ;;  %v6923_v33 = vld [vmem:[%s9672_s5 + $0xc0] ss:$16 sps:$4 sm:$0xff]   ;;  %v6928_v31 = vld [vmem:[%s9672_s5 + $0xcc] ss:$16 sps:$4 sm:$0xff]  }
 0x6ed   :  { %v3971_v7 = vmul.f32 %v3959_v52, %v8888_v42  ;;  %7195 = vtanh.f32 %v8954_v28  ;;  %v6926_v41 = vld [vmem:[%s9672_s5 + $0xc8] ss:$16 sps:$4 sm:$0xff]   ;;  %v6931_v46 = vld [vmem:[%s9672_s5 + $0xe4] ss:$16 sps:$4 sm:$0xff]   ;;  %v6929_v34 = vld [vmem:[%s9672_s5 + $0xe0] ss:$16 sps:$4 sm:$0xff]  }
 0x6ee   :  { %v7190_v51 = vpop.eup %7189  ;;  %v3966_v9 = vadd.f32 0.5, %v3962_v3  ;;  %v6934_v52 = vld [vmem:[%s9672_s5 + $0xec] ss:$16 sps:$4 sm:$0xff]   ;;  %v3994_v50 = vld [vmem:[#allocation2 + $0x180] sm:$0xff]  ;;  %v3996_v53 = vld [vmem:[#allocation2 + $0x190] sm:$0xff] }
 0x6ef   :  { %v8958_v26 = vadd.f32 %v3975_v25, %v3971_v7  ;;  %v7192_v58 = vpop.eup %7191  ;;  %v8961_v37 = vmul.f32 %v7190_v51, %v3964_v56  ;;  %v6932_v25 = vld [vmem:[%s9672_s5 + $0xe8] ss:$16 sps:$4 sm:$0xff]   ;;  %v9084_v7 = vld [vmem:[%s9673_s6] sm:$0xff]   ;;  %v4002_v51 = vunpack.c.l.bf16 %v3994_v50  ;;  %v4004_v56 = vunpack.c.l.bf16 %v3996_v53 }
 0x6f0   :  { %v3963_v60 = vmul.f32 0.5, %v7192_v58  ;;  %v3995_v11 = vld [vmem:[#allocation2 + $0x188] sm:$0xff] }
 0x6f1   :  { %7197 = vtanh.f32 %v8958_v26  ;;  %v7194_v8 = vpop.eup %7193 }
 0x6f2   :  { %v8963_v12 = vmul.f32 %v7194_v8, %v3965_v61  ;;  %v3967_v63 = vadd.f32 0.5, %v3963_v60  ;;  %v4003_v8 = vunpack.c.l.bf16 %v3995_v11 }
 0x6f4   :  { %v8967_v42 = vpack.c.bf16 %v8963_v12, %v8961_v37 }
 0x6f6   :  { %4245 = vmatmul.mubr.bf16.vlgmr.msra.gmra.mrb[128].mxu0 %v8967_v42  ;;  %4298 = vmatmul.mubr.bf16.vlgmr.msra.gmra.mrb[128].mxu1 %v8967_v42 }
 0x6f7   :  { %v7196_v4 = vpop.eup %7195  ;;  %4254 = vmatprep.mubr.bf16.mxu0 %v9720_v59  ;;  %4307 = vmatprep.mubr.bf16.mxu1 %v9720_v59 }
 0x6f8   :  { %v8973_v5 = vmul.f32 %v7196_v4, %v3966_v9  ;;  %4619 = vmatpush1.bf16.msra.mxu0 %v6887_v14  ;;  %4672 = vmatpush1.bf16.msra.mxu1 %v6890_v16  ;;  %v4006_v9 = vunpack.c.h.bf16 %v3994_v50  ;;  %v4007_v16 = vunpack.c.h.bf16 %v3995_v11 }
 0x6f9   :  { %4620 = vmatprep.subr.bf16.mxu0 %v6895_v17  ;;  %4673 = vmatprep.subr.bf16.mxu1 %v6898_v21  ;;  %v4008_v21 = vunpack.c.h.bf16 %v3996_v53 }
 0x6fb   :  { %v7198_v10 = vpop.eup %7197 }
 0x6fc   :  { %v8975_v6 = vmul.f32 %v7198_v10, %v3967_v63  ;;  %4621 = vmatpush1.bf16.msra.mxu0 %v6893_v20  ;;  %4674 = vmatpush1.bf16.msra.mxu1 %v6896_v23  ;;  %v3998_v23 = vld [vmem:[#allocation2 + $0x1a0] sm:$0xff] }
 0x6fd   :  { %4622 = vmatprep.subr.bf16.mxu0 %v6901_v24  ;;  %4675 = vmatprep.subr.bf16.mxu1 %v6904_v57  ;;  %v3999_v57 = vld [vmem:[#allocation2 + $0x1a8] sm:$0xff] }
 0x6fe   :  { %v8979_v0 = vpack.c.bf16 %v8975_v6, %v8973_v5 }
 0x700   :  { %4255 = vmatmul.mubr.bf16.gmra.mrb[132].mxu0 %v8979_v0  ;;  %4308 = vmatmul.mubr.bf16.gmra.mrb[132].mxu1 %v8979_v0 }
 0x701   :  { %4650 = vmatprep.mubr.bf16.mxu0 %v9720_v59  ;;  %4703 = vmatprep.mubr.bf16.mxu1 %v9720_v59 }
 0x702   :  { %4623 = vmatpush1.bf16.msra.mxu0 %v6899_v47  ;;  %4676 = vmatpush1.bf16.msra.mxu1 %v6902_v55  ;;  %v4000_v47 = vld [vmem:[#allocation2 + $0x1b0] sm:$0xff] }
 0x703   :  { %4624 = vmatprep.subr.bf16.mxu0 %v6907_v22  ;;  %4677 = vmatprep.subr.bf16.mxu1 %v6910_v43  ;;  %v3997_v22 = vld [vmem:[#allocation2 + $0x198] sm:$0xff]  ;;  %v4016_v11 = vunpack.c.h.bf16 %v4000_v47 }
 0x704   :  { %v4009_v50 = vunpack.c.h.bf16 %v3997_v22 }
 0x706   :  { %4625 = vmatpush1.bf16.msra.mxu0 %v6905_v30  ;;  %4678 = vmatpush1.bf16.msra.mxu1 %v6908_v19  ;;  %v4010_v30 = vunpack.c.l.bf16 %v3998_v23  ;;  %v4012_v19 = vunpack.c.l.bf16 %v4000_v47 }
 0x707   :  { %4626 = vmatprep.subr.bf16.mxu0 %v6913_v44  ;;  %4679 = vmatprep.subr.bf16.mxu1 %v6916_v45 }
 0x70a   :  { %4627 = vmatpush1.bf16.msra.mxu0 %v6911_v2  ;;  %4680 = vmatpush1.bf16.msra.mxu1 %v6914_v40  ;;  %v4011_v2 = vunpack.c.l.bf16 %v3999_v57 }
 0x70b   :  { %4628 = vmatprep.subr.bf16.mxu0 %v6919_v18  ;;  %4681 = vmatprep.subr.bf16.mxu1 %v6922_v27  ;;  %v4005_v27 = vunpack.c.l.bf16 %v3997_v22 }
 0x70e   :  { %4629 = vmatpush1.bf16.msra.mxu0 %v6917_v13  ;;  %4682 = vmatpush1.bf16.msra.mxu1 %v6920_v38  ;;  %v4014_v13 = vunpack.c.h.bf16 %v3998_v23 }
 0x70f   :  { %4630 = vmatprep.subr.bf16.mxu0 %v6925_v54  ;;  %4683 = vmatprep.subr.bf16.mxu1 %v6928_v31 }
 0x712   :  { %4631 = vmatpush1.bf16.msra.mxu0 %v6923_v33  ;;  %4684 = vmatpush1.bf16.msra.mxu1 %v6926_v41 }
 0x713   :  { %4632 = vmatprep.subr.bf16.mxu0 %v6931_v46  ;;  %4685 = vmatprep.subr.bf16.mxu1 %v6934_v52  ;;  %v4015_v46 = vunpack.c.h.bf16 %v3999_v57 }
 0x716   :  { %4633 = vmatpush1.bf16.msra.mxu0 %v6929_v34  ;;  %4686 = vmatpush1.bf16.msra.mxu1 %v6932_v25 }
 0x717   :  { %6598 = vmatprep.subr.bf16.mxu0 %v9084_v7 }
 0x7c9   :  { %v4246_v58 = vpop.f32.mrb[128].mxu0  ;;  %v4299_v61 = vpop.f32.mrb[128].mxu1 }
 0x7ca   :  { %v4318_v3 = vadd.f32 %v4246_v58, %v4002_v51  ;;  %v4248_v60 = vpop.f32.mrb[129].mxu0  ;;  %v4301_v4 = vpop.f32.mrb[129].mxu1  ;;  %v4320_v63 = vadd.f32 %v4299_v61, %v4004_v56  ;;  %v4001_v61 = vld [vmem:[#allocation2 + $0x1b8] sm:$0xff] }
 0x7cb   :  { %v4319_v10 = vadd.f32 %v4248_v60, %v4003_v8  ;;  %v4250_v1 = vpop.f32.mrb[130].mxu0  ;;  %v4303_v14 = vpop.f32.mrb[130].mxu1  ;;  %v4321_v25 = vadd.f32 %v4301_v4, %v4005_v27  ;;  %v4017_v57 = vunpack.c.h.bf16 %v4001_v61 }
 0x7cc   :  { %7199 = vtanh.f32 %v4318_v3  ;;  %v4322_v15 = vadd.f32 %v4250_v1, %v4006_v9  ;;  %v4252_v17 = vpop.f32.mrb[131].mxu0  ;;  %v4305_v20 = vpop.f32.mrb[131].mxu1  ;;  %v4324_v55 = vadd.f32 %v4303_v14, %v4008_v21  ;;  %v4013_v1 = vunpack.c.l.bf16 %v4001_v61 }
 0x7cd   :  { %7201 = vtanh.f32 %v4319_v10  ;;  %v4323_v24 = vadd.f32 %v4252_v17, %v4007_v16  ;;  %v4325_v56 = vadd.f32 %v4305_v20, %v4009_v50 }
 0x7ce   :  { %7203 = vtanh.f32 %v4320_v63 }
 0x7cf   :  { %7205 = vtanh.f32 %v4322_v15 }
 0x7d0   :  { %7207 = vtanh.f32 %v4323_v24 }
 0x7d1   :  { %7209 = vtanh.f32 %v4324_v55 }
 0x7d3   :  { %v4256_v43 = vpop.f32.mrb[132].mxu0  ;;  %v4309_v44 = vpop.f32.mrb[132].mxu1 }
 0x7d4   :  { %v4326_v45 = vadd.f32 %v4256_v43, %v4010_v30  ;;  %v4258_v40 = vpop.f32.mrb[133].mxu0  ;;  %v4311_v18 = vpop.f32.mrb[133].mxu1  ;;  %v4328_v38 = vadd.f32 %v4309_v44, %v4012_v19 }
 0x7d5   :  { %v4327_v54 = vadd.f32 %v4258_v40, %v4011_v2  ;;  %v4260_v33 = vpop.f32.mrb[134].mxu0  ;;  %v4313_v31 = vpop.f32.mrb[134].mxu1  ;;  %v4329_v24 = vadd.f32 %v4311_v18, %v4013_v1 }
 0x7d6   :  { %7211 = vtanh.f32 %v4326_v45  ;;  %v4330_v41 = vadd.f32 %v4260_v33, %v4014_v13  ;;  %v4262_v34 = vpop.f32.mrb[135].mxu0  ;;  %v4315_v52 = vpop.f32.mrb[135].mxu1  ;;  %v4332_v3 = vadd.f32 %v4313_v31, %v4016_v11 }
 0x7d7   :  { %v7200_v53 = vpop.eup %7199  ;;  %7213 = vtanh.f32 %v4327_v54  ;;  %v4331_v51 = vadd.f32 %v4262_v34, %v4015_v46  ;;  %v4333_v44 = vadd.f32 %v4315_v52, %v4017_v57  ;;  %v6939_v57 = vld [vmem:[%s9673_s6 + $0x20] sm:$0xff]  }
 0x7d8   :  { %v4350_v58 = vmul.f32 0.5, %v7200_v53  ;;  %7215 = vtanh.f32 %v4328_v38  ;;  %v7202_v8 = vpop.eup %7201 }
 0x7d9   :  { %7217 = vtanh.f32 %v4330_v41  ;;  %v7204_v60 = vpop.eup %7203  ;;  %v4358_v63 = vmul.f32 0.5, %v7202_v8 }
 0x7da   :  { %v4354_v9 = vadd.f32 0.5, %v4350_v58  ;;  %7219 = vtanh.f32 %v4321_v25  ;;  %v7206_v10 = vpop.eup %7205 }
 0x7db   :  { %7221 = vtanh.f32 %v4331_v51  ;;  %v4362_v4 = vadd.f32 0.5, %v4358_v63  ;;  %v4351_v15 = vmul.f32 0.5, %v7206_v10  ;;  %v7208_v16 = vpop.eup %7207 }
 0x7dc   :  { %v4378_v14 = vmul.f32 %v7204_v60, %v4354_v9  ;;  %7223 = vtanh.f32 %v4325_v56  ;;  %v7210_v17 = vpop.eup %7209  ;;  %v4359_v23 = vmul.f32 0.5, %v7208_v16 }
 0x7dd   :  { %7225 = vtanh.f32 %v4332_v3  ;;  %v4374_v20 = vmul.f32 %v4362_v4, %v8946_v49  ;;  %v4355_v21 = vadd.f32 0.5, %v4351_v15 }
 0x7de   :  { %v4363_v22 = vadd.f32 0.5, %v4359_v23  ;;  %7227 = vtanh.f32 %v4329_v24 }
 0x7df   :  { %v9088_v55 = vadd.f32 %v4378_v14, %v4374_v20  ;;  %v4379_v30 = vmul.f32 %v7210_v17, %v4355_v21  ;;  %v6936_v14 = vld [vmem:[%s9673_s6 + $0x8] sm:$0xff]   ;;  %v6937_v20 = vld [vmem:[%s9673_s6 + $0x10] sm:$0xff]  }
 0x7e0   :  { %v7212_v47 = vpop.eup %7211  ;;  %v4375_v45 = vmul.f32 %v4363_v22, %v8950_v62  ;;  %v6940_v22 = vld [vmem:[%s9673_s6 + $0x28] sm:$0xff]  }
 0x7e1   :  { %v4352_v43 = vmul.f32 0.5, %v7212_v47  ;;  %v7214_v19 = vpop.eup %7213  ;;  %7229 = vtanh.f32 %v9088_v55  ;;  %v6938_v47 = vld [vmem:[%s9673_s6 + $0x18] sm:$0xff]  }
 0x7e2   :  { %v7216_v2 = vpop.eup %7215  ;;  %v4360_v13 = vmul.f32 0.5, %v7214_v19  ;;  %v9092_v18 = vadd.f32 %v4379_v30, %v4375_v45  ;;  %7231 = vtanh.f32 %v4333_v44  ;;  %v6941_v30 = vld [vmem:[%s9673_s6 + $0x30] sm:$0xff]   ;;  %v9744_v19 = vld [vmem:[#allocation13_spill] sm:$0xff]  ;;  %v9745_v44 = vld [vmem:[#allocation16_spill] sm:$0xff] }
 0x7e3   :  { %v4356_v40 = vadd.f32 0.5, %v4352_v43  ;;  %v7218_v27 = vpop.eup %7217  ;;  %v6942_v43 = vld [vmem:[%s9673_s6 + $0x38] sm:$0xff]   ;;  %v9747_v45 = vld [vmem:[#allocation22_spill] sm:$0xff] }
 0x7e4   :  { %v7220_v49 = vpop.eup %7219  ;;  %v4364_v38 = vadd.f32 0.5, %v4360_v13  ;;  %v4353_v33 = vmul.f32 0.5, %v7218_v27  ;;  %7233 = vtanh.f32 %v9092_v18  ;;  %v9749_v13 = vld [vmem:[#allocation31_spill] sm:$0xff]  ;;  %v9750_v27 = vld [vmem:[#allocation34_spill] sm:$0xff] }
 0x7e5   :  { %v4380_v54 = vmul.f32 %v7216_v2, %v4356_v40  ;;  %v7222_v31 = vpop.eup %7221  ;;  %v4366_v51 = vmul.f32 0.5, %v7220_v49  ;;  %v9746_v2 = vld [vmem:[#allocation19_spill] sm:$0xff]  ;;  %v9748_v40 = vld [vmem:[#allocation25_spill] sm:$0xff]  ;;  %v6943_v49 = vld [vmem:[%s9675_s8] sm:$0xff]  }
 0x7e6   :  { %v7224_v41 = vpop.eup %7223  ;;  %v4376_v46 = vmul.f32 %v4364_v38, %v8954_v28  ;;  %v4357_v62 = vadd.f32 0.5, %v4353_v33  ;;  %v4361_v34 = vmul.f32 0.5, %v7222_v31  ;;  %6646 = vmatprep.subr.bf16.mxu1 %v6943_v49  ;;  %v6944_v38 = vld [vmem:[%s9675_s8 + $0x8] sm:$0xff]   ;;  %v6950_v33 = vld [vmem:[%s9675_s8 + $0x38] sm:$0xff]   ;;  %v4400_v31 = vld [vmem:[#allocation2 + $0x1c0] sm:$0xff] }
 0x7e7   :  { %v7226_v52 = vpop.eup %7225  ;;  %v4367_v58 = vmul.f32 0.5, %v7224_v41  ;;  %v4370_v3 = vadd.f32 0.5, %v4366_v51  ;;  %v4402_v41 = vld [vmem:[#allocation2 + $0x1d0] sm:$0xff] }
 0x7e8   :  { %v9096_v25 = vadd.f32 %v4380_v54, %v4376_v46  ;;  %v4365_v50 = vadd.f32 0.5, %v4361_v34  ;;  %v4381_v53 = vmul.f32 %v7226_v52, %v4357_v62  ;;  %v7228_v56 = vpop.eup %7227  ;;  %v6949_v54 = vld [vmem:[%s9675_s8 + $0x30] sm:$0xff]   ;;  %v4401_v46 = vld [vmem:[#allocation2 + $0x1c8] sm:$0xff]  ;;  %v4408_v62 = vunpack.c.l.bf16 %v4400_v31 }
 0x7e9   :  { %v4371_v60 = vadd.f32 0.5, %v4367_v58  ;;  %v4368_v1 = vmul.f32 0.5, %v7228_v56  ;;  %v4410_v52 = vunpack.c.l.bf16 %v4402_v41  ;;  %v4412_v56 = vunpack.c.h.bf16 %v4400_v31 }
 0x7ea   :  { %v4377_v11 = vmul.f32 %v4365_v50, %v8958_v26  ;;  %7235 = vtanh.f32 %v9096_v25 }
 0x7eb   :  { %v7230_v8 = vpop.eup %7229  ;;  %v4372_v16 = vadd.f32 0.5, %v4368_v1 }
 0x7ec   :  { %v9100_v61 = vadd.f32 %v4381_v53, %v4377_v11  ;;  %v7232_v28 = vpop.eup %7231  ;;  %v9103_v63 = vmul.f32 %v7230_v8, %v4370_v3  ;;  %v4409_v53 = vunpack.c.l.bf16 %v4401_v46 }
 0x7ed   :  { %v4369_v4 = vmul.f32 0.5, %v7232_v28 }
 0x7ee   :  { %7237 = vtanh.f32 %v9100_v61  ;;  %v7234_v9 = vpop.eup %7233 }
 0x7ef   :  { %v9105_v10 = vmul.f32 %v7234_v9, %v4371_v60  ;;  %v4373_v17 = vadd.f32 0.5, %v4369_v4 }
 0x7f1   :  { %v4424_v26 = vpack.c.bf16 %v9105_v10, %v9103_v63 }
 0x7f3   :  { %4651 = vmatmul.mubr.bf16.vlgmr.msra.gmra.mrb[136].mxu0 %v4424_v26  ;;  %4704 = vmatmul.mubr.bf16.vlgmr.msra.gmra.mrb[136].mxu1 %v4424_v26 }
 0x7f4   :  { %v7236_v15 = vpop.eup %7235  ;;  %6599 = vmatpush3.bf16.msra.mxu0 %v9084_v7  ;;  %4660 = vmatprep.mubr.bf16.mxu0 %v9720_v59 }
 0x7f5   :  { %6600 = vmatprep.subr.bf16.mxu0 %v6936_v14  ;;  %4713 = vmatprep.mubr.bf16.mxu1 %v9720_v59  ;;  %v9118_v23 = vmul.f32 %v7236_v15, %v4372_v16  ;;  %v9743_v59 = vld [vmem:[#allocation10_spill] sm:$0xff]  ;;  %v4404_v15 = vld [vmem:[#allocation2 + $0x1e0] sm:$0xff] }
 0x7f6   :  { %6647 = vmatpush3.bf16.msra.mxu1 %v6943_v49 }
 0x7f7   :  { %6648 = vmatprep.subr.bf16.mxu1 %v6944_v38 }
 0x7f8   :  { %v7238_v21 = vpop.eup %7237  ;;  %6601 = vmatpush3.bf16.msra.mxu0 %v6936_v14  ;;  %v4414_v14 = vunpack.c.h.bf16 %v4402_v41 }
 0x7f9   :  { %v9120_v24 = vmul.f32 %v7238_v21, %v4373_v17  ;;  %6602 = vmatprep.subr.bf16.mxu0 %v6937_v20  ;;  %v4406_v17 = vld [vmem:[#allocation2 + $0x1f0] sm:$0xff] }
 0x7fa   :  { %6649 = vmatpush3.bf16.msra.mxu1 %v6944_v38 }
 0x7fb   :  { %v4425_v7 = vpack.c.bf16 %v9120_v24, %v9118_v23 }
 0x7fc   :  { %6603 = vmatpush3.bf16.msra.mxu0 %v6937_v20  ;;  %v4405_v20 = vld [vmem:[#allocation2 + $0x1e8] sm:$0xff] }
 0x7fd   :  { %4661 = vmatmul.mubr.bf16.gmra.mrb[140].mxu0 %v4425_v7  ;;  %4714 = vmatmul.mubr.bf16.gmra.mrb[140].mxu1 %v4425_v7 }
 0x7fe   :  { %6614 = vmatprep.mubr.bf16.mxu0 %v9743_v59  ;;  %6604 = vmatprep.subr.bf16.mxu0 %v6938_v47 }
 0x800   :  { %6605 = vmatpush3.bf16.msra.mxu0 %v6938_v47  ;;  %v4416_v47 = vunpack.c.l.bf16 %v4404_v15 }
 0x801   :  { %6606 = vmatprep.subr.bf16.mxu0 %v6939_v57 }
 0x804   :  { %6607 = vmatpush3.bf16.msra.mxu0 %v6939_v57  ;;  %v4418_v57 = vunpack.c.l.bf16 %v4406_v17 }
 0x805   :  { %6608 = vmatprep.subr.bf16.mxu0 %v6940_v22 }
 0x808   :  { %6609 = vmatpush3.bf16.msra.mxu0 %v6940_v22 }
 0x809   :  { %6610 = vmatprep.subr.bf16.mxu0 %v6941_v30 }
 0x80c   :  { %6611 = vmatpush3.bf16.msra.mxu0 %v6941_v30  ;;  %v4417_v30 = vunpack.c.l.bf16 %v4405_v20 }
 0x80d   :  { %6612 = vmatprep.subr.bf16.mxu0 %v6942_v43 }
 0x810   :  { %6613 = vmatpush3.bf16.msra.mxu0 %v6942_v43 }
 0x813   :  { %6615 = vmatmul.mubr.bf16.vlgmr.msra.gmra.mrb[144].mxu0 %v9744_v19 }
 0x814   :  { %6618 = vmatprep.mubr.bf16.mxu0 %v9745_v44 }
 0x81b   :  { %6619 = vmatmul.mubr.bf16.gmra.mrb[148].mxu0 %v9746_v2  ;;  %v4420_v2 = vunpack.c.h.bf16 %v4404_v15 }
 0x81c   :  { %6622 = vmatprep.mubr.bf16.mxu0 %v9747_v45 }
 0x823   :  { %6623 = vmatmul.mubr.bf16.gmra.mrb[152].mxu0 %v9748_v40 }
 0x824   :  { %6626 = vmatprep.mubr.bf16.mxu0 %v9749_v13 }
 0x82b   :  { %6627 = vmatmul.mubr.bf16.gmra.mrb[156].mxu0 %v9750_v27 }
 0x82c   :  { %6630 = vmatprep.mubr.bf16.mxu0 %v8897_v39  ;;  %v6945_v39 = vld [vmem:[%s9675_s8 + $0x10] sm:$0xff]  }
 0x82d   :  { %6650 = vmatprep.subr.bf16.mxu1 %v6945_v39 }
 0x82e   :  { %6651 = vmatpush3.bf16.msra.mxu1 %v6945_v39  ;;  %v4421_v39 = vunpack.c.h.bf16 %v4405_v20 }
 0x833   :  { %6631 = vmatmul.mubr.bf16.gmra.mrb[160].mxu0 %v8913_v48  ;;  %v6946_v48 = vld [vmem:[%s9675_s8 + $0x18] sm:$0xff]  }
 0x834   :  { %6634 = vmatprep.mubr.bf16.mxu0 %v8967_v42  ;;  %6652 = vmatprep.subr.bf16.mxu1 %v6946_v48  ;;  %v6947_v42 = vld [vmem:[%s9675_s8 + $0x20] sm:$0xff]  }
 0x835   :  { %6653 = vmatpush3.bf16.msra.mxu1 %v6946_v48 }
 0x836   :  { %6654 = vmatprep.subr.bf16.mxu1 %v6947_v42 }
 0x839   :  { %6655 = vmatpush3.bf16.msra.mxu1 %v6947_v42 }
 0x83b   :  { %6635 = vmatmul.mubr.bf16.gmra.mrb[164].mxu0 %v8979_v0  ;;  %v6948_v0 = vld [vmem:[%s9675_s8 + $0x28] sm:$0xff]  }
 0x83c   :  { %6638 = vmatprep.mubr.bf16.mxu0 %v4424_v26  ;;  %6656 = vmatprep.subr.bf16.mxu1 %v6948_v0  ;;  %v4413_v26 = vunpack.c.h.bf16 %v4401_v46 }
 0x83d   :  { %6657 = vmatpush3.bf16.msra.mxu1 %v6948_v0 }
 0x83e   :  { %6658 = vmatprep.subr.bf16.mxu1 %v6949_v54 }
 0x841   :  { %6659 = vmatpush3.bf16.msra.mxu1 %v6949_v54 }
 0x842   :  { %6660 = vmatprep.subr.bf16.mxu1 %v6950_v33 }
 0x843   :  { %6639 = vmatmul.mubr.bf16.gmra.mrb[168].mxu0 %v4425_v7  ;;  %v4403_v7 = vld [vmem:[#allocation2 + $0x1d8] sm:$0xff] }
 0x844   :  { %v4411_v45 = vunpack.c.l.bf16 %v4403_v7  ;;  %v4415_v46 = vunpack.c.h.bf16 %v4403_v7 }
 0x845   :  { %6661 = vmatpush3.bf16.msra.mxu1 %v6950_v33  ;;  %v4422_v33 = vunpack.c.h.bf16 %v4406_v17 }
 0x8c6   :  { %v4652_v34 = vpop.f32.mrb[136].mxu0  ;;  %v4705_v50 = vpop.f32.mrb[136].mxu1 }
 0x8c7   :  { %v4724_v11 = vadd.f32 %v4652_v34, %v4408_v62  ;;  %v4654_v51 = vpop.f32.mrb[137].mxu0  ;;  %v4707_v58 = vpop.f32.mrb[137].mxu1  ;;  %v4726_v8 = vadd.f32 %v4705_v50, %v4410_v52  ;;  %v4407_v62 = vld [vmem:[#allocation2 + $0x1f8] sm:$0xff] }
 0x8c8   :  { %v4725_v28 = vadd.f32 %v4654_v51, %v4409_v53  ;;  %v4656_v3 = vpop.f32.mrb[138].mxu0  ;;  %v4709_v60 = vpop.f32.mrb[138].mxu1  ;;  %v4727_v0 = vadd.f32 %v4707_v58, %v4411_v45  ;;  %v4423_v17 = vunpack.c.h.bf16 %v4407_v62 }
 0x8c9   :  { %7239 = vtanh.f32 %v4724_v11  ;;  %v4728_v9 = vadd.f32 %v4656_v3, %v4412_v56  ;;  %v4658_v1 = vpop.f32.mrb[139].mxu0  ;;  %v4711_v4 = vpop.f32.mrb[139].mxu1  ;;  %v4730_v21 = vadd.f32 %v4709_v60, %v4414_v14 }
 0x8ca   :  { %7241 = vtanh.f32 %v4725_v28  ;;  %v4729_v16 = vadd.f32 %v4658_v1, %v4413_v26  ;;  %v4731_v51 = vadd.f32 %v4711_v4, %v4415_v46 }
 0x8cb   :  { %7243 = vtanh.f32 %v4726_v8  ;;  %v4419_v8 = vunpack.c.l.bf16 %v4407_v62 }
 0x8cc   :  { %7245 = vtanh.f32 %v4728_v9 }
 0x8cd   :  { %7247 = vtanh.f32 %v4729_v16 }
 0x8ce   :  { %7249 = vtanh.f32 %v4730_v21 }
 0x8d0   :  { %v4662_v59 = vpop.f32.mrb[140].mxu0  ;;  %v4715_v22 = vpop.f32.mrb[140].mxu1 }
 0x8d1   :  { %v4732_v43 = vadd.f32 %v4662_v59, %v4416_v47  ;;  %v4664_v19 = vpop.f32.mrb[141].mxu0  ;;  %v4717_v44 = vpop.f32.mrb[141].mxu1  ;;  %v4734_v40 = vadd.f32 %v4715_v22, %v4418_v57 }
 0x8d2   :  { %v4733_v13 = vadd.f32 %v4664_v19, %v4417_v30  ;;  %v4666_v27 = vpop.f32.mrb[142].mxu0  ;;  %v4719_v49 = vpop.f32.mrb[142].mxu1  ;;  %v4735_v9 = vadd.f32 %v4717_v44, %v4419_v8 }
 0x8d3   :  { %7251 = vtanh.f32 %v4732_v43  ;;  %v4736_v38 = vadd.f32 %v4666_v27, %v4420_v2  ;;  %v4668_v48 = vpop.f32.mrb[143].mxu0  ;;  %v4721_v42 = vpop.f32.mrb[143].mxu1  ;;  %v4738_v52 = vadd.f32 %v4719_v49, %v4422_v33  ;;  %v9181_v33 = vld [vmem:[%s9674_s7] ss:$0 sm:$0xff]  ;;  %s6157_s7 = sshll.u32 %s7473_s1, 4  ;;  %s6158_s7 = int_to_ptr.vmem [resolvable:$true] %s6157_s7 }
 0x8d4   :  { %v7240_v54 = vpop.eup %7239  ;;  %7253 = vtanh.f32 %v4733_v13  ;;  %v4737_v31 = vadd.f32 %v4668_v48, %v4421_v39  ;;  %v4739_v59 = vadd.f32 %v4721_v42, %v4423_v17  ;;  %s7447_s15 = scalar_lea.vmem %s6158_s7, 512  ;;  %p7452_p1 = scmp.lt.s32.totalorder %s6158_s7, %s6158_s7 }
 0x8d5   :  { %v4756_v41 = vmul.f32 0.5, %v7240_v54  ;;  %7255 = vtanh.f32 %v4734_v40  ;;  %v7242_v34 = vpop.eup %7241  ;;  %p7448_p0 = scmp.ne.s32.totalorder %s6158_s7, %s7447_s15  ;;  %p7453_p2 = scmp.lt.s32.totalorder %s7447_s15, %s7447_s15 }
 0x8d6   :  { %7257 = vtanh.f32 %v4736_v38  ;;  %v7244_v50 = vpop.eup %7243  ;;  %v4764_v11 = vmul.f32 0.5, %v7242_v34 }
 0x8d7   :  { %v4760_v53 = vadd.f32 0.5, %v4756_v41  ;;  %7259 = vtanh.f32 %v4727_v0  ;;  %v7246_v56 = vpop.eup %7245  ;;  %p7454_p3 = por %p7453_p2, %p7452_p1 }
 0x8d8   :  { %7261 = vtanh.f32 %v4737_v31  ;;  %v4768_v58 = vadd.f32 0.5, %v4764_v11  ;;  %v4757_v3 = vmul.f32 0.5, %v7246_v56  ;;  %v7248_v60 = vpop.eup %7247 }
 0x8d9   :  { %v4784_v28 = vmul.f32 %v7244_v50, %v4760_v53  ;;  %7263 = vtanh.f32 %v4738_v52  ;;  %v7250_v26 = vpop.eup %7249  ;;  %v4765_v15 = vmul.f32 0.5, %v7248_v60  ;;  %p7455_p4 = pnand %p7454_p3, %p7448_p0 }
 0x8da   :  { %v4780_v1 = vmul.f32 %v4768_v58, %v9088_v55  ;;  %v4761_v14 = vadd.f32 0.5, %v4757_v3  ;;  %7265 = vtanh.f32 %v4731_v51 }
 0x8db   :  { %v4769_v21 = vadd.f32 0.5, %v4765_v15  ;;  %7267 = vtanh.f32 %v4735_v9 }
 0x8dc   :  { %v4788_v20 = vadd.f32 %v4784_v28, %v4780_v1  ;;  %v4785_v4 = vmul.f32 %v7250_v26, %v4761_v14 }
 0x8dd   :  { %v7252_v16 = vpop.eup %7251  ;;  %v4781_v22 = vmul.f32 %v4769_v21, %v9092_v18 }
 0x8de   :  { %v4758_v7 = vmul.f32 0.5, %v7252_v16  ;;  %v7254_v47 = vpop.eup %7253  ;;  %7269 = vtanh.f32 %v4788_v20 }
 0x8df   :  { %v7256_v57 = vpop.eup %7255  ;;  %v4766_v43 = vmul.f32 0.5, %v7254_v47  ;;  %v4789_v44 = vadd.f32 %v4785_v4, %v4781_v22  ;;  %7271 = vtanh.f32 %v4739_v59 }
 0x8e0   :  { %v4762_v30 = vadd.f32 0.5, %v4758_v7  ;;  %v7258_v19 = vpop.eup %7257 }
 0x8e1   :  { %v7260_v55 = vpop.eup %7259  ;;  %v4770_v2 = vadd.f32 0.5, %v4766_v43  ;;  %v4759_v40 = vmul.f32 0.5, %v7258_v19  ;;  %7273 = vtanh.f32 %v4789_v44 }
 0x8e2   :  { %v4786_v45 = vmul.f32 %v7256_v57, %v4762_v30  ;;  %v7262_v13 = vpop.eup %7261  ;;  %v4772_v48 = vmul.f32 0.5, %v7260_v55 }
 0x8e3   :  { %v4782_v27 = vmul.f32 %v4770_v2, %v9096_v25  ;;  %v4763_v49 = vadd.f32 0.5, %v4759_v40  ;;  %v4767_v38 = vmul.f32 0.5, %v7262_v13  ;;  %v7264_v39 = vpop.eup %7263 }
 0x8e4   :  { %v7266_v42 = vpop.eup %7265  ;;  %v4776_v62 = vadd.f32 0.5, %v4772_v48 }
 0x8e5   :  { %v4790_v0 = vadd.f32 %v4786_v45, %v4782_v27  ;;  %v4771_v18 = vadd.f32 0.5, %v4767_v38  ;;  %v4787_v54 = vmul.f32 %v7264_v39, %v4763_v49  ;;  %v7268_v46 = vpop.eup %7267  ;;  %v4773_v25 = vmul.f32 0.5, %v7266_v42 }
 0x8e6   :  { %v6616_v41 = vpop.f32.mrb[144].mxu0  ;;  %v4774_v60 = vmul.f32 0.5, %v7268_v46 }
 0x8e7   :  { %7275 = vtanh.f32 %v4790_v0  ;;  %v4783_v31 = vmul.f32 %v4771_v18, %v9100_v61  ;;  %v4967_v34 = vadd.f32 %v6616_v41, %v9181_v33  ;;  %v4958_v52 = vpop.f32.mrb[145].mxu0  ;;  %v4777_v3 = vadd.f32 0.5, %v4773_v25 }
 0x8e8   :  { %v7270_v50 = vpop.eup %7269  ;;  %v4959_v11 = vadd.f32 %v9181_v33, %v4958_v52  ;;  %v6617_v51 = vpop.f32.mrb[146].mxu0  ;;  %v4778_v14 = vadd.f32 0.5, %v4774_v60 }
 0x8e9   :  { %v4791_v53 = vadd.f32 %v4787_v54, %v4783_v31  ;;  %7277 = vtanh.f32 %v4967_v34  ;;  %v4970_v56 = vadd.f32 %v6617_v51, %v9181_v33  ;;  %v4961_v8 = vpop.f32.mrb[147].mxu0  ;;  %v9187_v58 = vmul.f32 %v7270_v50, %v4776_v62  ;;  %v7272_v28 = vpop.eup %7271 }
 0x8ea   :  { %v4962_v61 = vadd.f32 %v9181_v33, %v4961_v8  ;;  %v4775_v15 = vmul.f32 0.5, %v7272_v28 }
 0x8eb   :  { %7279 = vtanh.f32 %v4791_v53  ;;  %v7274_v9 = vpop.eup %7273 }
 0x8ec   :  { %7281 = vtanh.f32 %v4959_v11  ;;  %v9190_v26 = vmul.f32 %v7274_v9, %v4777_v3  ;;  %v4779_v43 = vadd.f32 0.5, %v4775_v15 }
 0x8ed   :  { %7283 = vtanh.f32 %v4970_v56 }
 0x8ee   :  { %7285 = vtanh.f32 %v4962_v61  ;;  %v6620_v1 = vpop.f32.mrb[148].mxu0  ;;  %v4851_v20 = vpack.c.bf16 %v9190_v26, %v9187_v58 }
 0x8ef   :  { %v4983_v16 = vadd.f32 %v6620_v1, %v9181_v33  ;;  %v4974_v17 = vpop.f32.mrb[149].mxu0 }
 0x8f0   :  { %v4975_v4 = vadd.f32 %v9181_v33, %v4974_v17  ;;  %v6621_v7 = vpop.f32.mrb[150].mxu0  ;;  %6642 = vmatprep.mubr.bf16.mxu0 %v4851_v20 }
 0x8f1   :  { %v7276_v21 = vpop.eup %7275  ;;  %7287 = vtanh.f32 %v4983_v16  ;;  %v4986_v47 = vadd.f32 %v6621_v7, %v9181_v33  ;;  %v4977_v59 = vpop.f32.mrb[151].mxu0 }
 0x8f2   :  { %v9197_v57 = vmul.f32 %v7276_v21, %v4778_v14  ;;  %7289 = vtanh.f32 %v4975_v4  ;;  %v4978_v22 = vadd.f32 %v9181_v33, %v4977_v59 }
 0x8f3   :  { %v7278_v30 = vpop.eup %7277  ;;  %7291 = vtanh.f32 %v4986_v47 }
 0x8f4   :  { %9751 = vst [vmem:[#allocation26_spill] sm:$0xff] %v9197_v57  ;;  %7293 = vtanh.f32 %v4978_v22 }
 0x8f5   :  { %v7280_v19 = vpop.eup %7279 }
 0x8f6   :  { %v7282_v55 = vpop.eup %7281  ;;  %v9200_v44 = vmul.f32 %v7280_v19, %v4779_v43  ;;  %v6624_v45 = vpop.f32.mrb[152].mxu0 }
 0x8f7   :  { %v7284_v2 = vpop.eup %7283  ;;  %v4999_v13 = vadd.f32 %v6624_v45, %v9181_v33  ;;  %v4990_v27 = vpop.f32.mrb[153].mxu0 }
 0x8f8   :  { %9752 = vst [vmem:[#allocation27_spill] sm:$0xff] %v9200_v44  ;;  %v7286_v40 = vpop.eup %7285  ;;  %v4852_v49 = vpack.c.bf16 %v9200_v44, %v9197_v57  ;;  %v5118_v38 = vpack.c.bf16 %v7284_v2, %v7278_v30  ;;  %v4991_v39 = vadd.f32 %v9181_v33, %v4990_v27  ;;  %v6625_v48 = vpop.f32.mrb[154].mxu0 }
 0x8f9   :  { %v5117_v42 = vpack.c.bf16 %v7286_v40, %v7282_v55  ;;  %7295 = vtanh.f32 %v4999_v13  ;;  %v5002_v0 = vadd.f32 %v6625_v48, %v9181_v33  ;;  %v4993_v18 = vpop.f32.mrb[155].mxu0 }
 0x8fa   :  { %6643 = vmatmul.mubr.bf16.gmra.mrb[172].mxu0 %v4852_v49  ;;  %7297 = vtanh.f32 %v4991_v39  ;;  %v4994_v54 = vadd.f32 %v9181_v33, %v4993_v18 }
 0x8fb   :  { %6662 = vmatprep.mubr.bf16.mxu1 %v5117_v42  ;;  %v7288_v31 = vpop.eup %7287  ;;  %7299 = vtanh.f32 %v5002_v0 }
 0x8fc   :  { %6663 = vmatmul.mubr.bf16.vlgmr.msra.gmra.mrb[144].mxu1 %v5118_v38  ;;  %v7290_v41 = vpop.eup %7289  ;;  %7301 = vtanh.f32 %v4994_v54 }
 0x8fd   :  { %v7292_v46 = vpop.eup %7291 }
 0x8fe   :  { %v7294_v62 = vpop.eup %7293  ;;  %v6628_v25 = vpop.f32.mrb[156].mxu0  ;;  %v5120_v34 = vpack.c.bf16 %v7292_v46, %v7288_v31 }
 0x8ff   :  { %v5015_v52 = vadd.f32 %v6628_v25, %v9181_v33  ;;  %v5006_v50 = vpop.f32.mrb[157].mxu0  ;;  %v5119_v53 = vpack.c.bf16 %v7294_v62, %v7290_v41 }
 0x900   :  { %v5007_v11 = vadd.f32 %v9181_v33, %v5006_v50  ;;  %v6629_v51 = vpop.f32.mrb[158].mxu0 }
 0x901   :  { %7303 = vtanh.f32 %v5015_v52  ;;  %v5018_v56 = vadd.f32 %v6629_v51, %v9181_v33  ;;  %v5009_v8 = vpop.f32.mrb[159].mxu0  ;;  %6666 = vmatprep.mubr.bf16.mxu1 %v5119_v53 }
 0x902   :  { %7305 = vtanh.f32 %v5007_v11  ;;  %v5010_v61 = vadd.f32 %v9181_v33, %v5009_v8 }
 0x903   :  { %v7296_v28 = vpop.eup %7295  ;;  %7307 = vtanh.f32 %v5018_v56 }
 0x904   :  { %6667 = vmatmul.mubr.bf16.gmra.mrb[148].mxu1 %v5120_v34  ;;  %v7298_v3 = vpop.eup %7297  ;;  %7309 = vtanh.f32 %v5010_v61 }
 0x905   :  { %v7300_v60 = vpop.eup %7299 }
 0x906   :  { %v7302_v9 = vpop.eup %7301  ;;  %v6632_v1 = vpop.f32.mrb[160].mxu0  ;;  %v5122_v14 = vpack.c.bf16 %v7300_v60, %v7296_v28 }
 0x907   :  { %v5031_v15 = vadd.f32 %v6632_v1, %v9181_v33  ;;  %v5022_v16 = vpop.f32.mrb[161].mxu0  ;;  %v5121_v17 = vpack.c.bf16 %v7302_v9, %v7298_v3 }
 0x908   :  { %v5023_v20 = vadd.f32 %v9181_v33, %v5022_v16  ;;  %v6633_v21 = vpop.f32.mrb[162].mxu0 }
 0x909   :  { %7311 = vtanh.f32 %v5031_v15  ;;  %v5034_v4 = vadd.f32 %v6633_v21, %v9181_v33  ;;  %v5025_v7 = vpop.f32.mrb[163].mxu0  ;;  %6670 = vmatprep.mubr.bf16.mxu1 %v5121_v17 }
 0x90a   :  { %7313 = vtanh.f32 %v5023_v20  ;;  %v5026_v47 = vadd.f32 %v9181_v33, %v5025_v7 }
 0x90b   :  { %v7304_v59 = vpop.eup %7303  ;;  %7315 = vtanh.f32 %v5034_v4 }
 0x90c   :  { %6671 = vmatmul.mubr.bf16.gmra.mrb[152].mxu1 %v5122_v14  ;;  %v7306_v22 = vpop.eup %7305  ;;  %7317 = vtanh.f32 %v5026_v47  ;;  %v5360_v47 = vld [vmem:[%s9669_s2 + $0x10] sm:$0xff] }
 0x90d   :  { %v7308_v30 = vpop.eup %7307  ;;  %vm5392_vm4 = vcmp.gt.f32.partialorder %v5360_v47, 0.0 }
 0x90e   :  { %v7310_v43 = vpop.eup %7309  ;;  %v6636_v19 = vpop.f32.mrb[164].mxu0  ;;  %v5124_v55 = vpack.c.bf16 %v7308_v30, %v7304_v59 }
 0x90f   :  { %v5047_v2 = vadd.f32 %v6636_v19, %v9181_v33  ;;  %v5038_v45 = vpop.f32.mrb[165].mxu0  ;;  %v5123_v40 = vpack.c.bf16 %v7310_v43, %v7306_v22  ;;  %v5358_v19 = vld [vmem:[%s9669_s2] sm:$0xff] }
 0x910   :  { %v5039_v13 = vadd.f32 %v9181_v33, %v5038_v45  ;;  %v6637_v27 = vpop.f32.mrb[166].mxu0  ;;  %vm5390_vm5 = vcmp.gt.f32.partialorder %v5358_v19, 0.0 }
 0x911   :  { %7319 = vtanh.f32 %v5047_v2  ;;  %v5050_v49 = vadd.f32 %v6637_v27, %v9181_v33  ;;  %v5041_v38 = vpop.f32.mrb[167].mxu0  ;;  %6674 = vmatprep.mubr.bf16.mxu1 %v5123_v40  ;;  %v5361_v2 = vld [vmem:[%s9669_s2 + $0x18] sm:$0xff]  ;;  %v5364_v40 = vld [vmem:[%s9669_s2 + $0x30] sm:$0xff] }
 0x912   :  { %7321 = vtanh.f32 %v5039_v13  ;;  %v5042_v39 = vadd.f32 %v9181_v33, %v5041_v38  ;;  %v5362_v13 = vld [vmem:[%s9669_s2 + $0x20] sm:$0xff]  ;;  %v5365_v27 = vld [vmem:[%s9669_s2 + $0x38] sm:$0xff]  ;;  %vm5393_vm7 = vcmp.gt.f32.partialorder %v5361_v2, 0.0  ;;  %vm5396_vm8 = vcmp.gt.f32.partialorder %v5364_v40, 0.0 }
 0x913   :  { %v7312_v48 = vpop.eup %7311  ;;  %7323 = vtanh.f32 %v5050_v49  ;;  %v5363_v49 = vld [vmem:[%s9669_s2 + $0x28] sm:$0xff]  ;;  %vm5394_vm10 = vcmp.gt.f32.partialorder %v5362_v13, 0.0  ;;  %vm5397_vm11 = vcmp.gt.f32.partialorder %v5365_v27, 0.0 }
 0x914   :  { %6675 = vmatmul.mubr.bf16.gmra.mrb[156].mxu1 %v5124_v55  ;;  %v7314_v42 = vpop.eup %7313  ;;  %7325 = vtanh.f32 %v5042_v39  ;;  %vm5395_vm12 = vcmp.gt.f32.partialorder %v5363_v49, 0.0 }
 0x915   :  { %v7316_v0 = vpop.eup %7315 }
 0x916   :  { %v7318_v18 = vpop.eup %7317  ;;  %v6640_v54 = vpop.f32.mrb[168].mxu0  ;;  %v5126_v31 = vpack.c.bf16 %v7316_v0, %v7312_v48 }
 0x917   :  { %v5063_v41 = vadd.f32 %v6640_v54, %v9181_v33  ;;  %v5054_v46 = vpop.f32.mrb[169].mxu0  ;;  %v5125_v62 = vpack.c.bf16 %v7318_v18, %v7314_v42 }
 0x918   :  { %v5055_v25 = vadd.f32 %v9181_v33, %v5054_v46  ;;  %v6641_v34 = vpop.f32.mrb[170].mxu0 }
 0x919   :  { %7327 = vtanh.f32 %v5063_v41  ;;  %v5066_v52 = vadd.f32 %v6641_v34, %v9181_v33  ;;  %v5057_v50 = vpop.f32.mrb[171].mxu0  ;;  %6678 = vmatprep.mubr.bf16.mxu1 %v5125_v62 }
 0x91a   :  { %7329 = vtanh.f32 %v5055_v25  ;;  %v5058_v53 = vadd.f32 %v9181_v33, %v5057_v50 }
 0x91b   :  { %v7320_v11 = vpop.eup %7319  ;;  %7331 = vtanh.f32 %v5066_v52 }
 0x91c   :  { %6679 = vmatmul.mubr.bf16.gmra.mrb[160].mxu1 %v5126_v31  ;;  %v7322_v51 = vpop.eup %7321  ;;  %7333 = vtanh.f32 %v5058_v53 }
 0x91d   :  { %v7324_v56 = vpop.eup %7323 }
 0x91e   :  { %v7326_v8 = vpop.eup %7325  ;;  %v5128_v61 = vpack.c.bf16 %v7324_v56, %v7320_v11 }
 0x91f   :  { %v5127_v28 = vpack.c.bf16 %v7326_v8, %v7322_v51  ;;  %v5368_v51 = vld [vmem:[%s9669_s2 + $0x50] sm:$0xff] }
 0x920   :  { %vm5400_vm13 = vcmp.gt.f32.partialorder %v5368_v51, 0.0 }
 0x921   :  { %6682 = vmatprep.mubr.bf16.mxu1 %v5127_v28 }
 0x923   :  { %v7328_v3 = vpop.eup %7327 }
 0x924   :  { %6683 = vmatmul.mubr.bf16.gmra.mrb[164].mxu1 %v5128_v61  ;;  %v7330_v60 = vpop.eup %7329 }
 0x925   :  { %v7332_v9 = vpop.eup %7331 }
 0x926   :  { %v7334_v1 = vpop.eup %7333  ;;  %v5130_v14 = vpack.c.bf16 %v7332_v9, %v7328_v3 }
 0x927   :  { %v5129_v15 = vpack.c.bf16 %v7334_v1, %v7330_v60  ;;  %v5366_v60 = vld [vmem:[%s9669_s2 + $0x40] sm:$0xff] }
 0x928   :  { %vm5398_vm14 = vcmp.gt.f32.partialorder %v5366_v60, 0.0 }
 0x929   :  { %6686 = vmatprep.mubr.bf16.mxu1 %v5129_v15 }
 0x92c   :  { %6687 = vmatmul.mubr.bf16.gmra.mrb[168].mxu1 %v5130_v14 }
 0x9cd   :  { %v6644_v16 = vpop.f32.mrb[172].mxu0 }
 0x9ce   :  { %v5079_v17 = vadd.f32 %v6644_v16, %v9181_v33  ;;  %v5070_v20 = vpop.f32.mrb[173].mxu0  ;;  %v5369_v16 = vld [vmem:[%s9669_s2 + $0x58] sm:$0xff] }
 0x9cf   :  { %v5071_v21 = vadd.f32 %v9181_v33, %v5070_v20  ;;  %v6645_v4 = vpop.f32.mrb[174].mxu0  ;;  %v6664_v7 = vpop.f32.mrb[144].mxu1  ;;  %vm5401_vm15 = vcmp.gt.f32.partialorder %v5369_v16, 0.0  ;;  %v5374_v16 = vld [vmem:[%s9669_s2 + $0x80] sm:$0xff] }
 0x9d0   :  { %7335 = vtanh.f32 %v5079_v17  ;;  %v5082_v59 = vadd.f32 %v6645_v4, %v9181_v33  ;;  %v5073_v22 = vpop.f32.mrb[175].mxu0  ;;  %v5231_v30 = vpop.f32.mrb[145].mxu1  ;;  %v9252_v38 = vsel %vm5392_vm4, %v6664_v7, -1e+30  ;;  %v5367_v4 = vld [vmem:[%s9669_s2 + $0x48] sm:$0xff] }
 0x9d1   :  { %7337 = vtanh.f32 %v5071_v21  ;;  %v5074_v43 = vadd.f32 %v9181_v33, %v5073_v22  ;;  %v6665_v55 = vpop.f32.mrb[146].mxu1  ;;  %v5359_v33 = vld [vmem:[%s9669_s2 + $0x8] sm:$0xff]  ;;  %v9254_v39 = vsel %vm5390_vm5, %v5231_v30, -1e+30  ;;  %v5485_v42 = vsel %vm5454_vm6, %v9252_v38, -inf }
 0x9d2   :  { %7339 = vtanh.f32 %v5082_v59  ;;  %v5234_v45 = vpop.f32.mrb[147].mxu1  ;;  %vm5391_vm9 = vcmp.gt.f32.partialorder %v5359_v33, 0.0  ;;  %v9258_v0 = vsel %vm5393_vm7, %v6665_v55, -1e+30  ;;  %v5455_v34 = vsel %vm5454_vm6, %v9254_v39, -inf  ;;  %v5372_v33 = vld [vmem:[%s9669_s2 + $0x70] sm:$0xff] }
 0x9d3   :  { %7341 = vtanh.f32 %v5074_v43  ;;  %v9262_v31 = vsel %vm5391_vm9, %v5234_v45, -1e+30  ;;  %v5500_v8 = vsel %vm5454_vm6, %v9258_v0, -inf  ;;  %vm5399_vm0 = vcmp.gt.f32.partialorder %v5367_v4, 0.0 }
 0x9d4   :  { %v5470_v1 = vsel %vm5454_vm6, %v9262_v31, -inf  ;;  %vm5404_vm1 = vcmp.gt.f32.partialorder %v5372_v33, 0.0  ;;  %vm5406_vm7 = vcmp.gt.f32.partialorder %v5374_v16, 0.0 }
 0x9d7   :  { %v6668_v48 = vpop.f32.mrb[148].mxu1 }
 0x9d8   :  { %v9260_v18 = vsel %vm5396_vm8, %v6668_v48, -1e+30  ;;  %v5247_v54 = vpop.f32.mrb[149].mxu1  ;;  %v5370_v48 = vld [vmem:[%s9669_s2 + $0x60] sm:$0xff] }
 0x9d9   :  { %v5486_v41 = vsel %vm5454_vm6, %v9260_v18, -inf  ;;  %v9266_v46 = vsel %vm5394_vm10, %v5247_v54, -1e+30  ;;  %v6669_v62 = vpop.f32.mrb[150].mxu1  ;;  %vm5402_vm2 = vcmp.gt.f32.partialorder %v5370_v48, 0.0  ;;  %v5380_v48 = vld [vmem:[%s9669_s2 + $0xb0] sm:$0xff] }
 0x9da   :  { %v7336_v25 = vpop.eup %7335  ;;  %v5487_v52 = vmax.f32 %v5485_v42, %v5486_v41  ;;  %v5456_v50 = vsel %vm5454_vm6, %v9266_v46, -inf  ;;  %v9272_v53 = vsel %vm5397_vm11, %v6669_v62, -1e+30  ;;  %v5250_v11 = vpop.f32.mrb[151].mxu1  ;;  %v5373_v41 = vld [vmem:[%s9669_s2 + $0x78] sm:$0xff]  ;;  %vm5412_vm10 = vcmp.gt.f32.partialorder %v5380_v48, 0.0 }
 0x9db   :  { %v7338_v56 = vpop.eup %7337  ;;  %v5457_v61 = vmax.f32 %v5455_v34, %v5456_v50  ;;  %v5501_v28 = vsel %vm5454_vm6, %v9272_v53, -inf  ;;  %v9282_v3 = vsel %vm5395_vm12, %v5250_v11, -1e+30  ;;  %vm5405_vm3 = vcmp.gt.f32.partialorder %v5373_v41, 0.0  ;;  %v5383_v48 = vld [vmem:[%s9669_s2 + $0xc8] sm:$0xff] }
 0x9dc   :  { %v7340_v9 = vpop.eup %7339  ;;  %v5502_v14 = vmax.f32 %v5500_v8, %v5501_v28  ;;  %v5471_v15 = vsel %vm5454_vm6, %v9282_v3, -inf }
 0x9dd   :  { %v7342_v17 = vpop.eup %7341  ;;  %v5472_v20 = vmax.f32 %v5470_v1, %v5471_v15  ;;  %v5132_v21 = vpack.c.bf16 %v7340_v9, %v7336_v25  ;;  %v5371_v25 = vld [vmem:[%s9669_s2 + $0x68] sm:$0xff]  ;;  %v5376_v9 = vld [vmem:[%s9669_s2 + $0x90] sm:$0xff] }
 0x9de   :  { %v5131_v7 = vpack.c.bf16 %v7342_v17, %v7338_v56  ;;  %vm5403_vm4 = vcmp.gt.f32.partialorder %v5371_v25, 0.0  ;;  %vm5408_vm5 = vcmp.gt.f32.partialorder %v5376_v9, 0.0 }
 0x9df   :  { %v6672_v47 = vpop.f32.mrb[152].mxu1 }
 0x9e0   :  { %v9297_v59 = vsel %vm5400_vm13, %v6672_v47, -1e+30  ;;  %6690 = vmatprep.mubr.bf16.mxu1 %v5131_v7  ;;  %v5263_v22 = vpop.f32.mrb[153].mxu1  ;;  %v5375_v7 = vld [vmem:[%s9669_s2 + $0x88] sm:$0xff] }
 0x9e1   :  { %v5488_v30 = vsel %vm5454_vm6, %v9297_v59, -inf  ;;  %v9301_v43 = vsel %vm5398_vm14, %v5263_v22, -1e+30  ;;  %6691 = vmatmul.mubr.bf16.gmra.mrb[172].mxu1 %v5132_v21  ;;  %v6673_v19 = vpop.f32.mrb[154].mxu1  ;;  %v5377_v21 = vld [vmem:[%s9669_s2 + $0x98] sm:$0xff]  ;;  %vm5407_vm9 = vcmp.gt.f32.partialorder %v5375_v7, 0.0 }
 0x9e2   :  { %v5489_v55 = vmax.f32 %v5487_v52, %v5488_v30  ;;  %v5458_v2 = vsel %vm5454_vm6, %v9301_v43, -inf  ;;  %v9305_v45 = vsel %vm5401_vm15, %v6673_v19, -1e+30  ;;  %v5266_v40 = vpop.f32.mrb[155].mxu1  ;;  %vm5409_vm8 = vcmp.gt.f32.partialorder %v5377_v21, 0.0 }
 0x9e3   :  { %v5459_v13 = vmax.f32 %v5457_v61, %v5458_v2  ;;  %v5503_v27 = vsel %vm5454_vm6, %v9305_v45, -inf  ;;  %v9312_v49 = vsel %vm5399_vm0, %v5266_v40, -1e+30 }
 0x9e4   :  { %v5504_v42 = vmax.f32 %v5502_v14, %v5503_v27  ;;  %v5473_v54 = vsel %vm5454_vm6, %v9312_v49, -inf }
 0x9e5   :  { %v5474_v62 = vmax.f32 %v5472_v20, %v5473_v54 }
 0x9e7   :  { %v6676_v34 = vpop.f32.mrb[156].mxu1 }
 0x9e8   :  { %v9325_v52 = vsel %vm5404_vm1, %v6676_v34, -1e+30  ;;  %v5279_v50 = vpop.f32.mrb[157].mxu1  ;;  %vm5415_vm1 = vcmp.gt.f32.partialorder %v5383_v48, 0.0 }
 0x9e9   :  { %v5490_v11 = vsel %vm5454_vm6, %v9325_v52, -inf  ;;  %v9329_v51 = vsel %vm5402_vm2, %v5279_v50, -1e+30  ;;  %v6677_v56 = vpop.f32.mrb[158].mxu1  ;;  %v5381_v50 = vld [vmem:[%s9669_s2 + $0xb8] sm:$0xff] }
 0x9ea   :  { %v5491_v8 = vmax.f32 %v5489_v55, %v5490_v11  ;;  %v5460_v61 = vsel %vm5454_vm6, %v9329_v51, -inf  ;;  %v9333_v28 = vsel %vm5405_vm3, %v6677_v56, -1e+30  ;;  %v5282_v60 = vpop.f32.mrb[159].mxu1  ;;  %v5379_v56 = vld [vmem:[%s9669_s2 + $0xa8] sm:$0xff]  ;;  %vm5413_vm12 = vcmp.gt.f32.partialorder %v5381_v50, 0.0 }
 0x9eb   :  { %v5461_v1 = vmax.f32 %v5459_v13, %v5460_v61  ;;  %v5505_v14 = vsel %vm5454_vm6, %v9333_v28, -inf  ;;  %v9340_v15 = vsel %vm5403_vm4, %v5282_v60, -1e+30  ;;  %vm5411_vm13 = vcmp.gt.f32.partialorder %v5379_v56, 0.0 }
 0x9ec   :  { %v5506_v17 = vmax.f32 %v5504_v42, %v5505_v14  ;;  %v5475_v20 = vsel %vm5454_vm6, %v9340_v15, -inf }
 0x9ed   :  { %v5476_v4 = vmax.f32 %v5474_v62, %v5475_v20  ;;  %v5378_v62 = vld [vmem:[%s9669_s2 + $0xa0] sm:$0xff] }
 0x9ee   :  { %vm5410_vm11 = vcmp.gt.f32.partialorder %v5378_v62, 0.0 }
 0x9ef   :  { %v6680_v47 = vpop.f32.mrb[160].mxu1 }
 0x9f0   :  { %v9353_v22 = vsel %vm5408_vm5, %v6680_v47, -1e+30  ;;  %v5295_v30 = vpop.f32.mrb[161].mxu1 }
 0x9f1   :  { %v5492_v19 = vsel %vm5454_vm6, %v9353_v22, -inf  ;;  %v9357_v55 = vsel %vm5406_vm7, %v5295_v30, -1e+30  ;;  %v6681_v2 = vpop.f32.mrb[162].mxu1 }
 0x9f2   :  { %v5493_v40 = vmax.f32 %v5491_v8, %v5492_v19  ;;  %v5462_v33 = vsel %vm5454_vm6, %v9357_v55, -inf  ;;  %v9361_v13 = vsel %vm5409_vm8, %v6681_v2, -1e+30  ;;  %v5298_v27 = vpop.f32.mrb[163].mxu1  ;;  %v5382_v19 = vld [vmem:[%s9669_s2 + $0xc0] sm:$0xff] }
 0x9f3   :  { %v5463_v42 = vmax.f32 %v5461_v1, %v5462_v33  ;;  %v5507_v54 = vsel %vm5454_vm6, %v9361_v13, -inf  ;;  %v9368_v41 = vsel %vm5407_vm9, %v5298_v27, -1e+30  ;;  %v5385_v33 = vld [vmem:[%s9669_s2 + $0xd8] sm:$0xff]  ;;  %vm5414_vm15 = vcmp.gt.f32.partialorder %v5382_v19, 0.0  ;;  %v5386_v19 = vld [vmem:[%s9669_s2 + $0xe0] sm:$0xff] }
 0x9f4   :  { %v5508_v25 = vmax.f32 %v5506_v17, %v5507_v54  ;;  %v5477_v34 = vsel %vm5454_vm6, %v9368_v41, -inf  ;;  %vm5417_vm0 = vcmp.gt.f32.partialorder %v5385_v33, 0.0  ;;  %vm5418_vm3 = vcmp.gt.f32.partialorder %v5386_v19, 0.0 }
 0x9f5   :  { %v5478_v11 = vmax.f32 %v5476_v4, %v5477_v34  ;;  %v5384_v4 = vld [vmem:[%s9669_s2 + $0xd0] sm:$0xff] }
 0x9f6   :  { %vm5416_vm14 = vcmp.gt.f32.partialorder %v5384_v4, 0.0 }
 0x9f7   :  { %v6684_v8 = vpop.f32.mrb[164].mxu1 }
 0x9f8   :  { %v9381_v61 = vsel %vm5412_vm10, %v6684_v8, -1e+30  ;;  %v5311_v60 = vpop.f32.mrb[165].mxu1 }
 0x9f9   :  { %v5494_v9 = vsel %vm5454_vm6, %v9381_v61, -inf  ;;  %v9385_v1 = vsel %vm5410_vm11, %v5311_v60, -1e+30  ;;  %v6685_v14 = vpop.f32.mrb[166].mxu1 }
 0x9fa   :  { %v5495_v16 = vmax.f32 %v5493_v40, %v5494_v9  ;;  %v5464_v17 = vsel %vm5454_vm6, %v9385_v1, -inf  ;;  %v9389_v20 = vsel %vm5413_vm12, %v6685_v14, -1e+30  ;;  %v5314_v21 = vpop.f32.mrb[167].mxu1 }
 0x9fb   :  { %v5465_v7 = vmax.f32 %v5463_v42, %v5464_v17  ;;  %v5509_v47 = vsel %vm5454_vm6, %v9389_v20, -inf  ;;  %v9396_v30 = vsel %vm5411_vm13, %v5314_v21, -1e+30 }
 0x9fc   :  { %v5510_v2 = vmax.f32 %v5508_v25, %v5509_v47  ;;  %v5479_v40 = vsel %vm5454_vm6, %v9396_v30, -inf }
 0x9fd   :  { %v5480_v27 = vmax.f32 %v5478_v11, %v5479_v40 }
 0x9ff   :  { %v6688_v42 = vpop.f32.mrb[168].mxu1 }
 0xa00   :  { %v5448_v54 = vsel %vm5416_vm14, %v6688_v42, -1e+30  ;;  %v5327_v62 = vpop.f32.mrb[169].mxu1 }
 0xa01   :  { %v5496_v25 = vsel %vm5454_vm6, %v5448_v54, -inf  ;;  %v9410_v34 = vsel %vm5414_vm15, %v5327_v62, -1e+30  ;;  %v6689_v50 = vpop.f32.mrb[170].mxu1 }
 0xa02   :  { %v5497_v56 = vmax.f32 %v5495_v16, %v5496_v25  ;;  %v5466_v11 = vsel %vm5454_vm6, %v9410_v34, -inf  ;;  %v9414_v8 = vsel %vm5417_vm0, %v6689_v50, -1e+30  ;;  %v5330_v60 = vpop.f32.mrb[171].mxu1  ;;  %v5388_v16 = vld [vmem:[%s9669_s2 + $0xf0] sm:$0xff] }
 0xa03   :  { %v5467_v9 = vmax.f32 %v5465_v7, %v5466_v11  ;;  %v5511_v14 = vsel %vm5454_vm6, %v9414_v8, -inf  ;;  %v9418_v17 = vsel %vm5415_vm1, %v5330_v60, -1e+30  ;;  %vm5420_vm2 = vcmp.gt.f32.partialorder %v5388_v16, 0.0  ;;  %v5389_v7 = vld [vmem:[%s9669_s2 + $0xf8] sm:$0xff] }
 0xa04   :  { %v5512_v21 = vmax.f32 %v5510_v2, %v5511_v14  ;;  %v5481_v4 = vsel %vm5454_vm6, %v9418_v17, -inf  ;;  %vm5421_vm4 = vcmp.gt.f32.partialorder %v5389_v7, 0.0 }
 0xa05   :  { %v5482_v47 = vmax.f32 %v5480_v27, %v5481_v4  ;;  %v5387_v27 = vld [vmem:[%s9669_s2 + $0xe8] sm:$0xff] }
 0xa06   :  { %vm5419_vm5 = vcmp.gt.f32.partialorder %v5387_v27, 0.0 }
 0xab4   :  { %v6692_v40 = vpop.f32.mrb[172].mxu1 }
 0xab5   :  { %v5452_v2 = vsel %vm5420_vm2, %v6692_v40, -1e+30  ;;  %v5343_v33 = vpop.f32.mrb[173].mxu1 }
 0xab6   :  { %v5498_v48 = vsel %vm5454_vm6, %v5452_v2, -inf  ;;  %v9435_v42 = vsel %vm5418_vm3, %v5343_v33, -1e+30  ;;  %v6693_v62 = vpop.f32.mrb[174].mxu1 }
 0xab7   :  { %v5499_v25 = vmax.f32 %v5497_v56, %v5498_v48  ;;  %v5468_v50 = vsel %vm5454_vm6, %v9435_v42, -inf  ;;  %v5346_v11 = vpop.f32.mrb[175].mxu1  ;;  %v9441_v14 = vsel %vm5421_vm4, %v6693_v62, -1e+30 }
 0xab8   :  { %v9439_v60 = vmax.f32 %v5467_v9, %v5468_v50 }
 0xab9   :  { %v5517_v4 = vsub.f32 %v9252_v38, %v5499_v25  ;;  %v5521_v16 = vsub.f32 %v9260_v18, %v5499_v25  ;;  %v5525_v19 = vsub.f32 %v9297_v59, %v5499_v25  ;;  %v5529_v7 = vsub.f32 %v9325_v52, %v5499_v25 }
 0xaba   :  { %v5533_v40 = vsub.f32 %v9353_v22, %v5499_v25  ;;  %v5537_v56 = vsub.f32 %v9381_v61, %v5499_v25  ;;  %v5541_v33 = vsub.f32 %v5448_v54, %v5499_v25  ;;  %v5545_v48 = vsub.f32 %v5452_v2, %v5499_v25 }
 0xabb   :  { %v5551_v44 = vmul.f32 1.442695, %v5517_v4  ;;  %v5559_v9 = vmul.f32 1.442695, %v5521_v16  ;;  %v5567_v50 = vmul.f32 1.442695, %v5525_v19  ;;  %v5515_v62 = vsub.f32 %v9254_v39, %v9439_v60 }
 0xabc   :  { %v5575_v57 = vmul.f32 1.442695, %v5529_v7  ;;  %v5519_v38 = vsub.f32 %v9266_v46, %v9439_v60  ;;  %v5513_v18 = vsel %vm5454_vm6, %v9441_v14, -inf  ;;  %v9456_v59 = vsel %vm5419_vm5, %v5346_v11, -1e+30 }
 0xabd   :  { %7343 = vpow2.f32 %v5551_v44  ;;  %v5583_v52 = vmul.f32 1.442695, %v5533_v40  ;;  %v5591_v22 = vmul.f32 1.442695, %v5537_v56  ;;  %v5523_v61 = vsub.f32 %v9301_v43, %v9439_v60 }
 0xabe   :  { %7345 = vpow2.f32 %v5559_v9  ;;  %v5527_v39 = vsub.f32 %v9329_v51, %v9439_v60  ;;  %v5531_v54 = vsub.f32 %v9357_v55, %v9439_v60  ;;  %v5535_v46 = vsub.f32 %v9385_v1, %v9439_v60 }
 0xabf   :  { %7347 = vpow2.f32 %v5567_v50  ;;  %v5599_v2 = vmul.f32 1.442695, %v5541_v33  ;;  %v5539_v44 = vsub.f32 %v9410_v34, %v9439_v60  ;;  %v5543_v27 = vsub.f32 %v9435_v42, %v9439_v60 }
 0xac0   :  { %7349 = vpow2.f32 %v5575_v57  ;;  %v5607_v43 = vmul.f32 1.442695, %v5545_v48  ;;  %v5547_v25 = vmul.f32 1.442695, %v5515_v62  ;;  %v5555_v11 = vmul.f32 1.442695, %v5519_v38 }
 0xac1   :  { %7351 = vpow2.f32 %v5583_v52  ;;  %v5563_v51 = vmul.f32 1.442695, %v5523_v61  ;;  %v9470_v4 = vmax.f32 %v5512_v21, %v5513_v18  ;;  %v5483_v55 = vsel %vm5454_vm6, %v9456_v59, -inf }
 0xac2   :  { %7353 = vpow2.f32 %v5591_v22  ;;  %v5571_v1 = vmul.f32 1.442695, %v5527_v39  ;;  %v5579_v16 = vmul.f32 1.442695, %v5531_v54  ;;  %v9474_v19 = vmax.f32 %v5482_v47, %v5483_v55 }
 0xac3   :  { %7355 = vpow2.f32 %v5599_v2  ;;  %v5518_v57 = vsub.f32 %v9258_v0, %v9470_v4  ;;  %v5522_v34 = vsub.f32 %v9272_v53, %v9470_v4  ;;  %v5526_v42 = vsub.f32 %v9305_v45, %v9470_v4 }
 0xac4   :  { %7357 = vpow2.f32 %v5607_v43  ;;  %v5530_v21 = vsub.f32 %v9333_v28, %v9470_v4  ;;  %v5534_v60 = vsub.f32 %v9361_v13, %v9470_v4  ;;  %v5538_v47 = vsub.f32 %v9389_v20, %v9470_v4 }
 0xac5   :  { %7359 = vpow2.f32 %v5547_v25  ;;  %v5587_v7 = vmul.f32 1.442695, %v5535_v46  ;;  %v5542_v0 = vsub.f32 %v9414_v8, %v9470_v4  ;;  %v5546_v53 = vsub.f32 %v9441_v14, %v9470_v4 }
 0xac6   :  { %7361 = vpow2.f32 %v5555_v11  ;;  %v5595_v45 = vmul.f32 1.442695, %v5539_v44  ;;  %v5603_v13 = vmul.f32 1.442695, %v5543_v27  ;;  %v5553_v33 = vmul.f32 1.442695, %v5518_v57 }
 0xac7   :  { %v7344_v40 = vpop.eup %7343  ;;  %7363 = vpow2.f32 %v5563_v51  ;;  %v5561_v8 = vmul.f32 1.442695, %v5522_v34  ;;  %v5569_v9 = vmul.f32 1.442695, %v5526_v42  ;;  %v5577_v62 = vmul.f32 1.442695, %v5530_v21 }
 0xac8   :  { %v7346_v56 = vpop.eup %7345  ;;  %v5641_v28 = vsel %vm5454_vm6, %v7344_v40, 0.0  ;;  %5673 = vst.msk [vmem:[#allocation4 + $0x10] sm:$0xff] %vm5454_vm6, %v7344_v40  ;;  %7365 = vpow2.f32 %v5571_v1  ;;  %v5516_v38 = vsub.f32 %v9262_v31, %v9474_v19  ;;  %v5520_v22 = vsub.f32 %v9282_v3, %v9474_v19 }
 0xac9   :  { %v7348_v20 = vpop.eup %7347  ;;  %v5642_v48 = vsel %vm5454_vm6, %v7346_v56, 0.0  ;;  %5677 = vst.msk [vmem:[#allocation4 + $0x30] sm:$0xff] %vm5454_vm6, %v7346_v56  ;;  %7367 = vpow2.f32 %v5579_v16  ;;  %v5524_v61 = vsub.f32 %v9312_v49, %v9474_v19  ;;  %v5585_v46 = vmul.f32 1.442695, %v5534_v60 }
 0xaca   :  { %v7350_v14 = vpop.eup %7349  ;;  %v5643_v50 = vadd.f32 %v5642_v48, %v5641_v28  ;;  %5681 = vst.msk [vmem:[#allocation4 + $0x50] sm:$0xff] %vm5454_vm6, %v7348_v20  ;;  %7369 = vpow2.f32 %v5587_v7  ;;  %v5644_v52 = vsel %vm5454_vm6, %v7348_v20, 0.0  ;;  %v5528_v31 = vsub.f32 %v9340_v15, %v9474_v19 }
 0xacb   :  { %v7352_v18 = vpop.eup %7351  ;;  %5685 = vst.msk [vmem:[#allocation4 + $0x70] sm:$0xff] %vm5454_vm6, %v7350_v14  ;;  %7371 = vpow2.f32 %v5595_v45  ;;  %v5646_v44 = vsel %vm5454_vm6, %v7350_v14, 0.0  ;;  %v5532_v3 = vsub.f32 %v9368_v41, %v9474_v19  ;;  %v5536_v49 = vsub.f32 %v9396_v30, %v9474_v19 }
 0xacc   :  { %v7354_v39 = vpop.eup %7353  ;;  %v5645_v54 = vadd.f32 %v5644_v52, %v5643_v50  ;;  %5689 = vst.msk [vmem:[#allocation4 + $0x90] sm:$0xff] %vm5454_vm6, %v7352_v18  ;;  %7373 = vpow2.f32 %v5603_v13  ;;  %v5593_v25 = vmul.f32 1.442695, %v5538_v47  ;;  %v5540_v15 = vsub.f32 %v9418_v17, %v9474_v19 }
 0xacd   :  { %v7356_v2 = vpop.eup %7355  ;;  %5693 = vst.msk [vmem:[#allocation4 + $0xb0] sm:$0xff] %vm5454_vm6, %v7354_v39  ;;  %7375 = vpow2.f32 %v5553_v33  ;;  %v5648_v51 = vsel %vm5454_vm6, %v7352_v18, 0.0  ;;  %v5601_v4 = vmul.f32 1.442695, %v5542_v0  ;;  %v5544_v41 = vsub.f32 %v9456_v59, %v9474_v19 }
 0xace   :  { %v7358_v27 = vpop.eup %7357  ;;  %v5647_v43 = vadd.f32 %v5646_v44, %v5645_v54  ;;  %5697 = vst.msk [vmem:[#allocation4 + $0xd0] sm:$0xff] %vm5454_vm6, %v7356_v2  ;;  %7377 = vpow2.f32 %v5561_v8  ;;  %v5609_v57 = vmul.f32 1.442695, %v5546_v53  ;;  %v5650_v34 = vsel %vm5454_vm6, %v7354_v39, 0.0 }
 0xacf   :  { %v7360_v11 = vpop.eup %7359  ;;  %5701 = vst.msk [vmem:[#allocation4 + $0xf0] sm:$0xff] %vm5454_vm6, %v7358_v27  ;;  %7379 = vpow2.f32 %v5569_v9  ;;  %v5705_v30 = vld [vmem:[#allocation4 + $0x10] sm:$0xff]  ;;  %v5549_v21 = vmul.f32 1.442695, %v5516_v38  ;;  %v5557_v47 = vmul.f32 1.442695, %v5520_v22 }
 0xad0   :  { %v7362_v55 = vpop.eup %7361  ;;  %v5649_v1 = vadd.f32 %v5648_v51, %v5647_v43  ;;  %v5611_v16 = vsel %vm5454_vm6, %v7360_v11, 0.0  ;;  %5671 = vst.msk [vmem:[#allocation4] sm:$0xff] %vm5454_vm6, %v7360_v11  ;;  %7381 = vpow2.f32 %v5577_v62  ;;  %5723 = vperm.xlu0 %6719, %v5705_v30   ;;  %v5652_v0 = vsel %vm5454_vm6, %v7356_v2, 0.0  ;;  %v5742_v45 = vld [vmem:[#allocation4 + $0x30] sm:$0xff] }
 0xad1   :  { %v7364_v17 = vpop.eup %7363  ;;  %v5612_v42 = vsel %vm5454_vm6, %v7362_v55, 0.0  ;;  %5675 = vst.msk [vmem:[#allocation4 + $0x20] sm:$0xff] %vm5454_vm6, %v7362_v55  ;;  %7383 = vpow2.f32 %v5585_v46  ;;  %v5565_v40 = vmul.f32 1.442695, %v5524_v61  ;;  %v5654_v20 = vsel %vm5454_vm6, %v7358_v27, 0.0  ;;  %v5779_v22 = vld [vmem:[#allocation4 + $0x50] sm:$0xff] }
 0xad2   :  { %v7366_v59 = vpop.eup %7365  ;;  %v5651_v19 = vadd.f32 %v5650_v34, %v5649_v1  ;;  %v5613_v60 = vadd.f32 %v5612_v42, %v5611_v16  ;;  %5679 = vst.msk [vmem:[#allocation4 + $0x40] sm:$0xff] %vm5454_vm6, %v7364_v17  ;;  %7385 = vpow2.f32 %v5593_v25  ;;  %v5614_v53 = vsel %vm5454_vm6, %v7364_v17, 0.0  ;;  %v5816_v51 = vld [vmem:[#allocation4 + $0x70] sm:$0xff] }
 0xad3   :  { %v7368_v7 = vpop.eup %7367  ;;  %5683 = vst.msk [vmem:[#allocation4 + $0x60] sm:$0xff] %vm5454_vm6, %v7366_v59  ;;  %7387 = vpow2.f32 %v5601_v4  ;;  %v5616_v48 = vsel %vm5454_vm6, %v7366_v59, 0.0  ;;  %v5573_v8 = vmul.f32 1.442695, %v5528_v31  ;;  %v5581_v62 = vmul.f32 1.442695, %v5532_v3 }
 0xad4   :  { %v7370_v56 = vpop.eup %7369  ;;  %v5653_v28 = vadd.f32 %v5652_v0, %v5651_v19  ;;  %v5615_v13 = vadd.f32 %v5614_v53, %v5613_v60  ;;  %5687 = vst.msk [vmem:[#allocation4 + $0x80] sm:$0xff] %vm5454_vm6, %v7368_v7  ;;  %7389 = vpow2.f32 %v5609_v57  ;;  %5760 = vperm.xlu0 %6719, %v5742_v45   ;;  %v5618_v18 = vsel %vm5454_vm6, %v7368_v7, 0.0  ;;  %v5853_v19 = vld [vmem:[#allocation4 + $0x90] sm:$0xff] }
 0xad5   :  { %v7372_v33 = vpop.eup %7371  ;;  %5691 = vst.msk [vmem:[#allocation4 + $0xa0] sm:$0xff] %vm5454_vm6, %v7370_v56  ;;  %7391 = vpow2.f32 %v5549_v21  ;;  %v5589_v52 = vmul.f32 1.442695, %v5536_v49  ;;  %v5597_v46 = vmul.f32 1.442695, %v5540_v15  ;;  %v5620_v2 = vsel %vm5454_vm6, %v7370_v56, 0.0 }
 0xad6   :  { %v7374_v9 = vpop.eup %7373  ;;  %v9534_v14 = vadd.f32 %v5654_v20, %v5653_v28  ;;  %v5617_v50 = vadd.f32 %v5616_v48, %v5615_v13  ;;  %5695 = vst.msk [vmem:[#allocation4 + $0xc0] sm:$0xff] %vm5454_vm6, %v7372_v33  ;;  %7393 = vpow2.f32 %v5557_v47  ;;  %v5605_v3 = vmul.f32 1.442695, %v5544_v41  ;;  %v5890_v48 = vld [vmem:[#allocation4 + $0xb0] sm:$0xff] }
 0xad7   :  { %v7376_v38 = vpop.eup %7375  ;;  %5699 = vst.msk [vmem:[#allocation4 + $0xe0] sm:$0xff] %vm5454_vm6, %v7374_v9  ;;  %7395 = vpow2.f32 %v5565_v40  ;;  %v5622_v11 = vsel %vm5454_vm6, %v7372_v33, 0.0  ;;  %v5624_v1 = vsel %vm5454_vm6, %v7374_v9, 0.0 }
 0xad8   :  { %v7378_v61 = vpop.eup %7377  ;;  %v5619_v39 = vadd.f32 %v5618_v18, %v5617_v50  ;;  %v5656_v54 = vsel %vm5454_vm6, %v7376_v38, 0.0  ;;  %5674 = vst.msk [vmem:[#allocation4 + $0x18] sm:$0xff] %vm5454_vm6, %v7376_v38  ;;  %5797 = vperm.xlu0 %6719, %v5779_v22   ;;  %7397 = vpow2.f32 %v5573_v8 }
 0xad9   :  { %v7380_v31 = vpop.eup %7379  ;;  %v5657_v44 = vsel %vm5454_vm6, %v7378_v61, 0.0  ;;  %5678 = vst.msk [vmem:[#allocation4 + $0x38] sm:$0xff] %vm5454_vm6, %v7378_v61  ;;  %7399 = vpow2.f32 %v5581_v62 }
 0xada   :  { %v7382_v27 = vpop.eup %7381  ;;  %v5621_v49 = vadd.f32 %v5620_v2, %v5619_v39  ;;  %v5658_v43 = vadd.f32 %v5657_v44, %v5656_v54  ;;  %5682 = vst.msk [vmem:[#allocation4 + $0x58] sm:$0xff] %vm5454_vm6, %v7380_v31  ;;  %v5659_v15 = vsel %vm5454_vm6, %v7380_v31, 0.0  ;;  %7401 = vpow2.f32 %v5589_v52  ;;  %v6951_v39 = vld [vmem:[%s9676_s9] sm:$0xff]   ;;  %v5927_v2 = vld [vmem:[#allocation4 + $0xd0] sm:$0xff] }
 0xadb   :  { %v7384_v25 = vpop.eup %7383  ;;  %5686 = vst.msk [vmem:[#allocation4 + $0x78] sm:$0xff] %vm5454_vm6, %v7382_v27  ;;  %7403 = vpow2.f32 %v5597_v46  ;;  %v5661_v16 = vsel %vm5454_vm6, %v7382_v27, 0.0  ;;  %6694 = vmatprep.subr.bf16.mxu0 %v6951_v39 }
 0xadc   :  { %v7386_v4 = vpop.eup %7385  ;;  %v5623_v30 = vadd.f32 %v5622_v11, %v5621_v49  ;;  %v5660_v55 = vadd.f32 %v5659_v15, %v5658_v43  ;;  %5690 = vst.msk [vmem:[#allocation4 + $0x98] sm:$0xff] %vm5454_vm6, %v7384_v25  ;;  %5834 = vperm.xlu0 %6719, %v5816_v51   ;;  %7405 = vpow2.f32 %v5605_v3  ;;  %v5663_v21 = vsel %vm5454_vm6, %v7384_v25, 0.0  ;;  %6695 = vmatpush3.bf16.msra.mxu0 %v6951_v39  ;;  %v5964_v25 = vld [vmem:[#allocation4 + $0xf0] sm:$0xff] }
 0xadd   :  { %v7388_v41 = vpop.eup %7387  ;;  %5694 = vst.msk [vmem:[#allocation4 + $0xb8] sm:$0xff] %vm5454_vm6, %v7386_v4  ;;  %v5665_v53 = vsel %vm5454_vm6, %v7386_v4, 0.0  ;;  %v6952_v4 = vld [vmem:[%s9676_s9 + $0x8] sm:$0xff]  }
 0xade   :  { %v7390_v57 = vpop.eup %7389  ;;  %v9552_v17 = vadd.f32 %v5624_v1, %v5623_v30  ;;  %v5662_v34 = vadd.f32 %v5661_v16, %v5660_v55  ;;  %5698 = vst.msk [vmem:[#allocation4 + $0xd8] sm:$0xff] %vm5454_vm6, %v7388_v41  ;;  %v5667_v13 = vsel %vm5454_vm6, %v7388_v41, 0.0  ;;  %v5703_v55 = vld [vmem:[#allocation4] sm:$0xff]  ;;  %6696 = vmatprep.subr.bf16.mxu0 %v6952_v4  ;;  %v6953_v16 = vld [vmem:[%s9676_s9 + $0x10] sm:$0xff]  }
 0xadf   :  { %v7392_v42 = vpop.eup %7391  ;;  %5702 = vst.msk [vmem:[#allocation4 + $0xf8] sm:$0xff] %vm5454_vm6, %v7390_v57  ;;  %v5706_v59 = vld [vmem:[#allocation4 + $0x18] sm:$0xff]  ;;  %v5669_v38 = vsel %vm5454_vm6, %v7390_v57, 0.0  ;;  %v5740_v1 = vld [vmem:[#allocation4 + $0x20] sm:$0xff] }
 0xae0   :  { %v7394_v60 = vpop.eup %7393  ;;  %v5664_v47 = vadd.f32 %v5663_v21, %v5662_v34  ;;  %v5626_v7 = vsel %vm5454_vm6, %v7392_v42, 0.0  ;;  %5672 = vst.msk [vmem:[#allocation4 + $0x8] sm:$0xff] %vm5454_vm6, %v7392_v42  ;;  %5728 = vperm.xlu1 %6720, %v5706_v59   ;;  %5871 = vperm.xlu0 %6719, %v5853_v19   ;;  %v5743_v20 = vld [vmem:[#allocation4 + $0x38] sm:$0xff]  ;;  %v5777_v34 = vld [vmem:[#allocation4 + $0x40] sm:$0xff]  ;;  %7407 = vrcp.f32 %v9552_v17  ;;  %v6956_v17 = vld [vmem:[%s9676_s9 + $0x28] sm:$0xff]  }
 0xae1   :  { %v7396_v0 = vpop.eup %7395  ;;  %v5627_v40 = vsel %vm5454_vm6, %v7394_v60, 0.0  ;;  %5676 = vst.msk [vmem:[#allocation4 + $0x28] sm:$0xff] %vm5454_vm6, %v7394_v60  ;;  %v5780_v31 = vld [vmem:[#allocation4 + $0x58] sm:$0xff]  ;;  %6697 = vmatpush3.bf16.msra.mxu0 %v6952_v4  ;;  %v5814_v21 = vld [vmem:[#allocation4 + $0x60] sm:$0xff]  ;;  %7409 = vrcp.f32 %v9534_v14  ;;  %v6957_v14 = vld [vmem:[%s9676_s9 + $0x30] sm:$0xff]  }
 0xae2   :  { %v5666_v45 = vadd.f32 %v5665_v53, %v5664_v47  ;;  %v5628_v56 = vadd.f32 %v5627_v40, %v5626_v7  ;;  %5680 = vst.msk [vmem:[#allocation4 + $0x48] sm:$0xff] %vm5454_vm6, %v7396_v0  ;;  %v7398_v28 = vpop.eup %7397  ;;  %v5629_v33 = vsel %vm5454_vm6, %v7396_v0, 0.0  ;;  %v5817_v43 = vld [vmem:[#allocation4 + $0x78] sm:$0xff]  ;;  %6698 = vmatprep.subr.bf16.mxu0 %v6953_v16  ;;  %v5851_v60 = vld [vmem:[#allocation4 + $0x80] sm:$0xff] }
 0xae3   :  { %v7400_v8 = vpop.eup %7399  ;;  %5684 = vst.msk [vmem:[#allocation4 + $0x68] sm:$0xff] %vm5454_vm6, %v7398_v28  ;;  %v5631_v18 = vsel %vm5454_vm6, %v7398_v28, 0.0  ;;  %v5854_v30 = vld [vmem:[#allocation4 + $0x98] sm:$0xff]  ;;  %v5888_v7 = vld [vmem:[#allocation4 + $0xa0] sm:$0xff] }
 0xae4   :  { %v5668_v9 = vadd.f32 %v5667_v13, %v5666_v45  ;;  %v5630_v50 = vadd.f32 %v5629_v33, %v5628_v56  ;;  %5765 = vperm.xlu1 %6720, %v5743_v20   ;;  %5908 = vperm.xlu0 %6719, %v5890_v48   ;;  %v7402_v62 = vpop.eup %7401  ;;  %5688 = vst.msk [vmem:[#allocation4 + $0x88] sm:$0xff] %vm5454_vm6, %v7400_v8  ;;  %v5633_v46 = vsel %vm5454_vm6, %v7400_v8, 0.0  ;;  %v5891_v41 = vld [vmem:[#allocation4 + $0xb8] sm:$0xff]  ;;  %v6955_v0 = vld [vmem:[%s9676_s9 + $0x20] sm:$0xff]  }
 0xae5   :  { %v7404_v52 = vpop.eup %7403  ;;  %5692 = vst.msk [vmem:[#allocation4 + $0xa8] sm:$0xff] %vm5454_vm6, %v7402_v62  ;;  %v5635_v3 = vsel %vm5454_vm6, %v7402_v62, 0.0  ;;  %v5928_v57 = vld [vmem:[#allocation4 + $0xd8] sm:$0xff]  ;;  %6699 = vmatpush3.bf16.msra.mxu0 %v6953_v16  ;;  %v5925_v40 = vld [vmem:[#allocation4 + $0xc0] sm:$0xff] }
 0xae6   :  { %v9569_v22 = vadd.f32 %v5669_v38, %v5668_v9  ;;  %v5632_v61 = vadd.f32 %v5631_v18, %v5630_v50  ;;  %v7406_v54 = vpop.eup %7405  ;;  %5696 = vst.msk [vmem:[#allocation4 + $0xc8] sm:$0xff] %vm5454_vm6, %v7404_v52  ;;  %v5637_v49 = vsel %vm5454_vm6, %v7404_v52, 0.0  ;;  %v5965_v42 = vld [vmem:[#allocation4 + $0xf8] sm:$0xff]  ;;  %v5962_v56 = vld [vmem:[#allocation4 + $0xe0] sm:$0xff] }
 0xae7   :  { %5700 = vst.msk [vmem:[#allocation4 + $0xe8] sm:$0xff] %vm5454_vm6, %v7406_v54  ;;  %v5639_v15 = vsel %vm5454_vm6, %v7406_v54, 0.0  ;;  %v6954_v59 = vld [vmem:[%s9676_s9 + $0x18] sm:$0xff]   ;;  %v5704_v19 = vld [vmem:[#allocation4 + $0x8] sm:$0xff] }
 0xae8   :  { %v5634_v44 = vadd.f32 %v5633_v46, %v5632_v61  ;;  %5802 = vperm.xlu1 %6720, %v5780_v31   ;;  %5945 = vperm.xlu0 %6719, %v5927_v2   ;;  %v5741_v47 = vld [vmem:[#allocation4 + $0x28] sm:$0xff]  ;;  %v6958_v9 = vld [vmem:[%s9676_s9 + $0x38] sm:$0xff]  }
 0xae9   :  { %6700 = vmatprep.subr.bf16.mxu0 %v6954_v59  ;;  %v5778_v53 = vld [vmem:[#allocation4 + $0x48] sm:$0xff] }
 0xaea   :  { %v5636_v27 = vadd.f32 %v5635_v3, %v5634_v44  ;;  %6701 = vmatpush3.bf16.msra.mxu0 %v6954_v59  ;;  %v5815_v45 = vld [vmem:[#allocation4 + $0x68] sm:$0xff]  ;;  %v7408_v28 = vpop.eup %7407 }
 0xaeb   :  { %6702 = vmatprep.subr.bf16.mxu0 %v6955_v0  ;;  %v5852_v13 = vld [vmem:[#allocation4 + $0x88] sm:$0xff]  ;;  %v7410_v33 = vpop.eup %7409 }
 0xaec   :  { %v5638_v11 = vadd.f32 %v5637_v49, %v5636_v27  ;;  %5839 = vperm.xlu1 %6720, %v5817_v43   ;;  %5982 = vperm.xlu0 %6719, %v5964_v25   ;;  %v5889_v20 = vld [vmem:[#allocation4 + $0xa8] sm:$0xff] }
 0xaed   :  { %v5926_v48 = vld [vmem:[#allocation4 + $0xc8] sm:$0xff] }
 0xaee   :  { %v5640_v51 = vadd.f32 %v5639_v15, %v5638_v11  ;;  %6703 = vmatpush3.bf16.msra.mxu0 %v6955_v0  ;;  %v5963_v8 = vld [vmem:[#allocation4 + $0xe8] sm:$0xff] }
 0xaef   :  { %6704 = vmatprep.subr.bf16.mxu0 %v6956_v17 }
 0xaf0   :  { %5876 = vperm.xlu1 %6720, %v5854_v30   ;;  %5713 = vperm.xlu0 %6719, %v5703_v55   ;;  %7411 = vrcp.f32 %v5640_v51 }
 0xaf1   :  { %7413 = vrcp.f32 %v9569_v22 }
 0xaf2   :  { %6705 = vmatpush3.bf16.msra.mxu0 %v6956_v17  ;;  %v9758_v17 = vld [vmem:[#allocation21_spill] sm:$0xff] }
 0xaf3   :  { %6706 = vmatprep.subr.bf16.mxu0 %v6957_v14 }
 0xaf4   :  { %5913 = vperm.xlu1 %6720, %v5891_v41   ;;  %5750 = vperm.xlu0 %6719, %v5740_v1  }
 0xaf6   :  { %6707 = vmatpush3.bf16.msra.mxu0 %v6957_v14 }
 0xaf7   :  { %6708 = vmatprep.subr.bf16.mxu0 %v6958_v9 }
 0xaf8   :  { %5950 = vperm.xlu1 %6720, %v5928_v57   ;;  %5787 = vperm.xlu0 %6719, %v5777_v34   ;;  %v9753_v34 = vld [vmem:[#allocation14_spill] sm:$0xff] }
 0xafa   :  { %v7412_v50 = vpop.eup %7411  ;;  %6709 = vmatpush3.bf16.msra.mxu0 %v6958_v9 }
 0xafb   :  { %v7414_v62 = vpop.eup %7413 }
 0xafc   :  { %5987 = vperm.xlu1 %6720, %v5965_v42   ;;  %5824 = vperm.xlu0 %6719, %v5814_v21   ;;  %v9754_v21 = vld [vmem:[#allocation8_spill] sm:$0xff] }
 0xb00   :  { %5718 = vperm.xlu1 %6720, %v5704_v19   ;;  %5861 = vperm.xlu0 %6719, %v5851_v60   ;;  %v9755_v19 = vld [vmem:[#allocation15_spill] sm:$0xff] }
 0xb04   :  { %5755 = vperm.xlu1 %6720, %v5741_v47   ;;  %5898 = vperm.xlu0 %6719, %v5888_v7   ;;  %v9756_v47 = vld [vmem:[#allocation20_spill] sm:$0xff] }
 0xb08   :  { %5792 = vperm.xlu1 %6720, %v5778_v53   ;;  %5935 = vperm.xlu0 %6719, %v5925_v40   ;;  %v9757_v40 = vld [vmem:[#allocation9_spill] sm:$0xff] }
 0xb0c   :  { %5829 = vperm.xlu1 %6720, %v5815_v45   ;;  %5972 = vperm.xlu0 %6719, %v5962_v56  }
 0xb10   :  { %5866 = vperm.xlu1 %6720, %v5852_v13   ;;  %6004 = vperm.xlu0 %6719, %v7408_v28   ;;  %v9759_v13 = vld [vmem:[#allocation29_spill] sm:$0xff] }
 0xb14   :  { %5903 = vperm.xlu1 %6720, %v5889_v20   ;;  %6014 = vperm.xlu0 %6719, %v7410_v33   ;;  %v9760_v20 = vld [vmem:[#allocation17_spill] sm:$0xff] }
 0xb18   :  { %5940 = vperm.xlu1 %6720, %v5926_v48   ;;  %v9761_v48 = vld [vmem:[#allocation18_spill] sm:$0xff] }
 0xb1c   :  { %5977 = vperm.xlu1 %6720, %v5963_v8  }
 0xb20   :  { %6009 = vperm.xlu1 %6720, %v7412_v50  }
 0xb24   :  { %6019 = vperm.xlu1 %6720, %v7414_v62   ;;  %v9762_v62 = vld [vmem:[#allocation30_spill] sm:$0xff] }
 0xb4f   :  { %v5724_v38 = vpop.permute.xlu0 %5723 }
 0xb53   :  { %v5761_v18 = vpop.permute.xlu0 %5760 }
 0xb54   :  { %v5770_v14 = vmul.f32 %v5761_v18, %v9760_v20 }
 0xb57   :  { %v5798_v52 = vpop.permute.xlu0 %5797 }
 0xb5b   :  { %v5835_v61 = vpop.permute.xlu0 %5834 }
 0xb5f   :  { %v5729_v39 = vpop.permute.xlu1 %5728  ;;  %v5872_v54 = vpop.permute.xlu0 %5871 }
 0xb63   :  { %v5766_v22 = vpop.permute.xlu1 %5765  ;;  %v9605_v46 = vpop.permute.xlu0 %5908 }
 0xb64   :  { %v5771_v8 = vmul.f32 %v5766_v22, %v9761_v48 }
 0xb67   :  { %v5803_v31 = vpop.permute.xlu1 %5802  ;;  %v9607_v2 = vpop.permute.xlu0 %5945 }
 0xb6b   :  { %v5840_v44 = vpop.permute.xlu1 %5839  ;;  %v9609_v3 = vpop.permute.xlu0 %5982 }
 0xb6f   :  { %v5877_v27 = vpop.permute.xlu1 %5876  ;;  %v5714_v49 = vpop.permute.xlu0 %5713 }
 0xb70   :  { %v5731_v59 = vmul.f32 %v5714_v49, %v9754_v21 }
 0xb73   :  { %v5914_v43 = vpop.permute.xlu1 %5913  ;;  %v5751_v25 = vpop.permute.xlu0 %5750 }
 0xb74   :  { %v5768_v42 = vmul.f32 %v5751_v25, %v9753_v34  ;;  %v9764_v34 = vld [vmem:[#allocation12_spill] sm:$0xff] }
 0xb75   :  { %v5734_v21 = vmul.f32 %v5729_v39, %v9764_v34 }
 0xb76   :  { %v5772_v56 = vadd.f32 %v5768_v42, %v5731_v59  ;;  %v9766_v59 = vld [vmem:[#allocation24_spill] sm:$0xff] }
 0xb77   :  { %v9611_v11 = vpop.permute.xlu1 %5950  ;;  %v5788_v15 = vpop.permute.xlu0 %5787 }
 0xb78   :  { %v5805_v7 = vmul.f32 %v5788_v15, %v9756_v47  ;;  %v9763_v15 = vld [vmem:[#allocation11_spill] sm:$0xff] }
 0xb7a   :  { %v5809_v50 = vadd.f32 %v5805_v7, %v5772_v56  ;;  %v5775_v7 = vadd.f32 %v5771_v8, %v5734_v21 }
 0xb7b   :  { %v9613_v51 = vpop.permute.xlu1 %5987  ;;  %v5825_v4 = vpop.permute.xlu0 %5824 }
 0xb7c   :  { %v5842_v33 = vmul.f32 %v5825_v4, %v9759_v13 }
 0xb7e   :  { %v5846_v47 = vadd.f32 %v5842_v33, %v5809_v50 }
 0xb7f   :  { %v5719_v30 = vpop.permute.xlu1 %5718  ;;  %v5862_v41 = vpop.permute.xlu0 %5861 }
 0xb80   :  { %v5732_v45 = vmul.f32 %v5719_v30, %v9757_v40  ;;  %v5879_v25 = vmul.f32 %v5862_v41, %v8891_v36  ;;  %v9765_v30 = vld [vmem:[#allocation23_spill] sm:$0xff]  ;;  %v9768_v36 = vld [vmem:[#allocation33_spill] sm:$0xff] }
 0xb81   :  { %v5807_v42 = vmul.f32 %v5798_v52, %v9765_v30  ;;  %v5845_v41 = vmul.f32 %v5840_v44, %v9768_v36 }
 0xb82   :  { %v5883_v39 = vadd.f32 %v5879_v25, %v5846_v47 }
 0xb83   :  { %v5756_v55 = vpop.permute.xlu1 %5755  ;;  %v5899_v16 = vpop.permute.xlu0 %5898 }
 0xb84   :  { %v5769_v60 = vmul.f32 %v5756_v55, %v9755_v19  ;;  %v5733_v55 = vmul.f32 %v5724_v38, %v9763_v15  ;;  %v5916_v22 = vmul.f32 %v5899_v16, %v8961_v37 }
 0xb86   :  { %v5773_v9 = vadd.f32 %v5769_v60, %v5732_v45  ;;  %v5774_v60 = vadd.f32 %v5770_v14, %v5733_v55 }
 0xb87   :  { %v5793_v1 = vpop.permute.xlu1 %5792  ;;  %v5936_v53 = vpop.permute.xlu0 %5935 }
 0xb88   :  { %v5806_v28 = vmul.f32 %v5793_v1, %v9758_v17  ;;  %v5808_v1 = vmul.f32 %v5803_v31, %v9766_v59  ;;  %v5953_v31 = vmul.f32 %v5936_v53, %v9103_v63  ;;  %v5811_v56 = vadd.f32 %v5807_v42, %v5774_v60 }
 0xb89   :  { %v5919_v63 = vmul.f32 %v5914_v43, %v8975_v6  ;;  %v9770_v43 = vld [vmem:[#allocation27_spill] sm:$0xff] }
 0xb8a   :  { %v5810_v4 = vadd.f32 %v5806_v28, %v5773_v9  ;;  %v5812_v17 = vadd.f32 %v5808_v1, %v5775_v7  ;;  %v5881_v28 = vmul.f32 %v5872_v54, %v8907_v32  ;;  %v5993_v50 = vmul.f32 %v9613_v51, %v9770_v43 }
 0xb8b   :  { %v5830_v57 = vpop.permute.xlu1 %5829  ;;  %v5973_v38 = vpop.permute.xlu0 %5972 }
 0xb8c   :  { %v5843_v49 = vmul.f32 %v5830_v57, %v9762_v62  ;;  %v9767_v57 = vld [vmem:[#allocation32_spill] sm:$0xff]  ;;  %v5990_v44 = vmul.f32 %v5973_v38, %v9187_v58  ;;  %v5849_v33 = vadd.f32 %v5845_v41, %v5812_v17 }
 0xb8d   :  { %v5844_v40 = vmul.f32 %v5835_v61, %v9767_v57 }
 0xb8e   :  { %v5847_v45 = vadd.f32 %v5843_v49, %v5810_v4 }
 0xb8f   :  { %v5867_v0 = vpop.permute.xlu1 %5866  ;;  %v5848_v13 = vadd.f32 %v5844_v40, %v5811_v56 }
 0xb90   :  { %v5880_v18 = vmul.f32 %v5867_v0, %v8893_v29  ;;  %v5882_v29 = vmul.f32 %v5877_v27, %v8909_v35  ;;  %v5920_v0 = vadd.f32 %v5916_v22, %v5883_v39  ;;  %v5955_v35 = vmul.f32 %v9607_v2, %v9118_v23  ;;  %v6005_v27 = vpop.permute.xlu0 %6004 }
 0xb91   :  { %v5885_v14 = vadd.f32 %v5881_v28, %v5848_v13 }
 0xb92   :  { %v5884_v16 = vadd.f32 %v5880_v18, %v5847_v45  ;;  %v5957_v20 = vadd.f32 %v5953_v31, %v5920_v0  ;;  %v5886_v32 = vadd.f32 %v5882_v29, %v5849_v33 }
 0xb93   :  { %v5904_v19 = vpop.permute.xlu1 %5903 }
 0xb94   :  { %v5917_v52 = vmul.f32 %v5904_v19, %v8963_v12  ;;  %v5918_v12 = vmul.f32 %v9605_v46, %v8973_v5  ;;  %v5994_v8 = vadd.f32 %v5990_v44, %v5957_v20  ;;  %v5923_v5 = vadd.f32 %v5919_v63, %v5886_v32  ;;  %v9769_v46 = vld [vmem:[#allocation26_spill] sm:$0xff]  ;;  %v6015_v55 = vpop.permute.xlu0 %6014 }
 0xb95   :  { %v5992_v6 = vmul.f32 %v9609_v3, %v9769_v46  ;;  %v6531_v3 = vld [vmem:[%s9677_s10] ss:$0 sm:$0xff] }
 0xb96   :  { %v5921_v53 = vadd.f32 %v5917_v52, %v5884_v16  ;;  %v5922_v9 = vadd.f32 %v5918_v12, %v5885_v14  ;;  %v6022_v25 = vmul.f32 %v6005_v27, %v5994_v8 }
 0xb97   :  { %v5941_v37 = vpop.permute.xlu1 %5940 }
 0xb98   :  { %v5954_v61 = vmul.f32 %v5941_v37, %v9105_v10  ;;  %v5956_v10 = vmul.f32 %v9611_v11, %v9120_v24  ;;  %v5959_v23 = vadd.f32 %v5955_v35, %v5922_v9 }
 0xb9a   :  { %v5958_v58 = vadd.f32 %v5954_v61, %v5921_v53  ;;  %v5960_v2 = vadd.f32 %v5956_v10, %v5923_v5  ;;  %v5996_v11 = vadd.f32 %v5992_v6, %v5959_v23 }
 0xb9b   :  { %v5978_v54 = vpop.permute.xlu1 %5977 }
 0xb9c   :  { %v5991_v48 = vmul.f32 %v5978_v54, %v9190_v26  ;;  %v5997_v34 = vadd.f32 %v5993_v50, %v5960_v2  ;;  %v6024_v21 = vmul.f32 %v6015_v55, %v5996_v11 }
 0xb9e   :  { %v5995_v62 = vadd.f32 %v5991_v48, %v5958_v58 }
 0xb9f   :  { %v6010_v49 = vpop.permute.xlu1 %6009 }
 0xba0   :  { %v6023_v15 = vmul.f32 %v6010_v49, %v5995_v62 }
 0xba2   :  { %v6026_v24 = vpack.c.bf16 %v6023_v15, %v6022_v25 }
 0xba3   :  { %v6020_v26 = vpop.permute.xlu1 %6019 }
 0xba4   :  { %v6025_v30 = vmul.f32 %v6020_v26, %v5997_v34  ;;  %6710 = vmatprep.mubr.bf16.mxu0 %v6026_v24 }
 0xba6   :  { %v6027_v42 = vpack.c.bf16 %v6025_v30, %v6024_v21 }
 0xba8   :  { %6711 = vmatmul.mubr.bf16.vlgmr.msra.gmra.mrb[176].mxu0 %v6027_v42 }
 0xc7b   :  { %v6712_v51 = vpop.f32.mrb[176].mxu0 }
 0xc7c   :  { %v6142_v59 = vadd.f32 %v6712_v51, %v6531_v3  ;;  %v6133_v1 = vpop.f32.mrb[177].mxu0 }
 0xc7d   :  { %v6134_v19 = vadd.f32 %v6531_v3, %v6133_v1  ;;  %v6713_v4 = vpop.f32.mrb[178].mxu0 }
 0xc7e   :  { %6150 = vst [vmem:[#allocation5 + $0x10] sm:$0xff] %v6142_v59  ;;  %v6145_v47 = vadd.f32 %v6713_v4, %v6531_v3  ;;  %v6136_v18 = vpop.f32.mrb[179].mxu0 }
 0xc7f   :  { %6148 = vst [vmem:[#allocation5] sm:$0xff] %v6134_v19  ;;  %v6137_v22 = vadd.f32 %v6531_v3, %v6136_v18 }
 0xc80   :  { %6151 = vst [vmem:[#allocation5 + $0x18] sm:$0xff] %v6145_v47 }
 0xc81   :  { %6149 = vst [vmem:[#allocation5 + $0x8] sm:$0xff] %v6137_v22 }
 0xc82   :  { %7458 = shalt.err (!%p7455_p4)
}
 0xc83   :  { %s7459_s17 = scalar_lea.hbm %s9678_s11, 512 }
 0xc84   :  { %p7460_p5 = scmp.ne.s32.totalorder %s9678_s11, %s7459_s17  ;;  %p7463_p6 = scmp.lt.u32.totalorder %s7459_s17, %s9678_s11 }
 0xc86   :  { %p7465_p7 = pnand %p7463_p6, %p7460_p5 }
 0xc88   :  { %7468 = shalt.err (!%p7465_p7)
}
 0xc89   :  { %s7474_s22 = smov 128   ;;  %s7475_s6 = smov 8  }
 0xc8a   :  { %6163 = dma.vmem_to_hbm [thread:$0]  %s6158_s7, 512, %s9678_s11, [#allocation6], %s7474_s22, %s7474_s22, %s7475_s6  }
 0xc8b   :  { %7469 = dma.done.wait [#allocation6], 512  }
 0xc8c   :  { %7470 = vsyncadd [#allocation6], 4294966784 }
 0xc8d   :  { %6167 = vsyncpa [#allocation6], 1 }

</bundles_post_ra>
